<compile_context>
chip_gen: v7x
topology: tpu7x:2x2x1
jax: 0.10.0
libtpu: 0.0.40
codegen_flags: <defaults>
</compile_context>

<pallas_src>
import functools

import jax
import jax.numpy as jnp
from jax import lax
from jax.experimental import pallas as pl
from jax.experimental.pallas import tpu as pltpu


CONV_CH = 128   # hidden channels of ConvTranspose2d output / Conv2d input
OC_PAD = 128    # conv output channels padded to a full lane width (MXU N dim)


# --------------------------------------------------------------------------
# Fused kernel: per (batch, image-row-block)
#   stage 1: ConvTranspose2d(E, 128, k=p, s=p) + ReLU  -> im2col VMEM scratch
#   stage 2: Conv2d(128, OC, 3, padding=1)             -> compact NC(HW) output
# --------------------------------------------------------------------------
def _fused_decoder_kernel(x_ref, w1_ref, b1_ref, w2_ref, b2_ref, o_ref,
                          xcol_ref, *, p, rb, w_patches, W, C, OCP):
    # x_ref:    (1, N, E)         tokens of this batch element (row-major patches)
    # w1_ref:   (E, p*p*C)        deconv weight, columns ordered (ki, kj, c)
    # b1_ref:   (1, p*p*C)        deconv bias tiled over (ki, kj)
    # w2_ref:   (3, 3*C, OC_PAD)  conv weight, rows ordered (kj, c), OC zero-padded
    # b2_ref:   (1, OC_PAD)       conv bias (zero-padded)
    # o_ref:    (1, OCP, RB*W)    channels-first output rows of this block
    # xcol_ref: (RB+2, W, 3*C)    width-im2col of the ReLU intermediate (+halo)
    r = pl.program_id(1)
    RB = rb * p
    PC = p * C

    # Zero only the two boundary width columns the 3x3 conv actually reads.
    xcol_ref[:, 0:1, 0:C] = jnp.zeros((RB + 2, 1, C), jnp.float32)
    xcol_ref[:, W - 1:W, 2 * C:3 * C] = jnp.zeros((RB + 2, 1, C), jnp.float32)

    def put_row(plane, y_row):
        # Write one ReLU image row straight into the three kj-shifted,
        # 128-aligned lane slots of the im2col scratch (no img scratch, no
        # separate im2col copy pass).  Boundary cells stay zero.
        xcol_ref[plane, :, C:2 * C] = y_row                   # kj=1: img[j]
        xcol_ref[plane, 1:W, 0:C] = y_row[:W - 1]             # kj=0: img[j-1]
        xcol_ref[plane, 0:W - 1, 2 * C:3 * C] = y_row[1:]     # kj=2: img[j+1]

    # ---- stage 1: one fused deconv matmul + ReLU for this block ------------
    M = rb * w_patches
    start = r * M
    if M % 8 == 0:
        start = pl.multiple_of(start, 8)
    x2d = x_ref[0, pl.ds(start, M), :]                                 # (M, E)
    y_all = jnp.dot(x2d, w1_ref[...], preferred_element_type=jnp.float32)
    y_all = jnp.maximum(y_all + b1_ref[...], 0.0)                      # (M, p*p*C)

    for ki in range(p):
        y_ki = y_all[:, ki * PC:(ki + 1) * PC].reshape(rb, W, C)
        for i in range(rb):                                   # image row i*p+ki
            put_row(1 + i * p + ki, y_ki[i])

    # ---- halo rows: recompute the single neighbouring deconv row locally ---
    def halo(patch_row, ki, plane):
        xh = x_ref[0, pl.ds(patch_row * w_patches, w_patches), :]      # (w, E)
        yh = jnp.dot(xh, w1_ref[:, ki * PC:(ki + 1) * PC],
                     preferred_element_type=jnp.float32)               # (w, p*C)
        yh = jnp.maximum(yh + b1_ref[:, ki * PC:(ki + 1) * PC], 0.0)
        put_row(plane, yh.reshape(W, C))

    last = pl.num_programs(1) - 1
    zero_plane = jnp.zeros((W, 3 * C), jnp.float32)

    @pl.when(r == 0)
    def _():
        xcol_ref[0] = zero_plane

    @pl.when(r > 0)
    def _():
        halo(r * rb - 1, p - 1, 0)

    @pl.when(r == last)
    def _():
        xcol_ref[RB + 1] = zero_plane

    @pl.when(r < last)
    def _():
        halo((r + 1) * rb, 0, RB + 1)

    # ---- stage 2: 3x3 conv = 3 MXU matmuls; bias folded into the first -----
    xk = xcol_ref[0:RB].reshape(RB * W, 3 * C)
    acc = jnp.dot(xk, w2_ref[0], preferred_element_type=jnp.float32) + b2_ref[...]
    for ki in (1, 2):
        xk = xcol_ref[ki:ki + RB].reshape(RB * W, 3 * C)
        acc = acc + jnp.dot(xk, w2_ref[ki], preferred_element_type=jnp.float32)

    # ---- compact channels-first, lane-dense output (XLU transpose) ---------
    acc_t = jnp.transpose(acc)                                  # (OC_PAD, RB*W)
    o_ref[0] = acc_t[0:OCP, :].astype(o_ref.dtype)


# --------------------------------------------------------------------------
# Wrapper, matching TransformerDecoder.forward(x, H, W) -> NCHW
# --------------------------------------------------------------------------
def transformer_decoder_forward(x, H, W, params, *, patch_size, out_channels,
                                block_patch_rows=None):
    B, N, E = x.shape
    p = patch_size
    h, w = H // p, W // p
    assert N == h * w
    C = CONV_CH
    assert out_channels <= OC_PAD
    OCP = ((out_channels + 7) // 8) * 8          # channels-first pad to sublanes

    if block_patch_rows is None:
        # Largest divisor of h whose output block stays lane dense
        # ((RB*W) % 128 == 0, unless it is the whole image) and whose im2col
        # scratch stays within a few MiB of VMEM.
        block_patch_rows = 1
        for cand in range(h, 0, -1):
            RBc = cand * p
            if h % cand:
                continue
            if (RBc * W) % 128 and h // cand != 1:
                continue
            if (RBc + 2) * W * 3 * C * 4 > 8 * 1024 * 1024:
                continue
            if RBc > 64:
                continue
            block_patch_rows = cand
            break
    rb = block_patch_rows
    assert h % rb == 0
    n_blk = h // rb
    RB = rb * p
    assert (RB * W) % 128 == 0 or n_blk == 1, \
        "output row block must be lane dense (RB*W % 128 == 0)"

    kernel = functools.partial(_fused_decoder_kernel,
                               p=p, rb=rb, w_patches=w, W=W, C=C, OCP=OCP)

    # VMEM budget: scratch + double-buffered input/output blocks (review item).
    vmem_bytes = 4 * ((RB + 2) * W * 3 * C
                      + 2 * (N * E + E * p * p * C + p * p * C
                             + 3 * 3 * C * OC_PAD + OC_PAD
                             + OCP * RB * W))
    vmem_limit = int(min(max(2 * vmem_bytes, 16 * 1024 * 1024), 48 * 1024 * 1024))

    out = pl.pallas_call(
        kernel,
        out_shape=jax.ShapeDtypeStruct((B, OCP, H * W), jnp.float32),
        grid=(B, n_blk),
        in_specs=[
            pl.BlockSpec((1, N, E), lambda b, r: (b, 0, 0)),
            pl.BlockSpec((E, p * p * C), lambda b, r: (0, 0)),
            pl.BlockSpec((1, p * p * C), lambda b, r: (0, 0)),
            pl.BlockSpec((3, 3 * C, OC_PAD), lambda b, r: (0, 0, 0)),
            pl.BlockSpec((1, OC_PAD), lambda b, r: (0, 0)),
        ],
        out_specs=pl.BlockSpec((1, OCP, RB * W), lambda b, r: (b, 0, r)),
        scratch_shapes=[
            pltpu.VMEM((RB + 2, W, 3 * C), jnp.float32),   # width-im2col (+halo)
        ],
        compiler_params=pltpu.CompilerParams(
            dimension_semantics=("parallel", "parallel"),
            vmem_limit_bytes=vmem_limit),
    )(x, params["w1"], params["b1"], params["w2c"], params["b2"])

    # Already channels-first: just drop the padded channels and fold HW.
    return out[:, :out_channels, :].reshape(B, out_channels, H, W)


def pack_params(w_ct, b_ct, w_cv, b_cv, *, out_channels):
    # w_ct: (E, 128, p, p) ConvTranspose2d weight, b_ct: (128,)
    # w_cv: (OC, 128, 3, 3) Conv2d weight,        b_cv: (OC,)
    E, C, p, _ = w_ct.shape
    w1 = jnp.transpose(w_ct, (0, 2, 3, 1)).reshape(E, p * p * C)   # (E, (ki,kj,c))
    b1 = jnp.tile(b_ct, p * p).reshape(1, p * p * C)               # tiled over (ki,kj)
    w2_hwio = jnp.transpose(w_cv, (2, 3, 1, 0))                    # (3,3,C,OC)
    w2_pad = jnp.pad(w2_hwio, ((0, 0), (0, 0), (0, 0), (0, OC_PAD - out_channels)))
    w2c = w2_pad.reshape(3, 3 * C, OC_PAD)                         # (ki, (kj,c), oc)
    b2 = jnp.pad(b_cv, (0, OC_PAD - out_channels)).reshape(1, OC_PAD)
    return {"w1": w1, "b1": b1, "w2c": w2c, "b2": b2}


# --------------------------------------------------------------------------
# Pure-JAX reference (different code path) for correctness check
# --------------------------------------------------------------------------
def reference_forward(x, H, W, w_ct, b_ct, w2_hwio, b2, *, patch_size):
    B, N, E = x.shape
    p = patch_size
    h, w = H // p, W // p
    x_nhwc = x.reshape(B, h, w, E)
    y = jnp.einsum("bije,eokl->bikjlo", x_nhwc, w_ct)
    y = y.reshape(B, H, W, w_ct.shape[1]) + b_ct
    y = jnp.maximum(y, 0.0)
    out = lax.conv_general_dilated(
        y, w2_hwio, window_strides=(1, 1), padding="SAME",
        dimension_numbers=("NHWC", "HWIO", "NHWC"))
    out = out + b2
    return jnp.transpose(out, (0, 3, 1, 2))


if __name__ == "__main__":
    B, embed_dim, patch_size, out_channels = 2, 32, 4, 4
    H = W = 16
    h, w = H // patch_size, W // patch_size
    N = h * w

    key = jax.random.PRNGKey(0)
    k1, k2, k3, k4, kx = jax.random.split(key, 5)

    # PyTorch-layout synthetic params
    w_ct = jax.random.normal(k1, (embed_dim, CONV_CH, patch_size, patch_size),
                             jnp.float32) * 0.02
    b_ct = jax.random.normal(k2, (CONV_CH,), jnp.float32) * 0.02
    w_cv = jax.random.normal(k3, (out_channels, CONV_CH, 3, 3), jnp.float32) * 0.02
    b_cv = jax.random.normal(k4, (out_channels,), jnp.float32) * 0.02

    params = pack_params(w_ct, b_ct, w_cv, b_cv, out_channels=out_channels)
    x = jax.random.normal(kx, (B, N, embed_dim), jnp.float32)

    # 2 patch-rows per block -> grid (B, 2): exercises both halo paths.
    out = transformer_decoder_forward(
        x, H, W, params, patch_size=patch_size, out_channels=out_channels,
        block_patch_rows=2)
    out = jax.block_until_ready(out)
    assert out.shape == (B, out_channels, H, W), out.shape

    w2_hwio = jnp.transpose(w_cv, (2, 3, 1, 0))
    ref = reference_forward(x, H, W, w_ct, b_ct, w2_hwio, b_cv,
                            patch_size=patch_size)
    ref = jax.block_until_ready(ref)
    err = float(jnp.max(jnp.abs(out - ref)))
    assert jnp.allclose(out, ref, atol=1e-3, rtol=1e-3), err

    print("KERNEL_OK")
</pallas_src>

<mosaic_0001>
module attributes {stable_mosaic.version = 11 : i64} {
  func.func @_fused_decoder_kernel(%arg0: i32, %arg1: i32, %arg2: memref<1x16x32xf32, #tpu.memory_space<vmem>>, %arg3: memref<32x2048xf32, #tpu.memory_space<vmem>>, %arg4: memref<1x2048xf32, #tpu.memory_space<vmem>>, %arg5: memref<3x384x128xf32, #tpu.memory_space<vmem>>, %arg6: memref<1x128xf32, #tpu.memory_space<vmem>>, %arg7: memref<1x8x128xf32, #tpu.memory_space<vmem>>, %arg8: memref<10x16x384xf32, #tpu.memory_space<vmem>>) attributes {dimension_semantics = [#tpu.dimension_semantics<parallel>, #tpu.dimension_semantics<parallel>], iteration_bounds = array<i64: 2, 2>, scalar_prefetch = 0 : i64, scratch_operands = 1 : i64, tpu.core_type = #tpu.core_type<tc>, window_params = [{transform_indices = @transform_0, window_bounds = array<i64: 1, 16, 32>}, {pipeline_mode = #tpu.pipeline_mode<synchronous>, transform_indices = @transform_1, window_bounds = array<i64: 32, 2048>}, {pipeline_mode = #tpu.pipeline_mode<synchronous>, transform_indices = @transform_2, window_bounds = array<i64: 1, 2048>}, {pipeline_mode = #tpu.pipeline_mode<synchronous>, transform_indices = @transform_3, window_bounds = array<i64: 3, 384, 128>}, {pipeline_mode = #tpu.pipeline_mode<synchronous>, transform_indices = @transform_4, window_bounds = array<i64: 1, 128>}, {transform_indices = @transform_5, window_bounds = array<i64: 1, 8, 128>}]} {
    %cst = arith.constant 0.000000e+00 : f32
    %0 = vector.broadcast %cst : f32 to vector<10x1x128xf32>
    %c0 = arith.constant 0 : index
    %c0_0 = arith.constant 0 : index
    %c0_1 = arith.constant 0 : index
    %1 = vector.load %arg8[%c0, %c0_0, %c0_1] : memref<10x16x384xf32, #tpu.memory_space<vmem>>, vector<10x1x128xf32>
    tpu.vector_store %arg8[%c0, %c0_0, %c0_1], %0 {strides = array<i32>} : memref<10x16x384xf32, #tpu.memory_space<vmem>>, vector<10x1x128xf32>,
    %cst_2 = arith.constant 0.000000e+00 : f32
    %2 = vector.broadcast %cst_2 : f32 to vector<10x1x128xf32>
    %c0_3 = arith.constant 0 : index
    %c15 = arith.constant 15 : index
    %c256 = arith.constant 256 : index
    %3 = vector.load %arg8[%c0_3, %c15, %c256] : memref<10x16x384xf32, #tpu.memory_space<vmem>>, vector<10x1x128xf32>
    tpu.vector_store %arg8[%c0_3, %c15, %c256], %2 {strides = array<i32>} : memref<10x16x384xf32, #tpu.memory_space<vmem>>, vector<10x1x128xf32>,
    %c8_i32 = arith.constant 8 : i32
    %4 = arith.muli %arg1, %c8_i32 : i32
    %5 = tpu.assume_multiple %4, 8 : i32
    %c0_4 = arith.constant 0 : index
    %6 = arith.index_cast %5 : i32 to index
    %c0_5 = arith.constant 0 : index
    %7 = vector.load %arg2[%c0_4, %6, %c0_5] : memref<1x16x32xf32, #tpu.memory_space<vmem>>, vector<1x8x32xf32>
    %8 = vector.shape_cast %7 : vector<1x8x32xf32> to vector<8x32xf32>
    %c0_6 = arith.constant 0 : index
    %c0_7 = arith.constant 0 : index
    %9 = vector.load %arg3[%c0_6, %c0_7] : memref<32x2048xf32, #tpu.memory_space<vmem>>, vector<32x2048xf32>
    %cst_8 = arith.constant dense<0.000000e+00> : vector<8x2048xf32>
    %10 = tpu.matmul %8, %9, %cst_8 {dimension_numbers = #tpu.dot_dimension_numbers<[1], [0], [0], [1], [0, 0, 1, 1], [], []>} : vector<8x32xf32>, vector<32x2048xf32>, vector<8x2048xf32> -> vector<8x2048xf32>
    %c0_9 = arith.constant 0 : index
    %c0_10 = arith.constant 0 : index
    %11 = vector.load %arg4[%c0_9, %c0_10] : memref<1x2048xf32, #tpu.memory_space<vmem>>, vector<1x2048xf32>
    %12 = vector.broadcast %11 : vector<1x2048xf32> to vector<8x2048xf32>
    %13 = arith.addf %10, %12 : vector<8x2048xf32>
    %cst_11 = arith.constant 0.000000e+00 : f32
    %14 = vector.broadcast %cst_11 : f32 to vector<8x2048xf32>
    %15 = arith.maximumf %13, %14 : vector<8x2048xf32>
    %16 = vector.extract_strided_slice %15 {offsets = [0, 0], sizes = [8, 512], strides = [1, 1]} : vector<8x2048xf32> to vector<8x512xf32>
    %17 = vector.shape_cast %16 : vector<8x512xf32> to vector<2x16x128xf32>
    %18 = vector.extract_strided_slice %17 {offsets = [0, 0, 0], sizes = [1, 16, 128], strides = [1, 1, 1]} : vector<2x16x128xf32> to vector<1x16x128xf32>
    %19 = vector.shape_cast %18 : vector<1x16x128xf32> to vector<16x128xf32>
    %c1 = arith.constant 1 : index
    %c0_12 = arith.constant 0 : index
    %c128 = arith.constant 128 : index
    %20 = vector.load %arg8[%c1, %c0_12, %c128] : memref<10x16x384xf32, #tpu.memory_space<vmem>>, vector<1x16x128xf32>
    %21 = vector.shape_cast %20 : vector<1x16x128xf32> to vector<16x128xf32>
    %22 = vector.shape_cast %19 : vector<16x128xf32> to vector<1x16x128xf32>
    tpu.vector_store %arg8[%c1, %c0_12, %c128], %22 {strides = array<i32>} : memref<10x16x384xf32, #tpu.memory_space<vmem>>, vector<1x16x128xf32>,
    %23 = vector.extract_strided_slice %19 {offsets = [0, 0], sizes = [15, 128], strides = [1, 1]} : vector<16x128xf32> to vector<15x128xf32>
    %c1_13 = arith.constant 1 : index
    %c1_14 = arith.constant 1 : index
    %c0_15 = arith.constant 0 : index
    %24 = vector.load %arg8[%c1_13, %c1_14, %c0_15] : memref<10x16x384xf32, #tpu.memory_space<vmem>>, vector<1x15x128xf32>
    %25 = vector.shape_cast %24 : vector<1x15x128xf32> to vector<15x128xf32>
    %26 = vector.shape_cast %23 : vector<15x128xf32> to vector<1x15x128xf32>
    tpu.vector_store %arg8[%c1_13, %c1_14, %c0_15], %26 {strides = array<i32>} : memref<10x16x384xf32, #tpu.memory_space<vmem>>, vector<1x15x128xf32>,
    %27 = vector.extract_strided_slice %19 {offsets = [1, 0], sizes = [15, 128], strides = [1, 1]} : vector<16x128xf32> to vector<15x128xf32>
    %c1_16 = arith.constant 1 : index
    %c0_17 = arith.constant 0 : index
    %c256_18 = arith.constant 256 : index
    %28 = vector.load %arg8[%c1_16, %c0_17, %c256_18] : memref<10x16x384xf32, #tpu.memory_space<vmem>>, vector<1x15x128xf32>
    %29 = vector.shape_cast %28 : vector<1x15x128xf32> to vector<15x128xf32>
    %30 = vector.shape_cast %27 : vector<15x128xf32> to vector<1x15x128xf32>
    tpu.vector_store %arg8[%c1_16, %c0_17, %c256_18], %30 {strides = array<i32>} : memref<10x16x384xf32, #tpu.memory_space<vmem>>, vector<1x15x128xf32>,
    %31 = vector.extract_strided_slice %17 {offsets = [1, 0, 0], sizes = [1, 16, 128], strides = [1, 1, 1]} : vector<2x16x128xf32> to vector<1x16x128xf32>
    %32 = vector.shape_cast %31 : vector<1x16x128xf32> to vector<16x128xf32>
    %c5 = arith.constant 5 : index
    %c0_19 = arith.constant 0 : index
    %c128_20 = arith.constant 128 : index
    %33 = vector.load %arg8[%c5, %c0_19, %c128_20] : memref<10x16x384xf32, #tpu.memory_space<vmem>>, vector<1x16x128xf32>
    %34 = vector.shape_cast %33 : vector<1x16x128xf32> to vector<16x128xf32>
    %35 = vector.shape_cast %32 : vector<16x128xf32> to vector<1x16x128xf32>
    tpu.vector_store %arg8[%c5, %c0_19, %c128_20], %35 {strides = array<i32>} : memref<10x16x384xf32, #tpu.memory_space<vmem>>, vector<1x16x128xf32>,
    %36 = vector.extract_strided_slice %32 {offsets = [0, 0], sizes = [15, 128], strides = [1, 1]} : vector<16x128xf32> to vector<15x128xf32>
    %c5_21 = arith.constant 5 : index
    %c1_22 = arith.constant 1 : index
    %c0_23 = arith.constant 0 : index
    %37 = vector.load %arg8[%c5_21, %c1_22, %c0_23] : memref<10x16x384xf32, #tpu.memory_space<vmem>>, vector<1x15x128xf32>
    %38 = vector.shape_cast %37 : vector<1x15x128xf32> to vector<15x128xf32>
    %39 = vector.shape_cast %36 : vector<15x128xf32> to vector<1x15x128xf32>
    tpu.vector_store %arg8[%c5_21, %c1_22, %c0_23], %39 {strides = array<i32>} : memref<10x16x384xf32, #tpu.memory_space<vmem>>, vector<1x15x128xf32>,
    %40 = vector.extract_strided_slice %32 {offsets = [1, 0], sizes = [15, 128], strides = [1, 1]} : vector<16x128xf32> to vector<15x128xf32>
    %c5_24 = arith.constant 5 : index
    %c0_25 = arith.constant 0 : index
    %c256_26 = arith.constant 256 : index
    %41 = vector.load %arg8[%c5_24, %c0_25, %c256_26] : memref<10x16x384xf32, #tpu.memory_space<vmem>>, vector<1x15x128xf32>
    %42 = vector.shape_cast %41 : vector<1x15x128xf32> to vector<15x128xf32>
    %43 = vector.shape_cast %40 : vector<15x128xf32> to vector<1x15x128xf32>
    tpu.vector_store %arg8[%c5_24, %c0_25, %c256_26], %43 {strides = array<i32>} : memref<10x16x384xf32, #tpu.memory_space<vmem>>, vector<1x15x128xf32>,
    %44 = vector.extract_strided_slice %15 {offsets = [0, 512], sizes = [8, 512], strides = [1, 1]} : vector<8x2048xf32> to vector<8x512xf32>
    %45 = vector.shape_cast %44 : vector<8x512xf32> to vector<2x16x128xf32>
    %46 = vector.extract_strided_slice %45 {offsets = [0, 0, 0], sizes = [1, 16, 128], strides = [1, 1, 1]} : vector<2x16x128xf32> to vector<1x16x128xf32>
    %47 = vector.shape_cast %46 : vector<1x16x128xf32> to vector<16x128xf32>
    %c2 = arith.constant 2 : index
    %c0_27 = arith.constant 0 : index
    %c128_28 = arith.constant 128 : index
    %48 = vector.load %arg8[%c2, %c0_27, %c128_28] : memref<10x16x384xf32, #tpu.memory_space<vmem>>, vector<1x16x128xf32>
    %49 = vector.shape_cast %48 : vector<1x16x128xf32> to vector<16x128xf32>
    %50 = vector.shape_cast %47 : vector<16x128xf32> to vector<1x16x128xf32>
    tpu.vector_store %arg8[%c2, %c0_27, %c128_28], %50 {strides = array<i32>} : memref<10x16x384xf32, #tpu.memory_space<vmem>>, vector<1x16x128xf32>,
    %51 = vector.extract_strided_slice %47 {offsets = [0, 0], sizes = [15, 128], strides = [1, 1]} : vector<16x128xf32> to vector<15x128xf32>
    %c2_29 = arith.constant 2 : index
    %c1_30 = arith.constant 1 : index
    %c0_31 = arith.constant 0 : index
    %52 = vector.load %arg8[%c2_29, %c1_30, %c0_31] : memref<10x16x384xf32, #tpu.memory_space<vmem>>, vector<1x15x128xf32>
    %53 = vector.shape_cast %52 : vector<1x15x128xf32> to vector<15x128xf32>
    %54 = vector.shape_cast %51 : vector<15x128xf32> to vector<1x15x128xf32>
    tpu.vector_store %arg8[%c2_29, %c1_30, %c0_31], %54 {strides = array<i32>} : memref<10x16x384xf32, #tpu.memory_space<vmem>>, vector<1x15x128xf32>,
    %55 = vector.extract_strided_slice %47 {offsets = [1, 0], sizes = [15, 128], strides = [1, 1]} : vector<16x128xf32> to vector<15x128xf32>
    %c2_32 = arith.constant 2 : index
    %c0_33 = arith.constant 0 : index
    %c256_34 = arith.constant 256 : index
    %56 = vector.load %arg8[%c2_32, %c0_33, %c256_34] : memref<10x16x384xf32, #tpu.memory_space<vmem>>, vector<1x15x128xf32>
    %57 = vector.shape_cast %56 : vector<1x15x128xf32> to vector<15x128xf32>
    %58 = vector.shape_cast %55 : vector<15x128xf32> to vector<1x15x128xf32>
    tpu.vector_store %arg8[%c2_32, %c0_33, %c256_34], %58 {strides = array<i32>} : memref<10x16x384xf32, #tpu.memory_space<vmem>>, vector<1x15x128xf32>,
    %59 = vector.extract_strided_slice %45 {offsets = [1, 0, 0], sizes = [1, 16, 128], strides = [1, 1, 1]} : vector<2x16x128xf32> to vector<1x16x128xf32>
    %60 = vector.shape_cast %59 : vector<1x16x128xf32> to vector<16x128xf32>
    %c6 = arith.constant 6 : index
    %c0_35 = arith.constant 0 : index
    %c128_36 = arith.constant 128 : index
    %61 = vector.load %arg8[%c6, %c0_35, %c128_36] : memref<10x16x384xf32, #tpu.memory_space<vmem>>, vector<1x16x128xf32>
    %62 = vector.shape_cast %61 : vector<1x16x128xf32> to vector<16x128xf32>
    %63 = vector.shape_cast %60 : vector<16x128xf32> to vector<1x16x128xf32>
    tpu.vector_store %arg8[%c6, %c0_35, %c128_36], %63 {strides = array<i32>} : memref<10x16x384xf32, #tpu.memory_space<vmem>>, vector<1x16x128xf32>,
    %64 = vector.extract_strided_slice %60 {offsets = [0, 0], sizes = [15, 128], strides = [1, 1]} : vector<16x128xf32> to vector<15x128xf32>
    %c6_37 = arith.constant 6 : index
    %c1_38 = arith.constant 1 : index
    %c0_39 = arith.constant 0 : index
    %65 = vector.load %arg8[%c6_37, %c1_38, %c0_39] : memref<10x16x384xf32, #tpu.memory_space<vmem>>, vector<1x15x128xf32>
    %66 = vector.shape_cast %65 : vector<1x15x128xf32> to vector<15x128xf32>
    %67 = vector.shape_cast %64 : vector<15x128xf32> to vector<1x15x128xf32>
    tpu.vector_store %arg8[%c6_37, %c1_38, %c0_39], %67 {strides = array<i32>} : memref<10x16x384xf32, #tpu.memory_space<vmem>>, vector<1x15x128xf32>,
    %68 = vector.extract_strided_slice %60 {offsets = [1, 0], sizes = [15, 128], strides = [1, 1]} : vector<16x128xf32> to vector<15x128xf32>
    %c6_40 = arith.constant 6 : index
    %c0_41 = arith.constant 0 : index
    %c256_42 = arith.constant 256 : index
    %69 = vector.load %arg8[%c6_40, %c0_41, %c256_42] : memref<10x16x384xf32, #tpu.memory_space<vmem>>, vector<1x15x128xf32>
    %70 = vector.shape_cast %69 : vector<1x15x128xf32> to vector<15x128xf32>
    %71 = vector.shape_cast %68 : vector<15x128xf32> to vector<1x15x128xf32>
    tpu.vector_store %arg8[%c6_40, %c0_41, %c256_42], %71 {strides = array<i32>} : memref<10x16x384xf32, #tpu.memory_space<vmem>>, vector<1x15x128xf32>,
    %72 = vector.extract_strided_slice %15 {offsets = [0, 1024], sizes = [8, 512], strides = [1, 1]} : vector<8x2048xf32> to vector<8x512xf32>
    %73 = vector.shape_cast %72 : vector<8x512xf32> to vector<2x16x128xf32>
    %74 = vector.extract_strided_slice %73 {offsets = [0, 0, 0], sizes = [1, 16, 128], strides = [1, 1, 1]} : vector<2x16x128xf32> to vector<1x16x128xf32>
    %75 = vector.shape_cast %74 : vector<1x16x128xf32> to vector<16x128xf32>
    %c3 = arith.constant 3 : index
    %c0_43 = arith.constant 0 : index
    %c128_44 = arith.constant 128 : index
    %76 = vector.load %arg8[%c3, %c0_43, %c128_44] : memref<10x16x384xf32, #tpu.memory_space<vmem>>, vector<1x16x128xf32>
    %77 = vector.shape_cast %76 : vector<1x16x128xf32> to vector<16x128xf32>
    %78 = vector.shape_cast %75 : vector<16x128xf32> to vector<1x16x128xf32>
    tpu.vector_store %arg8[%c3, %c0_43, %c128_44], %78 {strides = array<i32>} : memref<10x16x384xf32, #tpu.memory_space<vmem>>, vector<1x16x128xf32>,
    %79 = vector.extract_strided_slice %75 {offsets = [0, 0], sizes = [15, 128], strides = [1, 1]} : vector<16x128xf32> to vector<15x128xf32>
    %c3_45 = arith.constant 3 : index
    %c1_46 = arith.constant 1 : index
    %c0_47 = arith.constant 0 : index
    %80 = vector.load %arg8[%c3_45, %c1_46, %c0_47] : memref<10x16x384xf32, #tpu.memory_space<vmem>>, vector<1x15x128xf32>
    %81 = vector.shape_cast %80 : vector<1x15x128xf32> to vector<15x128xf32>
    %82 = vector.shape_cast %79 : vector<15x128xf32> to vector<1x15x128xf32>
    tpu.vector_store %arg8[%c3_45, %c1_46, %c0_47], %82 {strides = array<i32>} : memref<10x16x384xf32, #tpu.memory_space<vmem>>, vector<1x15x128xf32>,
    %83 = vector.extract_strided_slice %75 {offsets = [1, 0], sizes = [15, 128], strides = [1, 1]} : vector<16x128xf32> to vector<15x128xf32>
    %c3_48 = arith.constant 3 : index
    %c0_49 = arith.constant 0 : index
    %c256_50 = arith.constant 256 : index
    %84 = vector.load %arg8[%c3_48, %c0_49, %c256_50] : memref<10x16x384xf32, #tpu.memory_space<vmem>>, vector<1x15x128xf32>
    %85 = vector.shape_cast %84 : vector<1x15x128xf32> to vector<15x128xf32>
    %86 = vector.shape_cast %83 : vector<15x128xf32> to vector<1x15x128xf32>
    tpu.vector_store %arg8[%c3_48, %c0_49, %c256_50], %86 {strides = array<i32>} : memref<10x16x384xf32, #tpu.memory_space<vmem>>, vector<1x15x128xf32>,
    %87 = vector.extract_strided_slice %73 {offsets = [1, 0, 0], sizes = [1, 16, 128], strides = [1, 1, 1]} : vector<2x16x128xf32> to vector<1x16x128xf32>
    %88 = vector.shape_cast %87 : vector<1x16x128xf32> to vector<16x128xf32>
    %c7 = arith.constant 7 : index
    %c0_51 = arith.constant 0 : index
    %c128_52 = arith.constant 128 : index
    %89 = vector.load %arg8[%c7, %c0_51, %c128_52] : memref<10x16x384xf32, #tpu.memory_space<vmem>>, vector<1x16x128xf32>
    %90 = vector.shape_cast %89 : vector<1x16x128xf32> to vector<16x128xf32>
    %91 = vector.shape_cast %88 : vector<16x128xf32> to vector<1x16x128xf32>
    tpu.vector_store %arg8[%c7, %c0_51, %c128_52], %91 {strides = array<i32>} : memref<10x16x384xf32, #tpu.memory_space<vmem>>, vector<1x16x128xf32>,
    %92 = vector.extract_strided_slice %88 {offsets = [0, 0], sizes = [15, 128], strides = [1, 1]} : vector<16x128xf32> to vector<15x128xf32>
    %c7_53 = arith.constant 7 : index
    %c1_54 = arith.constant 1 : index
    %c0_55 = arith.constant 0 : index
    %93 = vector.load %arg8[%c7_53, %c1_54, %c0_55] : memref<10x16x384xf32, #tpu.memory_space<vmem>>, vector<1x15x128xf32>
    %94 = vector.shape_cast %93 : vector<1x15x128xf32> to vector<15x128xf32>
    %95 = vector.shape_cast %92 : vector<15x128xf32> to vector<1x15x128xf32>
    tpu.vector_store %arg8[%c7_53, %c1_54, %c0_55], %95 {strides = array<i32>} : memref<10x16x384xf32, #tpu.memory_space<vmem>>, vector<1x15x128xf32>,
    %96 = vector.extract_strided_slice %88 {offsets = [1, 0], sizes = [15, 128], strides = [1, 1]} : vector<16x128xf32> to vector<15x128xf32>
    %c7_56 = arith.constant 7 : index
    %c0_57 = arith.constant 0 : index
    %c256_58 = arith.constant 256 : index
    %97 = vector.load %arg8[%c7_56, %c0_57, %c256_58] : memref<10x16x384xf32, #tpu.memory_space<vmem>>, vector<1x15x128xf32>
    %98 = vector.shape_cast %97 : vector<1x15x128xf32> to vector<15x128xf32>
    %99 = vector.shape_cast %96 : vector<15x128xf32> to vector<1x15x128xf32>
    tpu.vector_store %arg8[%c7_56, %c0_57, %c256_58], %99 {strides = array<i32>} : memref<10x16x384xf32, #tpu.memory_space<vmem>>, vector<1x15x128xf32>,
    %100 = vector.extract_strided_slice %15 {offsets = [0, 1536], sizes = [8, 512], strides = [1, 1]} : vector<8x2048xf32> to vector<8x512xf32>
    %101 = vector.shape_cast %100 : vector<8x512xf32> to vector<2x16x128xf32>
    %102 = vector.extract_strided_slice %101 {offsets = [0, 0, 0], sizes = [1, 16, 128], strides = [1, 1, 1]} : vector<2x16x128xf32> to vector<1x16x128xf32>
    %103 = vector.shape_cast %102 : vector<1x16x128xf32> to vector<16x128xf32>
    %c4 = arith.constant 4 : index
    %c0_59 = arith.constant 0 : index
    %c128_60 = arith.constant 128 : index
    %104 = vector.load %arg8[%c4, %c0_59, %c128_60] : memref<10x16x384xf32, #tpu.memory_space<vmem>>, vector<1x16x128xf32>
    %105 = vector.shape_cast %104 : vector<1x16x128xf32> to vector<16x128xf32>
    %106 = vector.shape_cast %103 : vector<16x128xf32> to vector<1x16x128xf32>
    tpu.vector_store %arg8[%c4, %c0_59, %c128_60], %106 {strides = array<i32>} : memref<10x16x384xf32, #tpu.memory_space<vmem>>, vector<1x16x128xf32>,
    %107 = vector.extract_strided_slice %103 {offsets = [0, 0], sizes = [15, 128], strides = [1, 1]} : vector<16x128xf32> to vector<15x128xf32>
    %c4_61 = arith.constant 4 : index
    %c1_62 = arith.constant 1 : index
    %c0_63 = arith.constant 0 : index
    %108 = vector.load %arg8[%c4_61, %c1_62, %c0_63] : memref<10x16x384xf32, #tpu.memory_space<vmem>>, vector<1x15x128xf32>
    %109 = vector.shape_cast %108 : vector<1x15x128xf32> to vector<15x128xf32>
    %110 = vector.shape_cast %107 : vector<15x128xf32> to vector<1x15x128xf32>
    tpu.vector_store %arg8[%c4_61, %c1_62, %c0_63], %110 {strides = array<i32>} : memref<10x16x384xf32, #tpu.memory_space<vmem>>, vector<1x15x128xf32>,
    %111 = vector.extract_strided_slice %103 {offsets = [1, 0], sizes = [15, 128], strides = [1, 1]} : vector<16x128xf32> to vector<15x128xf32>
    %c4_64 = arith.constant 4 : index
    %c0_65 = arith.constant 0 : index
    %c256_66 = arith.constant 256 : index
    %112 = vector.load %arg8[%c4_64, %c0_65, %c256_66] : memref<10x16x384xf32, #tpu.memory_space<vmem>>, vector<1x15x128xf32>
    %113 = vector.shape_cast %112 : vector<1x15x128xf32> to vector<15x128xf32>
    %114 = vector.shape_cast %111 : vector<15x128xf32> to vector<1x15x128xf32>
    tpu.vector_store %arg8[%c4_64, %c0_65, %c256_66], %114 {strides = array<i32>} : memref<10x16x384xf32, #tpu.memory_space<vmem>>, vector<1x15x128xf32>,
    %115 = vector.extract_strided_slice %101 {offsets = [1, 0, 0], sizes = [1, 16, 128], strides = [1, 1, 1]} : vector<2x16x128xf32> to vector<1x16x128xf32>
    %116 = vector.shape_cast %115 : vector<1x16x128xf32> to vector<16x128xf32>
    %c8 = arith.constant 8 : index
    %c0_67 = arith.constant 0 : index
    %c128_68 = arith.constant 128 : index
    %117 = vector.load %arg8[%c8, %c0_67, %c128_68] : memref<10x16x384xf32, #tpu.memory_space<vmem>>, vector<1x16x128xf32>
    %118 = vector.shape_cast %117 : vector<1x16x128xf32> to vector<16x128xf32>
    %119 = vector.shape_cast %116 : vector<16x128xf32> to vector<1x16x128xf32>
    tpu.vector_store %arg8[%c8, %c0_67, %c128_68], %119 {strides = array<i32>} : memref<10x16x384xf32, #tpu.memory_space<vmem>>, vector<1x16x128xf32>,
    %120 = vector.extract_strided_slice %116 {offsets = [0, 0], sizes = [15, 128], strides = [1, 1]} : vector<16x128xf32> to vector<15x128xf32>
    %c8_69 = arith.constant 8 : index
    %c1_70 = arith.constant 1 : index
    %c0_71 = arith.constant 0 : index
    %121 = vector.load %arg8[%c8_69, %c1_70, %c0_71] : memref<10x16x384xf32, #tpu.memory_space<vmem>>, vector<1x15x128xf32>
    %122 = vector.shape_cast %121 : vector<1x15x128xf32> to vector<15x128xf32>
    %123 = vector.shape_cast %120 : vector<15x128xf32> to vector<1x15x128xf32>
    tpu.vector_store %arg8[%c8_69, %c1_70, %c0_71], %123 {strides = array<i32>} : memref<10x16x384xf32, #tpu.memory_space<vmem>>, vector<1x15x128xf32>,
    %124 = vector.extract_strided_slice %116 {offsets = [1, 0], sizes = [15, 128], strides = [1, 1]} : vector<16x128xf32> to vector<15x128xf32>
    %c8_72 = arith.constant 8 : index
    %c0_73 = arith.constant 0 : index
    %c256_74 = arith.constant 256 : index
    %125 = vector.load %arg8[%c8_72, %c0_73, %c256_74] : memref<10x16x384xf32, #tpu.memory_space<vmem>>, vector<1x15x128xf32>
    %126 = vector.shape_cast %125 : vector<1x15x128xf32> to vector<15x128xf32>
    %127 = vector.shape_cast %124 : vector<15x128xf32> to vector<1x15x128xf32>
    tpu.vector_store %arg8[%c8_72, %c0_73, %c256_74], %127 {strides = array<i32>} : memref<10x16x384xf32, #tpu.memory_space<vmem>>, vector<1x15x128xf32>,
    %cst_75 = arith.constant 0.000000e+00 : f32
    %128 = vector.broadcast %cst_75 : f32 to vector<16x384xf32>
    %c0_i32 = arith.constant 0 : i32
    %129 = arith.cmpi eq, %arg1, %c0_i32 : i32
    %130 = arith.extui %129 : i1 to i32
    %c0_i32_76 = arith.constant 0 : i32
    %131 = arith.cmpi ne, %130, %c0_i32_76 : i32
    scf.if %131 {
      %c0_108 = arith.constant 0 : index
      %c0_109 = arith.constant 0 : index
      %c0_110 = arith.constant 0 : index
      %166 = vector.load %arg8[%c0_108, %c0_109, %c0_110] : memref<10x16x384xf32, #tpu.memory_space<vmem>>, vector<1x16x384xf32>
      %167 = vector.shape_cast %166 : vector<1x16x384xf32> to vector<16x384xf32>
      %168 = vector.shape_cast %128 : vector<16x384xf32> to vector<1x16x384xf32>
      tpu.vector_store %arg8[%c0_108, %c0_109, %c0_110], %168 {strides = array<i32>} : memref<10x16x384xf32, #tpu.memory_space<vmem>>, vector<1x16x384xf32>,
    } else {
    }
    %c0_i32_77 = arith.constant 0 : i32
    %132 = arith.cmpi sgt, %arg1, %c0_i32_77 : i32
    %133 = arith.extui %132 : i1 to i32
    %c0_i32_78 = arith.constant 0 : i32
    %134 = arith.cmpi ne, %133, %c0_i32_78 : i32
    scf.if %134 {
      %c2_i32 = arith.constant 2 : i32
      %166 = arith.muli %arg1, %c2_i32 : i32
      %c1_i32_108 = arith.constant 1 : i32
      %167 = arith.subi %166, %c1_i32_108 : i32
      %c4_i32 = arith.constant 4 : i32
      %168 = arith.muli %167, %c4_i32 : i32
      %c0_109 = arith.constant 0 : index
      %169 = arith.index_cast %168 : i32 to index
      %c0_110 = arith.constant 0 : index
      %170 = vector.load %arg2[%c0_109, %169, %c0_110] : memref<1x16x32xf32, #tpu.memory_space<vmem>>, vector<1x4x32xf32>
      %171 = vector.shape_cast %170 : vector<1x4x32xf32> to vector<4x32xf32>
      %c0_111 = arith.constant 0 : index
      %c1536 = arith.constant 1536 : index
      %172 = vector.load %arg3[%c0_111, %c1536] : memref<32x2048xf32, #tpu.memory_space<vmem>>, vector<32x512xf32>
      %cst_112 = arith.constant dense<0.000000e+00> : vector<4x512xf32>
      %173 = tpu.matmul %171, %172, %cst_112 {dimension_numbers = #tpu.dot_dimension_numbers<[1], [0], [0], [1], [0, 0, 1, 1], [], []>} : vector<4x32xf32>, vector<32x512xf32>, vector<4x512xf32> -> vector<4x512xf32>
      %c0_113 = arith.constant 0 : index
      %c1536_114 = arith.constant 1536 : index
      %174 = vector.load %arg4[%c0_113, %c1536_114] : memref<1x2048xf32, #tpu.memory_space<vmem>>, vector<1x512xf32>
      %175 = vector.broadcast %174 : vector<1x512xf32> to vector<4x512xf32>
      %176 = arith.addf %173, %175 : vector<4x512xf32>
      %cst_115 = arith.constant 0.000000e+00 : f32
      %177 = vector.broadcast %cst_115 : f32 to vector<4x512xf32>
      %178 = arith.maximumf %176, %177 : vector<4x512xf32>
      %179 = vector.shape_cast %178 : vector<4x512xf32> to vector<16x128xf32>
      %c0_116 = arith.constant 0 : index
      %c0_117 = arith.constant 0 : index
      %c128_118 = arith.constant 128 : index
      %180 = vector.load %arg8[%c0_116, %c0_117, %c128_118] : memref<10x16x384xf32, #tpu.memory_space<vmem>>, vector<1x16x128xf32>
      %181 = vector.shape_cast %180 : vector<1x16x128xf32> to vector<16x128xf32>
      %182 = vector.shape_cast %179 : vector<16x128xf32> to vector<1x16x128xf32>
      tpu.vector_store %arg8[%c0_116, %c0_117, %c128_118], %182 {strides = array<i32>} : memref<10x16x384xf32, #tpu.memory_space<vmem>>, vector<1x16x128xf32>,
      %183 = vector.extract_strided_slice %179 {offsets = [0, 0], sizes = [15, 128], strides = [1, 1]} : vector<16x128xf32> to vector<15x128xf32>
      %c0_119 = arith.constant 0 : index
      %c1_120 = arith.constant 1 : index
      %c0_121 = arith.constant 0 : index
      %184 = vector.load %arg8[%c0_119, %c1_120, %c0_121] : memref<10x16x384xf32, #tpu.memory_space<vmem>>, vector<1x15x128xf32>
      %185 = vector.shape_cast %184 : vector<1x15x128xf32> to vector<15x128xf32>
      %186 = vector.shape_cast %183 : vector<15x128xf32> to vector<1x15x128xf32>
      tpu.vector_store %arg8[%c0_119, %c1_120, %c0_121], %186 {strides = array<i32>} : memref<10x16x384xf32, #tpu.memory_space<vmem>>, vector<1x15x128xf32>,
      %187 = vector.extract_strided_slice %179 {offsets = [1, 0], sizes = [15, 128], strides = [1, 1]} : vector<16x128xf32> to vector<15x128xf32>
      %c0_122 = arith.constant 0 : index
      %c0_123 = arith.constant 0 : index
      %c256_124 = arith.constant 256 : index
      %188 = vector.load %arg8[%c0_122, %c0_123, %c256_124] : memref<10x16x384xf32, #tpu.memory_space<vmem>>, vector<1x15x128xf32>
      %189 = vector.shape_cast %188 : vector<1x15x128xf32> to vector<15x128xf32>
      %190 = vector.shape_cast %187 : vector<15x128xf32> to vector<1x15x128xf32>
      tpu.vector_store %arg8[%c0_122, %c0_123, %c256_124], %190 {strides = array<i32>} : memref<10x16x384xf32, #tpu.memory_space<vmem>>, vector<1x15x128xf32>,
    } else {
    }
    %c1_i32 = arith.constant 1 : i32
    %135 = arith.cmpi eq, %arg1, %c1_i32 : i32
    %136 = arith.extui %135 : i1 to i32
    %c0_i32_79 = arith.constant 0 : i32
    %137 = arith.cmpi ne, %136, %c0_i32_79 : i32
    scf.if %137 {
      %c9 = arith.constant 9 : index
      %c0_108 = arith.constant 0 : index
      %c0_109 = arith.constant 0 : index
      %166 = vector.load %arg8[%c9, %c0_108, %c0_109] : memref<10x16x384xf32, #tpu.memory_space<vmem>>, vector<1x16x384xf32>
      %167 = vector.shape_cast %166 : vector<1x16x384xf32> to vector<16x384xf32>
      %168 = vector.shape_cast %128 : vector<16x384xf32> to vector<1x16x384xf32>
      tpu.vector_store %arg8[%c9, %c0_108, %c0_109], %168 {strides = array<i32>} : memref<10x16x384xf32, #tpu.memory_space<vmem>>, vector<1x16x384xf32>,
    } else {
    }
    %c1_i32_80 = arith.constant 1 : i32
    %138 = arith.cmpi slt, %arg1, %c1_i32_80 : i32
    %139 = arith.extui %138 : i1 to i32
    %c0_i32_81 = arith.constant 0 : i32
    %140 = arith.cmpi ne, %139, %c0_i32_81 : i32
    scf.if %140 {
      %c1_i32_108 = arith.constant 1 : i32
      %166 = arith.addi %arg1, %c1_i32_108 : i32
      %c2_i32 = arith.constant 2 : i32
      %167 = arith.muli %166, %c2_i32 : i32
      %c4_i32 = arith.constant 4 : i32
      %168 = arith.muli %167, %c4_i32 : i32
      %c0_109 = arith.constant 0 : index
      %169 = arith.index_cast %168 : i32 to index
      %c0_110 = arith.constant 0 : index
      %170 = vector.load %arg2[%c0_109, %169, %c0_110] : memref<1x16x32xf32, #tpu.memory_space<vmem>>, vector<1x4x32xf32>
      %171 = vector.shape_cast %170 : vector<1x4x32xf32> to vector<4x32xf32>
      %c0_111 = arith.constant 0 : index
      %c0_112 = arith.constant 0 : index
      %172 = vector.load %arg3[%c0_111, %c0_112] : memref<32x2048xf32, #tpu.memory_space<vmem>>, vector<32x512xf32>
      %cst_113 = arith.constant dense<0.000000e+00> : vector<4x512xf32>
      %173 = tpu.matmul %171, %172, %cst_113 {dimension_numbers = #tpu.dot_dimension_numbers<[1], [0], [0], [1], [0, 0, 1, 1], [], []>} : vector<4x32xf32>, vector<32x512xf32>, vector<4x512xf32> -> vector<4x512xf32>
      %c0_114 = arith.constant 0 : index
      %c0_115 = arith.constant 0 : index
      %174 = vector.load %arg4[%c0_114, %c0_115] : memref<1x2048xf32, #tpu.memory_space<vmem>>, vector<1x512xf32>
      %175 = vector.broadcast %174 : vector<1x512xf32> to vector<4x512xf32>
      %176 = arith.addf %173, %175 : vector<4x512xf32>
      %cst_116 = arith.constant 0.000000e+00 : f32
      %177 = vector.broadcast %cst_116 : f32 to vector<4x512xf32>
      %178 = arith.maximumf %176, %177 : vector<4x512xf32>
      %179 = vector.shape_cast %178 : vector<4x512xf32> to vector<16x128xf32>
      %c9 = arith.constant 9 : index
      %c0_117 = arith.constant 0 : index
      %c128_118 = arith.constant 128 : index
      %180 = vector.load %arg8[%c9, %c0_117, %c128_118] : memref<10x16x384xf32, #tpu.memory_space<vmem>>, vector<1x16x128xf32>
      %181 = vector.shape_cast %180 : vector<1x16x128xf32> to vector<16x128xf32>
      %182 = vector.shape_cast %179 : vector<16x128xf32> to vector<1x16x128xf32>
      tpu.vector_store %arg8[%c9, %c0_117, %c128_118], %182 {strides = array<i32>} : memref<10x16x384xf32, #tpu.memory_space<vmem>>, vector<1x16x128xf32>,
      %183 = vector.extract_strided_slice %179 {offsets = [0, 0], sizes = [15, 128], strides = [1, 1]} : vector<16x128xf32> to vector<15x128xf32>
      %c9_119 = arith.constant 9 : index
      %c1_120 = arith.constant 1 : index
      %c0_121 = arith.constant 0 : index
      %184 = vector.load %arg8[%c9_119, %c1_120, %c0_121] : memref<10x16x384xf32, #tpu.memory_space<vmem>>, vector<1x15x128xf32>
      %185 = vector.shape_cast %184 : vector<1x15x128xf32> to vector<15x128xf32>
      %186 = vector.shape_cast %183 : vector<15x128xf32> to vector<1x15x128xf32>
      tpu.vector_store %arg8[%c9_119, %c1_120, %c0_121], %186 {strides = array<i32>} : memref<10x16x384xf32, #tpu.memory_space<vmem>>, vector<1x15x128xf32>,
      %187 = vector.extract_strided_slice %179 {offsets = [1, 0], sizes = [15, 128], strides = [1, 1]} : vector<16x128xf32> to vector<15x128xf32>
      %c9_122 = arith.constant 9 : index
      %c0_123 = arith.constant 0 : index
      %c256_124 = arith.constant 256 : index
      %188 = vector.load %arg8[%c9_122, %c0_123, %c256_124] : memref<10x16x384xf32, #tpu.memory_space<vmem>>, vector<1x15x128xf32>
      %189 = vector.shape_cast %188 : vector<1x15x128xf32> to vector<15x128xf32>
      %190 = vector.shape_cast %187 : vector<15x128xf32> to vector<1x15x128xf32>
      tpu.vector_store %arg8[%c9_122, %c0_123, %c256_124], %190 {strides = array<i32>} : memref<10x16x384xf32, #tpu.memory_space<vmem>>, vector<1x15x128xf32>,
    } else {
    }
    %c0_82 = arith.constant 0 : index
    %c0_83 = arith.constant 0 : index
    %c0_84 = arith.constant 0 : index
    %141 = vector.load %arg8[%c0_82, %c0_83, %c0_84] : memref<10x16x384xf32, #tpu.memory_space<vmem>>, vector<8x16x384xf32>
    %142 = vector.shape_cast %141 : vector<8x16x384xf32> to vector<128x384xf32>
    %c0_85 = arith.constant 0 : index
    %c0_86 = arith.constant 0 : index
    %c0_87 = arith.constant 0 : index
    %143 = vector.load %arg5[%c0_85, %c0_86, %c0_87] : memref<3x384x128xf32, #tpu.memory_space<vmem>>, vector<1x384x128xf32>
    %144 = vector.shape_cast %143 : vector<1x384x128xf32> to vector<384x128xf32>
    %cst_88 = arith.constant dense<0.000000e+00> : vector<128x128xf32>
    %145 = tpu.matmul %142, %144, %cst_88 {dimension_numbers = #tpu.dot_dimension_numbers<[1], [0], [0], [1], [0, 0, 1, 1], [], []>} : vector<128x384xf32>, vector<384x128xf32>, vector<128x128xf32> -> vector<128x128xf32>
    %c0_89 = arith.constant 0 : index
    %c0_90 = arith.constant 0 : index
    %146 = vector.load %arg6[%c0_89, %c0_90] : memref<1x128xf32, #tpu.memory_space<vmem>>, vector<1x128xf32>
    %147 = vector.broadcast %146 : vector<1x128xf32> to vector<128x128xf32>
    %148 = arith.addf %145, %147 : vector<128x128xf32>
    %c1_91 = arith.constant 1 : index
    %c0_92 = arith.constant 0 : index
    %c0_93 = arith.constant 0 : index
    %149 = vector.load %arg8[%c1_91, %c0_92, %c0_93] : memref<10x16x384xf32, #tpu.memory_space<vmem>>, vector<8x16x384xf32>
    %150 = vector.shape_cast %149 : vector<8x16x384xf32> to vector<128x384xf32>
    %c1_94 = arith.constant 1 : index
    %c0_95 = arith.constant 0 : index
    %c0_96 = arith.constant 0 : index
    %151 = vector.load %arg5[%c1_94, %c0_95, %c0_96] : memref<3x384x128xf32, #tpu.memory_space<vmem>>, vector<1x384x128xf32>
    %152 = vector.shape_cast %151 : vector<1x384x128xf32> to vector<384x128xf32>
    %cst_97 = arith.constant dense<0.000000e+00> : vector<128x128xf32>
    %153 = tpu.matmul %150, %152, %cst_97 {dimension_numbers = #tpu.dot_dimension_numbers<[1], [0], [0], [1], [0, 0, 1, 1], [], []>} : vector<128x384xf32>, vector<384x128xf32>, vector<128x128xf32> -> vector<128x128xf32>
    %154 = arith.addf %148, %153 : vector<128x128xf32>
    %c2_98 = arith.constant 2 : index
    %c0_99 = arith.constant 0 : index
    %c0_100 = arith.constant 0 : index
    %155 = vector.load %arg8[%c2_98, %c0_99, %c0_100] : memref<10x16x384xf32, #tpu.memory_space<vmem>>, vector<8x16x384xf32>
    %156 = vector.shape_cast %155 : vector<8x16x384xf32> to vector<128x384xf32>
    %c2_101 = arith.constant 2 : index
    %c0_102 = arith.constant 0 : index
    %c0_103 = arith.constant 0 : index
    %157 = vector.load %arg5[%c2_101, %c0_102, %c0_103] : memref<3x384x128xf32, #tpu.memory_space<vmem>>, vector<1x384x128xf32>
    %158 = vector.shape_cast %157 : vector<1x384x128xf32> to vector<384x128xf32>
    %cst_104 = arith.constant dense<0.000000e+00> : vector<128x128xf32>
    %159 = tpu.matmul %156, %158, %cst_104 {dimension_numbers = #tpu.dot_dimension_numbers<[1], [0], [0], [1], [0, 0, 1, 1], [], []>} : vector<128x384xf32>, vector<384x128xf32>, vector<128x128xf32> -> vector<128x128xf32>
    %160 = arith.addf %154, %159 : vector<128x128xf32>
    %161 = tpu.transpose %160, [1, 0] : vector<128x128xf32> -> vector<128x128xf32>
    %162 = vector.extract_strided_slice %161 {offsets = [0, 0], sizes = [8, 128], strides = [1, 1]} : vector<128x128xf32> to vector<8x128xf32>
    %c0_105 = arith.constant 0 : index
    %c0_106 = arith.constant 0 : index
    %c0_107 = arith.constant 0 : index
    %163 = vector.load %arg7[%c0_105, %c0_106, %c0_107] : memref<1x8x128xf32, #tpu.memory_space<vmem>>, vector<1x8x128xf32>
    %164 = vector.shape_cast %163 : vector<1x8x128xf32> to vector<8x128xf32>
    %165 = vector.shape_cast %162 : vector<8x128xf32> to vector<1x8x128xf32>
    tpu.vector_store %arg7[%c0_105, %c0_106, %c0_107], %165 {strides = array<i32>} : memref<1x8x128xf32, #tpu.memory_space<vmem>>, vector<1x8x128xf32>,
    return
  }
  func.func @transform_0(%arg0: i32, %arg1: i32) -> (i32, i32, i32) {
    %c0_i32 = arith.constant 0 : i32
    %c0_i32_0 = arith.constant 0 : i32
    %c0_i32_1 = arith.constant 0 : i32
    return %arg0, %c0_i32, %c0_i32_0 : i32, i32, i32
  }
  func.func @transform_1(%arg0: i32, %arg1: i32) -> (i32, i32) {
    %c0_i32 = arith.constant 0 : i32
    %c0_i32_0 = arith.constant 0 : i32
    %c0_i32_1 = arith.constant 0 : i32
    return %c0_i32, %c0_i32_0 : i32, i32
  }
  func.func @transform_2(%arg0: i32, %arg1: i32) -> (i32, i32) {
    %c0_i32 = arith.constant 0 : i32
    %c0_i32_0 = arith.constant 0 : i32
    %c0_i32_1 = arith.constant 0 : i32
    return %c0_i32, %c0_i32_0 : i32, i32
  }
  func.func @transform_3(%arg0: i32, %arg1: i32) -> (i32, i32, i32) {
    %c0_i32 = arith.constant 0 : i32
    %c0_i32_0 = arith.constant 0 : i32
    %c0_i32_1 = arith.constant 0 : i32
    %c0_i32_2 = arith.constant 0 : i32
    return %c0_i32, %c0_i32_0, %c0_i32_1 : i32, i32, i32
  }
  func.func @transform_4(%arg0: i32, %arg1: i32) -> (i32, i32) {
    %c0_i32 = arith.constant 0 : i32
    %c0_i32_0 = arith.constant 0 : i32
    %c0_i32_1 = arith.constant 0 : i32
    return %c0_i32, %c0_i32_0 : i32, i32
  }
  func.func @transform_5(%arg0: i32, %arg1: i32) -> (i32, i32, i32) {
    %c0_i32 = arith.constant 0 : i32
    %c0_i32_0 = arith.constant 0 : i32
    return %arg0, %c0_i32, %arg1 : i32, i32, i32
  }
}

</mosaic_0001>

<bundles_post_ra>
// kernel: tpu_custom_call.1
= control target key start
LH: loop header
LB: loop body
LE: loop exit
PB: predicated region body
PF: predicated region fallthrough
CT: control target
= control target key end

     0   :  { %s5668_s0 = inlined_call_operand.hbm [shape: f32[2,16,32], index: 0, kind: input, shape index: {}]   ;;  %s5669_s1 = inlined_call_operand.hbm [shape: f32[32,2048], index: 1, kind: input, shape index: {}]   ;;  %s5670_s2 = inlined_call_operand.hbm [shape: f32[1,2048], index: 2, kind: input, shape index: {}]   ;;  %s5671_s3 = inlined_call_operand.hbm [shape: f32[3,384,128], index: 3, kind: input, shape index: {}]   ;;  %s5672_s4 = inlined_call_operand.vmem [shape: f32[1,128], index: 4, kind: input, shape index: {}]   ;;  %s5673_s5 = inlined_call_operand.hbm [shape: f32[2,8,256], index: 5, kind: output, shape index: {}]  }
   0x1   :  { %5686 = sst [smem:[#allocation20_spill]] %s5669_s1 }
   0x2   :  { %5687 = sst [smem:[#allocation21_spill]] %s5670_s2 }
   0x3   :  { %5688 = sst [smem:[#allocation22_spill]] %s5672_s4 }
   0x4   :  { %5689 = sst [smem:[#allocation23_spill]] %s5673_s5 }
   0x5   :  { %10 = vsyncpa [#allocation4], 0 }
   0x6   :  { %12 = vsyncpa [#allocation4 + $0x1], 0 }
   0x7   :  { %13 = vsyncpa [#allocation7], 0 }
   0x8   :  { %14 = vsyncpa [#allocation10], 0 }
   0x9   :  { %15 = vsyncpa [#allocation5], 0 }
   0xa   :  { %17 = vsyncpa [#allocation5 + $0x1], 0  ;;  %s4779_s18 = smov 0   ;;  %s4781_s19 = smov 0  }
   0xb   :  { %s4783_s20 = smov 0   ;;  %s4785_s21 = smov 0  }
   0xc   :  { %s4787_s22 = smov 0   ;;  %s4789_s23 = smov 0  }
   0xd   :  { %s4791_s24 = smov 0   ;;  %s4793_s25 = smov 0  }
   0xe   :  { %s4795_s26 = smov 0   ;;  %s4797_s27 = smov 0  }
   0xf   :  { %s4799_s28 = smov 0  }
  0x10 LB: > { %5690 = sst [smem:[#allocation16_spill]] %s4692_s18  ;;  %s3392_s29 = sadd.s32 4294967295, %s4732_s28   ;;  %s4732_s28 = sphi %s4799_s28, %s23_s28   ;;  %s4728_s27 = sphi %s4797_s27, %s5729_s27   ;;  %s4724_s26 = sphi %s4795_s26, %s5728_s26   ;;  %s4720_s25 = sphi %s4793_s25, %s5727_s25   ;;  %s4716_s24 = sphi %s4791_s24, %s5726_s24   ;;  %s4712_s23 = sphi %s4789_s23, %s5725_s23   ;;  %s4708_s22 = sphi %s4787_s22, %s5724_s22   ;;  %s4704_s21 = sphi %s4785_s21, %s5723_s21   ;;  %s4700_s20 = sphi %s4783_s20, %s5722_s20   ;;  %s4696_s19 = sphi %s4781_s19, %s5721_s19   ;;  %s4692_s18 = sphi %s4779_s18, %s5720_s18  }
  0x11   : > { %5691 = sst [smem:[#allocation17_spill]] %s4720_s25  ;;  %s3393_s30 = sadd.s32 4294967294, %s4732_s28  }
  0x12   : > { %p55_p0 = scmp.ne.s32.totalorder %s4708_s22, %s4704_s21  ;;  %p4835_p1 = scmp.eq.s32.totalorder %s3392_s29, 0 }
  0x13   : > { %p164_p2 = scmp.ne.s32.totalorder %s4700_s20, %s4696_s19  ;;  %p165_p4 = scmp.eq.s32.totalorder %s3392_s29, 3 }
  0x14   : > { %s5692_s6 = scalar_select %p4835_p1, 1, 0 }
  0x15   : > { %p4844_p3 = por %p4835_p1, %p55_p0  ;;  %p170_p5 = scmp.ne.s32.totalorder %s4696_s19, %s4692_s18 }
  0x16   : > { %p171_p6 = scmp.eq.s32.totalorder %s3393_s30, 3  ;;  %p4850_p7 = por %p165_p4, %p164_p2 }
  0x17   : > { %s5693_s8 = scalar_select %p4844_p3, 1, 0 }
  0x18   : > { %s5694_s9 = scalar_select %p4850_p7, 1, 0 }
  0x19   : > { %p3394_p8 = scmp.ge.s32.totalorder %s4732_s28, 1  ;;  %p4855_p9 = por %p171_p6, %p170_p5 }
  0x1a   : > { %5695 = sst [smem:[#allocation18_spill]] %s5694_s9  ;;  %p178_p10 = scmp.lt.s32.totalorder %s4732_s28, 5 }
  0x1b   : > { %s5696_s10 = scalar_select %p4855_p9, 1, 0 }
  0x1c   : > { %p4860_p11 = pnand %p3394_p8, %p178_p10  ;;  %s4734_s12 = smov [#allocation6]  }
  0x1d   : > { %5697 = sst [smem:[#allocation19_spill]] %s5696_s10  ;;  %s190_s13 = sshll.u32 %s4734_s12, 4  ;;  %s4864_s13 = int_to_ptr.vmem [resolvable:$true] %s190_s13 }
  0x1e   : > { %s5698_s11 = scalar_select %p4860_p11, 1, 0 }
  0x1f   : > { %p4361_p12 = pneg %p4860_p11  ;;  %s4735_s15 = smov [#allocation8]  }
  0x20   : > { %s204_s16 = sshll.u32 %s4735_s15, 4  ;;  %s4736_s17 = smov [#allocation9]   ;;  %s4874_s16 = int_to_ptr.vmem [resolvable:$true] %s204_s16 }
  0x21   : > { %p4870_p13 = pnand %p4361_p12, %p4835_p1  ;;  %s4876_s21 = sshll.u32 %s4736_s17, 4  ;;  %s215_s21 = int_to_ptr.vmem [resolvable:$true] %s4876_s21 }
  0x22   : > { %s5700_s1 = sld [smem:[#allocation20_spill]] }
  0x23   : > { %p4886_p2 = pneg %p4870_p13 }
  0x28   : > { %s4488_s12 = scalar_lea.hbm %s5700_s1, 8192 }
  0x29   : > { %p4489_p0 = scmp.ne.s32.totalorder %s5700_s1, %s4488_s12  ;;  %p4495_p6 = scmp.lt.u32.totalorder %s4488_s12, %s5700_s1 }
  0x2b   : > { %p4491_p4 = pnand %p4886_p2, %p4489_p0 }
  0x2d   : > { %p4492_p5 = pneg %p4491_p4 }
  0x2f   : > { %p4497_p8 = pnand %p4495_p6, %p4492_p5 }
  0x31   : > { %4500 = shalt.err (!%p4497_p8)
}
  0x32   : > { %s4501_s7 = scalar_lea.vmem %s4864_s13, 8192  ;;  %p4509_p7 = scmp.lt.s32.totalorder %s4864_s13, %s4864_s13 }
  0x33   : > { %p4502_p10 = scmp.ne.s32.totalorder %s4864_s13, %s4501_s7  ;;  %p4510_p1 = scmp.lt.s32.totalorder %s4501_s7, %s4501_s7 }
  0x35   : > { %p4504_p12 = pnand %p4502_p10, %p4886_p2  ;;  %p4511_p0 = por %p4510_p1, %p4509_p7 }
  0x37   : > { %p4505_p9 = pneg %p4504_p12 }
  0x39   : > { %p4512_p4 = pnand %p4511_p0, %p4505_p9 }
  0x3b   : > { %4515 = shalt.err (!%p4512_p4)
}
  0x3c   : > { %s4737_s10 = smov 2048   ;;  %s5684_s29 = smov 128  }
  0x3d   : > { %4364 = dma.hbm_to_vmem [thread:$0]  (!%p4870_p13), %s5700_s1, 8192, %s4864_s13, [#allocation7], %s4737_s10, %s4737_s10, %s5684_s29  }
  0x3e   : > { %s5702_s2 = sld [smem:[#allocation21_spill]] }
  0x44   : > { %s4516_s5 = scalar_lea.hbm %s5702_s2, 256 }
  0x45   : > { %p4517_p1 = scmp.ne.s32.totalorder %s5702_s2, %s4516_s5  ;;  %p4523_p5 = scmp.lt.u32.totalorder %s4516_s5, %s5702_s2 }
  0x47   : > { %p4519_p7 = pnand %p4517_p1, %p4886_p2 }
  0x49   : > { %p4520_p9 = pneg %p4519_p7 }
  0x4b   : > { %p4525_p6 = pnand %p4523_p5, %p4520_p9 }
  0x4d   : > { %4528 = shalt.err (!%p4525_p6)
}
  0x4e   : > { %s4529_s13 = scalar_lea.vmem %s4874_s16, 256  ;;  %p4537_p0 = scmp.lt.s32.totalorder %s4874_s16, %s4874_s16 }
  0x4f   : > { %p4530_p8 = scmp.ne.s32.totalorder %s4874_s16, %s4529_s13  ;;  %p4538_p4 = scmp.lt.s32.totalorder %s4529_s13, %s4529_s13 }
  0x51   : > { %p4532_p10 = pnand %p4530_p8, %p4886_p2  ;;  %p4539_p1 = por %p4538_p4, %p4537_p0 }
  0x53   : > { %p4533_p12 = pneg %p4532_p10 }
  0x55   : > { %p4540_p7 = pnand %p4539_p1, %p4533_p12 }
  0x57   : > { %4543 = shalt.err (!%p4540_p7)
}
  0x58   : > { %4367 = dma.hbm_to_vmem [thread:$0]  (!%p4870_p13), %s5702_s2, 256, %s4874_s16, [#allocation7]  }
  0x59   : > { %s4544_s10 = scalar_lea.hbm %s5671_s3, 18432 }
  0x5a   : > { %p4545_p9 = scmp.ne.s32.totalorder %s5671_s3, %s4544_s10  ;;  %p4551_p8 = scmp.lt.u32.totalorder %s4544_s10, %s5671_s3 }
  0x5c   : > { %p4547_p5 = pnand %p4545_p9, %p4886_p2 }
  0x5e   : > { %p4548_p6 = pneg %p4547_p5 }
  0x60   : > { %p4553_p10 = pnand %p4551_p8, %p4548_p6 }
  0x62   : > { %4556 = shalt.err (!%p4553_p10)
}
  0x63   : > { %s4557_s7 = scalar_lea.vmem %s215_s21, 18432  ;;  %p4565_p1 = scmp.lt.s32.totalorder %s215_s21, %s215_s21 }
  0x64   : > { %p4558_p12 = scmp.ne.s32.totalorder %s215_s21, %s4557_s7  ;;  %p4566_p7 = scmp.lt.s32.totalorder %s4557_s7, %s4557_s7 }
  0x66   : > { %p4560_p0 = pnand %p4558_p12, %p4886_p2  ;;  %p4567_p3 = por %p4566_p7, %p4565_p1 }
  0x68   : > { %p4561_p4 = pneg %p4560_p0 }
  0x6a   : > { %p4568_p11 = pnand %p4567_p3, %p4561_p4 }
  0x6c   : > { %4571 = shalt.err (!%p4568_p11)
}
  0x6d   : > { %s5685_s16 = smov 8   ;;  %s32_s18 = sadd.s32 1, %s4724_s26 }
  0x6e   : > { %4370 = dma.hbm_to_vmem [thread:$0]  (!%p4870_p13), %s5671_s3, 18432, %s215_s21, [#allocation10], %s5684_s29, %s5684_s29, %s5685_s16  }
  0x6f   : > { %s35_s14 = sadd.s32 1, %s4728_s27  ;;  %p33_p3 = scmp.ge.s32.totalorder %s32_s18, 2 }
  0x70   : > { %s42_s5 = sadd.s32 1, %s4712_s23  ;;  %p49_p11 = scmp.ne.s32.totalorder %s4712_s23, %s4708_s22 }
  0x71   : > { %p50_p2 = scmp.eq.s32.totalorder %s4732_s28, 0  ;;  %s5731_s18 = smov (%p33_p3, %s32_s18), 0 }
  0x72   : > { %s5733_s14 = smov (!%p33_p3, %s35_s14), %s4728_s27  ;;  %s150_s9 = ssub.s32 %s4724_s26, %s5731_s18 }
  0x73   : > { %p4962_p9 = por %p50_p2, %p49_p11  ;;  %p37_p13 = scmp.ge.s32.totalorder %s5733_s14, 2 }
  0x74   : > { %p4382_p5 = scmp.lt.s32.totalorder %s4732_s28, 4  ;;  %s231_s21 = sand.u32 1, %s4712_s23  }
  0x75   : > { %s3456_s10 = sshll.u32 %s4728_s27, 8  ;;  %s5735_s14 = smov (%p37_p13, %s5733_s14), 0 }
  0x76   : > { %s3399_s30 = sshll.u32 %s231_s21, 4  ;;  %s39_s12 = ssub.s32 %s4728_s27, %s5735_s14 }
  0x77   : > { %p40_p6 = scmp.eq.s32.totalorder %s39_s12, 0  ;;  %s151_s15 = sor.u32 %s150_s9, %s39_s12 }
  0x78   : > { %p152_p8 = scmp.eq.s32.totalorder %s151_s15, 0  ;;  %s4978_s13 = scalar_lea.hbm %s5668_s0, %s3456_s10 }
  0x79   : > { %s4981_s4 = scalar_select %p40_p6, %s4712_s23, %s42_s5  }
  0x7a   : > { %s5704_s29 = sadd.s32 1, %s4700_s20  ;;  %s235_s1 = scalar_lea.vmem [#allocation3], %s3399_s30 }
  0x7b   : > { %s4986_s16 = scalar_select %p152_p8, %s4700_s20, %s5704_s29  }
  0x7c   : > { %s242_s2 = sshll.u32 %s235_s1, 4  ;;  %p4992_p10 = pnand %p4382_p5, %p4962_p9  ;;  %s4996_s2 = int_to_ptr.vmem [resolvable:$true] %s242_s2 }
  0x7d   : > { %s4998_s10 = scalar_lea.sflag [#allocation4], %s231_s21  ;;  %s4572_s5 = scalar_lea.hbm %s4978_s13, 256 }
  0x7e   : > { %p4573_p12 = scmp.ne.s32.totalorder %s4978_s13, %s4572_s5  ;;  %p4574_p0 = pneg %p4992_p10 }
  0x7f   : > { %s4577_s25 = scalar_lea.hbm %s5668_s0, 512  ;;  %p4578_p7 = scmp.lt.u32.totalorder %s4978_s13, %s5668_s0 }
  0x80   : > { %p4575_p4 = pnand %p4574_p0, %p4573_p12  ;;  %p4579_p3 = scmp.lt.u32.totalorder %s4577_s25, %s4572_s5 }
  0x81   : > { %p4581_p2 = scmp.lt.u32.totalorder %s4572_s5, %s4978_s13 }
  0x82   : > { %p4576_p1 = pneg %p4575_p4  ;;  %p4580_p11 = por %p4579_p3, %p4578_p7 }
  0x84   : > { %p4582_p9 = por %p4581_p2, %p4580_p11 }
  0x86   : > { %p4583_p13 = pnand %p4582_p9, %p4576_p1 }
  0x88   : > { %4586 = shalt.err (!%p4583_p13)
}
  0x89   : > { %s4587_s21 = scalar_lea.vmem %s4996_s2, 256  ;;  %s4740_s15 = smov [#allocation3]  }
  0x8a   : > { %p4588_p5 = scmp.ne.s32.totalorder %s4996_s2, %s4587_s21  ;;  %s4592_s17 = sshll.u32 %s4740_s15, 4  ;;  %s4593_s17 = int_to_ptr.vmem [resolvable:$false] %s4592_s17 }
  0x8b   : > { %s4594_s7 = scalar_lea.vmem %s4593_s17, 512  ;;  %p4595_p12 = scmp.lt.s32.totalorder %s4996_s2, %s4593_s17 }
  0x8c   : > { %p4590_p6 = pnand %p4588_p5, %p4574_p0  ;;  %p4596_p4 = scmp.lt.s32.totalorder %s4594_s7, %s4587_s21 }
  0x8e   : > { %p4591_p8 = pneg %p4590_p6  ;;  %p4597_p7 = por %p4596_p4, %p4595_p12 }
  0x90   : > { %p4598_p3 = pnand %p4597_p7, %p4591_p8 }
  0x92   : > { %4601 = shalt.err (!%p4598_p3)
}
  0x93   : > { %s5706_s5 = smov 8   ;;  %s5707_s1 = smov 128  }
  0x94   : > { %4374 = dma.hbm_to_vmem [thread:$0]  (!%p4992_p10), %s4978_s13, 256, %s4996_s2, %s4998_s10, %s5707_s1, %s5707_s1, %s5706_s5  }
  0x95   : > { %p5708_p0 = scmp.ne.s32.totalorder %s5698_s11, 0 }
  0x96   : > { %s256_s29 = sand.u32 (!%p5708_p0), 1, %s4708_s22   ;;  %p5709_p1 = scmp.ne.s32.totalorder (!%p5708_p0), %s5693_s8, 0 }
  0x97   : > { %254 = sbr.rel (%p5708_p0) target bundleno = 1461 (0x5b5), region = 40  ;;  %s5032_s25 = sshll.u32 (!%p5708_p0), %s256_s29, 4 }
  0x98   : > { %s257_s30 = scalar_lea.sflag (!%p5708_p0), [#allocation4], %s256_s29  ;;  %s260_s12 = scalar_lea.vmem (!%p5708_p0), [#allocation3], %s5032_s25 }
  0x9e   : > { %4675 = dma.done.wait (%p5709_p1), %s257_s30, 256  }
  0x9f   : > { %4677 = vsyncadd (%p5709_p1), %s257_s30, 4294967040  ;;  %p5710_p11 = scmp.ne.s32.totalorder %s5692_s6, 0 }
  0xa1   : > { %4679 = dma.done.wait (%p5710_p11), [#allocation7], 8448  }
  0xa2   : > { %4681 = vsyncadd (%p5710_p11), [#allocation7], 4294958848 }
  0xa3   : > { %4683 = dma.done.wait (%p5710_p11), [#allocation10], 18432  }
  0xa4   : > { %4685 = vsyncadd (%p5710_p11), [#allocation10], 4294948864  ;;  %s296_s2 = sand.u32 1, %s4696_s19   ;;  %v4741_v0 = vmov 0.0   ;;  %v323_v1 = vld [vmem:[#allocation6 + $0x8] sm:$0xff]  ;;  %v325_v3 = vld [vmem:[#allocation6 + $0x18] sm:$0xff] }
  0xa5   : > { %s5050_s11 = sshll.u32 %s296_s2, 3  ;;  %299 = vst [vmem:[#allocation2] sm:$0x1] %v4741_v0  ;;  %300 = vst [vmem:[#allocation2 + $0x30] sm:$0x1] %v4741_v0  ;;  %538 = vmatprep.mubr.f32.mxu0 %v4741_v0  ;;  %609 = vmatprep.mubr.f32.mxu1 %v4741_v0  ;;  %v339_v2 = vld [vmem:[#allocation6 + $0x88] sm:$0xff] }
  0xa6   : > { %301 = vst [vmem:[#allocation2 + $0x60] sm:$0x1] %v4741_v0  ;;  %302 = vst [vmem:[#allocation2 + $0x90] sm:$0x1] %v4741_v0  ;;  %s3408_s6 = sshll.u32 %s4716_s24, 3  ;;  %v3961_v4 = vpack.c.bf16 %v339_v2, %v323_v1  ;;  %v341_v5 = vld [vmem:[#allocation6 + $0x98] sm:$0xff] }
  0xa7   : > { %303 = vst [vmem:[#allocation2 + $0xc0] sm:$0x1] %v4741_v0  ;;  %304 = vst [vmem:[#allocation2 + $0xf0] sm:$0x1] %v4741_v0  ;;  %v322_v6 = vld [vmem:[#allocation6] sm:$0xff]  ;;  %v3969_v8 = vpack.c.bf16 %v341_v5, %v325_v3  ;;  %v324_v10 = vld [vmem:[#allocation6 + $0x10] sm:$0xff]  ;;  %s5077_s8 = scalar_lea.vmem %s260_s12, %s3408_s6 [#allocation3] }
  0xa8   : > { %305 = vst [vmem:[#allocation2 + $0x120] sm:$0x1] %v4741_v0  ;;  %306 = vst [vmem:[#allocation2 + $0x150] sm:$0x1] %v4741_v0  ;;  %v338_v7 = vld [vmem:[#allocation6 + $0x80] sm:$0xff]  ;;  %v340_v11 = vld [vmem:[#allocation6 + $0x90] sm:$0xff]  ;;  %3962 = vmatprep.subr.bf16.mxu0 %v3961_v4 }
  0xa9   : > { %307 = vst [vmem:[#allocation2 + $0x180] sm:$0x1] %v4741_v0  ;;  %308 = vst [vmem:[#allocation2 + $0x1b0] sm:$0x1] %v4741_v0  ;;  %v3963_v9 = vpack.c.bf16 %v338_v7, %v322_v6  ;;  %v355_v12 = vld [vmem:[#allocation6 + $0x108] sm:$0xff]  ;;  %v3971_v13 = vpack.c.bf16 %v340_v11, %v324_v10  ;;  %v357_v15 = vld [vmem:[#allocation6 + $0x118] sm:$0xff]  ;;  %3970 = vmatprep.subr.bf16.mxu1 %v3969_v8 }
  0xaa   : > { %309 = vst [vmem:[#allocation2 + $0x2f] sm:$0x1] %v4741_v0  ;;  %310 = vst [vmem:[#allocation2 + $0x5f] sm:$0x1] %v4741_v0  ;;  %v371_v14 = vld [vmem:[#allocation6 + $0x188] sm:$0xff]  ;;  %v373_v16 = vld [vmem:[#allocation6 + $0x198] sm:$0xff] }
  0xab   : > { %311 = vst [vmem:[#allocation2 + $0x8f] sm:$0x1] %v4741_v0  ;;  %312 = vst [vmem:[#allocation2 + $0xbf] sm:$0x1] %v4741_v0  ;;  %3964 = vmatpush1.bf16.msra.mxu0 %v3963_v9  ;;  %v3965_v17 = vpack.c.bf16 %v371_v14, %v355_v12  ;;  %v3973_v18 = vpack.c.bf16 %v373_v16, %v357_v15  ;;  %v354_v19 = vld [vmem:[#allocation6 + $0x100] sm:$0xff]  ;;  %v356_v21 = vld [vmem:[#allocation6 + $0x110] sm:$0xff]  ;;  %3972 = vmatpush1.bf16.msra.mxu1 %v3971_v13 }
  0xac   : > { %313 = vst [vmem:[#allocation2 + $0xef] sm:$0x1] %v4741_v0  ;;  %314 = vst [vmem:[#allocation2 + $0x11f] sm:$0x1] %v4741_v0  ;;  %v370_v20 = vld [vmem:[#allocation6 + $0x180] sm:$0xff]  ;;  %v372_v23 = vld [vmem:[#allocation6 + $0x190] sm:$0xff] }
  0xad   : > { %315 = vst [vmem:[#allocation2 + $0x14f] sm:$0x1] %v4741_v0  ;;  %316 = vst [vmem:[#allocation2 + $0x17f] sm:$0x1] %v4741_v0  ;;  %v3967_v22 = vpack.c.bf16 %v370_v20, %v354_v19  ;;  %v327_v24 = vld [vmem:[#allocation6 + $0x28] sm:$0xff]  ;;  %3966 = vmatprep.subr.bf16.mxu0 %v3965_v17  ;;  %3974 = vmatprep.subr.bf16.mxu1 %v3973_v18  ;;  %v3975_v25 = vpack.c.bf16 %v372_v23, %v356_v21  ;;  %v5080_v26 = vld [vmem:[%s5077_s8] sm:$0xff] }
  0xae   : > { %317 = vst [vmem:[#allocation2 + $0x1af] sm:$0x1] %v4741_v0  ;;  %318 = vst [vmem:[#allocation2 + $0x1df] sm:$0x1] %v4741_v0  ;;  %v343_v27 = vld [vmem:[#allocation6 + $0xa8] sm:$0xff]  ;;  %v329_v28 = vld [vmem:[#allocation6 + $0x38] sm:$0xff] }
  0xaf   : > { %v345_v29 = vld [vmem:[#allocation6 + $0xb8] sm:$0xff]  ;;  %v3977_v30 = vpack.c.bf16 %v343_v27, %v327_v24  ;;  %v326_v32 = vld [vmem:[#allocation6 + $0x20] sm:$0xff]  ;;  %v328_v34 = vld [vmem:[#allocation6 + $0x30] sm:$0xff]  ;;  %3968 = vmatpush1.bf16.msra.mxu0 %v3967_v22  ;;  %vm470_vm0 = vcmask 261120   ;;  %3976 = vmatpush1.bf16.msra.mxu1 %v3975_v25  ;;  %vm1135_vm1 = vcmask 1040384   ;;  %vm1143_vm2 = vcmask 1046528  }
  0xb0   : > { %v3985_v31 = vpack.c.bf16 %v345_v29, %v329_v28  ;;  %v342_v33 = vld [vmem:[#allocation6 + $0xa0] sm:$0xff]  ;;  %v344_v36 = vld [vmem:[#allocation6 + $0xb0] sm:$0xff]  ;;  %v359_v37 = vld [vmem:[#allocation6 + $0x128] sm:$0xff]  ;;  %s298_s13 = scalar_lea.vmem [#allocation11], %s5050_s11  ;;  %p3433_p10 = scmp.ne.s32.totalorder %s4716_s24, 0 }
  0xb1   : > { %v3979_v35 = vpack.c.bf16 %v342_v33, %v326_v32  ;;  %v375_v38 = vld [vmem:[#allocation6 + $0x1a8] sm:$0xff]  ;;  %3978 = vmatprep.subr.bf16.mxu0 %v3977_v30  ;;  %v3987_v39 = vpack.c.bf16 %v344_v36, %v328_v34  ;;  %v361_v41 = vld [vmem:[#allocation6 + $0x138] sm:$0xff]  ;;  %v358_v43 = vld [vmem:[#allocation6 + $0x120] sm:$0xff]  ;;  %v390_v36 = vlaneseq }
  0xb2   : > { %v3981_v40 = vpack.c.bf16 %v375_v38, %v359_v37  ;;  %v377_v42 = vld [vmem:[#allocation6 + $0x1b8] sm:$0xff]  ;;  %3986 = vmatprep.subr.bf16.mxu1 %v3985_v31  ;;  %v374_v45 = vld [vmem:[#allocation6 + $0x1a0] sm:$0xff]  ;;  %v360_v46 = vld [vmem:[#allocation6 + $0x130] sm:$0xff]  ;;  %3409 = vmatmul.mubr.msk.f32.vlgmr.msra.gmra.mrb[0].mxu0 %vm470_vm0, %v5080_v26 }
  0xb3   : > { %v3989_v44 = vpack.c.bf16 %v377_v42, %v361_v41  ;;  %v376_v47 = vld [vmem:[#allocation6 + $0x1b0] sm:$0xff]  ;;  %v331_v48 = vld [vmem:[#allocation6 + $0x48] sm:$0xff]  ;;  %v333_v50 = vld [vmem:[#allocation6 + $0x58] sm:$0xff]  ;;  %3410 = vmatmul.mubr.msk.f32.vlgmr.msra.gmra.mrb[0].mxu1 %vm470_vm0, %v5080_v26  ;;  %3980 = vmatpush1.bf16.msra.mxu0 %v3979_v35  ;;  %v3983_v51 = vpack.c.bf16 %v374_v45, %v358_v43  ;;  %v5104_v37 = vshrl.u32 %v390_v36, 7  ;;  %v4742_v42 = vmov 1983009808  }
  0xb4   : > { %v347_v49 = vld [vmem:[#allocation6 + $0xc8] sm:$0xff]  ;;  %v349_v52 = vld [vmem:[#allocation6 + $0xd8] sm:$0xff]  ;;  %3988 = vmatpush1.bf16.msra.mxu1 %v3987_v39  ;;  %3982 = vmatprep.subr.bf16.mxu0 %v3981_v40  ;;  %v3991_v53 = vpack.c.bf16 %v376_v47, %v360_v46  ;;  %v330_v55 = vld [vmem:[#allocation6 + $0x40] sm:$0xff]  ;;  %v1067_v43 = vunpack.c.l.s4 %v4742_v42 }
  0xb5   : > { %v3993_v54 = vpack.c.bf16 %v347_v49, %v331_v48  ;;  %v346_v56 = vld [vmem:[#allocation6 + $0xc0] sm:$0xff]  ;;  %v332_v57 = vld [vmem:[#allocation6 + $0x50] sm:$0xff]  ;;  %3990 = vmatprep.subr.bf16.mxu1 %v3989_v44  ;;  %680 = vmatprep.mubr.f32.mxu0 %v4741_v0  ;;  %v4001_v58 = vpack.c.bf16 %v349_v52, %v333_v50  ;;  %v363_v60 = vld [vmem:[#allocation6 + $0x148] sm:$0xff]  ;;  %v5107_v38 = vsub.s32 0, %v5104_v37  ;;  %v5110_v40 = vsub.s32 2, %v5104_v37 }
  0xb6   : > { %v348_v59 = vld [vmem:[#allocation6 + $0xd0] sm:$0xff]  ;;  %v379_v61 = vld [vmem:[#allocation6 + $0x1c8] sm:$0xff]  ;;  %751 = vmatprep.mubr.f32.mxu1 %v4741_v0  ;;  %v365_v62 = vld [vmem:[#allocation6 + $0x158] sm:$0xff]  ;;  %v3995_v1 = vpack.c.bf16 %v346_v56, %v330_v55  ;;  %v5116_v41 = vsub.s32 3, %v5104_v37  ;;  %v4743_v44 = vmov 1966171168   ;;  %v1068_v50 = vunpack.c.0.s8 %v1067_v43 }
  0xb7   : > { %v381_v63 = vld [vmem:[#allocation6 + $0x1d8] sm:$0xff]  ;;  %3984 = vmatpush1.bf16.msra.mxu0 %v3983_v51  ;;  %v4003_v2 = vpack.c.bf16 %v348_v59, %v332_v57  ;;  %v3997_v3 = vpack.c.bf16 %v379_v61, %v363_v60  ;;  %v362_v4 = vld [vmem:[#allocation6 + $0x140] sm:$0xff]  ;;  %v364_v6 = vld [vmem:[#allocation6 + $0x150] sm:$0xff]  ;;  %v1103_v45 = vunpack.c.l.s4 %v4743_v44  ;;  %v408_v55 = vsub.s32 4, %v5104_v37 }
  0xb8   : > { %3992 = vmatpush1.bf16.msra.mxu1 %v3991_v53  ;;  %3994 = vmatprep.subr.bf16.mxu0 %v3993_v54  ;;  %v378_v5 = vld [vmem:[#allocation6 + $0x1c0] sm:$0xff]  ;;  %v4005_v7 = vpack.c.bf16 %v381_v63, %v365_v62  ;;  %v380_v8 = vld [vmem:[#allocation6 + $0x1d0] sm:$0xff]  ;;  %v335_v9 = vld [vmem:[#allocation6 + $0x68] sm:$0xff]  ;;  %v416_v56 = vsub.s32 6, %v5104_v37  ;;  %v412_v60 = vsub.s32 5, %v5104_v37  ;;  %v420_v61 = vsub.s32 7, %v5104_v37 }
  0xb9   : > { %4002 = vmatprep.subr.bf16.mxu1 %v4001_v58  ;;  %v351_v10 = vld [vmem:[#allocation6 + $0xe8] sm:$0xff]  ;;  %v337_v11 = vld [vmem:[#allocation6 + $0x78] sm:$0xff]  ;;  %v3999_v13 = vpack.c.bf16 %v378_v5, %v362_v4  ;;  %v4007_v14 = vpack.c.bf16 %v380_v8, %v364_v6  ;;  %v334_v16 = vld [vmem:[#allocation6 + $0x60] sm:$0xff]  ;;  %v1104_v52 = vunpack.c.0.s8 %v1103_v45 }
  0xba   : > { %3411 = vmatmul.mubr.msk.f32.vlgmr.msra.gmra.mrb[2].mxu0 %vm470_vm0, %v5080_v26  ;;  %v353_v12 = vld [vmem:[#allocation6 + $0xf8] sm:$0xff]  ;;  %v4009_v15 = vpack.c.bf16 %v351_v10, %v335_v9  ;;  %v350_v17 = vld [vmem:[#allocation6 + $0xe0] sm:$0xff]  ;;  %v336_v18 = vld [vmem:[#allocation6 + $0x70] sm:$0xff] }
  0xbb   : > { %3412 = vmatmul.mubr.msk.f32.vlgmr.msra.gmra.mrb[2].mxu1 %vm470_vm0, %v5080_v26  ;;  %3996 = vmatpush1.bf16.msra.mxu0 %v3995_v1  ;;  %v4017_v19 = vpack.c.bf16 %v353_v12, %v337_v11  ;;  %v352_v20 = vld [vmem:[#allocation6 + $0xf0] sm:$0xff]  ;;  %v367_v21 = vld [vmem:[#allocation6 + $0x168] sm:$0xff]  ;;  %v369_v23 = vld [vmem:[#allocation6 + $0x178] sm:$0xff]  ;;  %v4011_v25 = vpack.c.bf16 %v350_v17, %v334_v16  ;;  %v5127_v1 = vsub.s32 %v1068_v50, %v5104_v37 }
  0xbc   : > { %4004 = vmatpush1.bf16.msra.mxu1 %v4003_v2  ;;  %3998 = vmatprep.subr.bf16.mxu0 %v3997_v3  ;;  %v383_v22 = vld [vmem:[#allocation6 + $0x1e8] sm:$0xff]  ;;  %v385_v24 = vld [vmem:[#allocation6 + $0x1f8] sm:$0xff]  ;;  %v4019_v27 = vpack.c.bf16 %v352_v20, %v336_v18  ;;  %v366_v29 = vld [vmem:[#allocation6 + $0x160] sm:$0xff]  ;;  %v5130_v4 = vsub.s32 %v1104_v52, %v5104_v37 }
  0xbd   : > { %4006 = vmatprep.subr.bf16.mxu1 %v4005_v7  ;;  %822 = vmatprep.mubr.f32.mxu0 %v4741_v0  ;;  %v4013_v28 = vpack.c.bf16 %v383_v22, %v367_v21  ;;  %v382_v30 = vld [vmem:[#allocation6 + $0x1e0] sm:$0xff]  ;;  %v4021_v31 = vpack.c.bf16 %v385_v24, %v369_v23  ;;  %v368_v32 = vld [vmem:[#allocation6 + $0x170] sm:$0xff]  ;;  %v5132_v8 = vld [vmem:[#allocation8 + $0x8] sm:$0xff] }
  0xbe   : > { %893 = vmatprep.mubr.f32.mxu1 %v4741_v0  ;;  %v384_v33 = vld [vmem:[#allocation6 + $0x1f0] sm:$0xff]  ;;  %v4015_v34 = vpack.c.bf16 %v382_v30, %v366_v29  ;;  %v386_v39 = vld [vmem:[#allocation8] sm:$0xff]  ;;  %v425_v18 = vrot.slane %v5132_v8, %v5107_v38  ;;  %v437_v30 = vrot.slane %v5132_v8, %v5116_v41  ;;  %v5154_v43 = vrot.slane %v5132_v8, %v416_v56 }
  0xbf   : > { %4000 = vmatpush1.bf16.msra.mxu0 %v3999_v13  ;;  %v4023_v35 = vpack.c.bf16 %v384_v33, %v368_v32  ;;  %v401_v46 = vrot.slane %v386_v39, %v5110_v40  ;;  %v405_v48 = vrot.slane %v386_v39, %v5116_v41  ;;  %v409_v6 = vrot.slane %v386_v39, %v408_v55 }
  0xc0   : > { %4008 = vmatpush1.bf16.msra.mxu1 %v4007_v14  ;;  %4010 = vmatprep.subr.bf16.mxu0 %v4009_v15  ;;  %v417_v7 = vrot.slane %v386_v39, %v416_v56  ;;  %v413_v11 = vrot.slane %v386_v39, %v412_v60  ;;  %v421_v12 = vrot.slane %v386_v39, %v420_v61 }
  0xc1   : > { %4018 = vmatprep.subr.bf16.mxu1 %v4017_v19  ;;  %v433_v19 = vrot.slane %v5132_v8, %v5110_v40 }
  0xc2   : > { %3413 = vmatmul.mubr.msk.f32.vlgmr.msra.gmra.mrb[4].mxu0 %vm470_vm0, %v5080_v26 }
  0xc3   : > { %3414 = vmatmul.mubr.msk.f32.vlgmr.msra.gmra.mrb[4].mxu1 %vm470_vm0, %v5080_v26  ;;  %4012 = vmatpush1.bf16.msra.mxu0 %v4011_v25 }
  0xc4   : > { %4020 = vmatpush1.bf16.msra.mxu1 %v4019_v27  ;;  %4014 = vmatprep.subr.bf16.mxu0 %v4013_v28 }
  0xc5   : > { %4022 = vmatprep.subr.bf16.mxu1 %v4021_v31  ;;  %964 = vmatprep.mubr.f32.mxu0 %v4741_v0  ;;  %v5151_v31 = vrot.slane %v5132_v8, %v408_v55 }
  0xc6   : > { %1035 = vmatprep.mubr.f32.mxu1 %v4741_v0  ;;  %v5113_v0 = vsub.s32 1, %v5104_v37 }
  0xc7   : > { %4016 = vmatpush1.bf16.msra.mxu0 %v4015_v34 }
  0xc8   : > { %4024 = vmatpush1.bf16.msra.mxu1 %v4023_v35  ;;  %v397_v47 = vrot.slane %v386_v39, %v5113_v0  ;;  %v429_v25 = vrot.slane %v5132_v8, %v5113_v0 }
  0xca   : > { %3415 = vmatmul.mubr.msk.f32.vlgmr.msra.gmra.mrb[6].mxu0 %vm470_vm0, %v5080_v26 }
  0xcb   : > { %3416 = vmatmul.mubr.msk.f32.vlgmr.msra.gmra.mrb[6].mxu1 %vm470_vm0, %v5080_v26  ;;  %v393_v26 = vrot.slane %v386_v39, %v5107_v38 }
 0x185   : > { %v540_v49 = vpop.f32.mrb[0].mxu0 }
 0x186   : > { %v541_v51 = vadd.f32 %v540_v49, %v393_v26  ;;  %v611_v53 = vpop.f32.mrb[0].mxu1  ;;  %v542_v54 = vpop.f32.mrb[1].mxu0 }
 0x187   : > { %v612_v57 = vadd.f32 %v611_v53, %v401_v46  ;;  %v543_v58 = vadd.f32 %v542_v54, %v397_v47  ;;  %v613_v59 = vpop.f32.mrb[1].mxu1 }
 0x188   : > { %v1042_v62 = vmax.f32 %v541_v51, 0.0  ;;  %v614_v63 = vadd.f32 %v613_v59, %v405_v48 }
 0x189   : > { %v1044_v2 = vmax.f32 %v612_v57, 0.0  ;;  %v1043_v3 = vmax.f32 %v543_v58, 0.0 }
 0x18a   : > { %v1045_v5 = vmax.f32 %v614_v63, 0.0 }
 0x18b   : > { %v1062_v9 = vcombine.low %v1042_v62, %v1043_v3  ;;  %v1063_v10 = vcombine.high %v1042_v62, %v1043_v3 }
 0x18c   : > { %v1064_v13 = vcombine.low %v1044_v2, %v1045_v5  ;;  %v1065_v14 = vcombine.high %v1044_v2, %v1045_v5 }
 0x18d   : > { %v1072_v15 = vrot.slane %v1062_v9, %v5127_v1  ;;  %v1079_v16 = vrot.slane %v1063_v10, %v5127_v1  ;;  %v682_v17 = vpop.f32.mrb[2].mxu0 }
 0x18e   : > { %v1086_v20 = vrot.slane %v1064_v13, %v5127_v1  ;;  %v1093_v21 = vrot.slane %v1065_v14, %v5127_v1  ;;  %v683_v22 = vadd.f32 %v682_v17, %v409_v6  ;;  %v753_v23 = vpop.f32.mrb[2].mxu1  ;;  %v684_v24 = vpop.f32.mrb[3].mxu0 }
 0x18f   : > { %v754_v27 = vadd.f32 %v753_v23, %v417_v7  ;;  %v685_v28 = vadd.f32 %v684_v24, %v413_v11  ;;  %v755_v29 = vpop.f32.mrb[3].mxu1 }
 0x190   : > { %v1094_v32 = vcombine.low %v1072_v15, %v1086_v20  ;;  %v1095_v33 = vcombine.high %v1072_v15, %v1086_v20  ;;  %v1096_v34 = vcombine.low %v1079_v16, %v1093_v21  ;;  %v1097_v35 = vcombine.high %v1079_v16, %v1093_v21 }
 0x191   : > { %v1046_v36 = vmax.f32 %v683_v22, 0.0  ;;  %v1047_v39 = vmax.f32 %v685_v28, 0.0  ;;  %v756_v42 = vadd.f32 %v755_v29, %v421_v12  ;;  %v1048_v47 = vmax.f32 %v754_v27, 0.0 }
 0x192   : > { %v1108_v26 = vrot.slane %v1094_v32, %v5130_v4  ;;  %v1115_v44 = vrot.slane %v1095_v33, %v5130_v4  ;;  %v1122_v45 = vrot.slane %v1096_v34, %v5130_v4  ;;  %v1129_v46 = vrot.slane %v1097_v35, %v5130_v4  ;;  %3417 = vst.sshfl [vmem:[#allocation2 + $0x38] sm:$0xff pattern:$0x73625140] %v1094_v32 }
 0x193   : > { %3418 = vst.sshfl [vmem:[#allocation2 + $0x50] sm:$0xff pattern:$0x73625140] %v1095_v33  ;;  %3419 = vst.sshfl [vmem:[#allocation2 + $0xf8] sm:$0xff pattern:$0x73625140] %v1096_v34  ;;  %v1174_v48 = vcombine.low %v1046_v36, %v1047_v39  ;;  %v1175_v49 = vcombine.high %v1046_v36, %v1047_v39  ;;  %v5171_v21 = vrot.slane %v5132_v8, %v412_v60 }
 0x194   : > { %3420 = vst.sshfl [vmem:[#allocation2 + $0x110] sm:$0xff pattern:$0x73625140] %v1097_v35  ;;  %v1049_v50 = vmax.f32 %v756_v42, 0.0  ;;  %v1136_v51 = vrot.slane %v1108_v26, 7  ;;  %v1137_v52 = vrot.slane %v1115_v44, 7  ;;  %v5176_v22 = vrot.slane %v5132_v8, %v420_v61 }
 0x195   : > { %v1144_v53 = vrot.slane %v1108_v26, 1  ;;  %v1145_v54 = vrot.slane %v1115_v44, 1  ;;  %v1156_v55 = vrot.slane %v1122_v45, 7  ;;  %v1157_v56 = vrot.slane %v1129_v46, 7  ;;  %v824_v59 = vpop.f32.mrb[4].mxu0 }
 0x196   : > { %v1163_v57 = vrot.slane %v1122_v45, 1  ;;  %v1164_v58 = vrot.slane %v1129_v46, 1  ;;  %v1138_v62 = vsel %vm1135_vm1, %v1136_v51, %v1137_v52  ;;  %1141 = vst [vmem:[#allocation2 + $0x30] sm:$0xfe] %v1136_v51  ;;  %v1184_v2 = vrot.slane %v1174_v48, %v5127_v1  ;;  %v895_v5 = vpop.f32.mrb[4].mxu1  ;;  %v826_v6 = vpop.f32.mrb[5].mxu0 }
 0x197   : > { %v1146_v63 = vsel %vm1143_vm2, %v1144_v53, %v1145_v54  ;;  %1150 = vst [vmem:[#allocation2 + $0x58] sm:$0x7f] %v1145_v54  ;;  %v1191_v3 = vrot.slane %v1175_v49, %v5127_v1  ;;  %1142 = vst [vmem:[#allocation2 + $0x48] sm:$0xff] %v1138_v62  ;;  %v1158_v7 = vsel %vm1135_vm1, %v1156_v55, %v1157_v56  ;;  %v897_v12 = vpop.f32.mrb[5].mxu1 }
 0x198   : > { %1149 = vst [vmem:[#allocation2 + $0x40] sm:$0xff] %v1146_v63  ;;  %1161 = vst [vmem:[#allocation2 + $0xf0] sm:$0xfe] %v1156_v55  ;;  %v1165_v9 = vsel %vm1143_vm2, %v1163_v57, %v1164_v58  ;;  %v1176_v10 = vcombine.low %v1048_v47, %v1049_v50  ;;  %v1177_v11 = vcombine.high %v1048_v47, %v1049_v50 }
 0x199   : > { %1169 = vst [vmem:[#allocation2 + $0x118] sm:$0x7f] %v1164_v58  ;;  %1162 = vst [vmem:[#allocation2 + $0x108] sm:$0xff] %v1158_v7  ;;  %v825_v13 = vadd.f32 %v824_v59, %v425_v18  ;;  %v896_v14 = vadd.f32 %v895_v5, %v433_v19  ;;  %v827_v15 = vadd.f32 %v826_v6, %v429_v25 }
 0x19a   : > { %1168 = vst [vmem:[#allocation2 + $0x100] sm:$0xff] %v1165_v9  ;;  %v898_v16 = vadd.f32 %v897_v12, %v437_v30  ;;  %v1198_v17 = vrot.slane %v1176_v10, %v5127_v1  ;;  %v1205_v20 = vrot.slane %v1177_v11, %v5127_v1 }
 0x19b   : > { %v1050_v23 = vmax.f32 %v825_v13, 0.0  ;;  %v1052_v24 = vmax.f32 %v896_v14, 0.0  ;;  %v1051_v18 = vmax.f32 %v827_v15, 0.0 }
 0x19c   : > { %v1053_v19 = vmax.f32 %v898_v16, 0.0  ;;  %v1206_v25 = vcombine.low %v1184_v2, %v1198_v17  ;;  %v1207_v27 = vcombine.high %v1184_v2, %v1198_v17  ;;  %v1208_v28 = vcombine.low %v1191_v3, %v1205_v20 }
 0x19d   : > { %v1209_v29 = vcombine.high %v1191_v3, %v1205_v20  ;;  %v1284_v30 = vcombine.low %v1050_v23, %v1051_v18  ;;  %v1285_v32 = vcombine.high %v1050_v23, %v1051_v18  ;;  %v966_v8 = vpop.f32.mrb[6].mxu0 }
 0x19e   : > { %v1286_v33 = vcombine.low %v1052_v24, %v1053_v19  ;;  %v1287_v34 = vcombine.high %v1052_v24, %v1053_v19  ;;  %v1220_v60 = vrot.slane %v1206_v25, %v5130_v4  ;;  %v1227_v35 = vrot.slane %v1207_v27, %v5130_v4  ;;  %3421 = vst.sshfl [vmem:[#allocation2 + $0x68] sm:$0xff pattern:$0x73625140] %v1206_v25  ;;  %v1037_v44 = vpop.f32.mrb[6].mxu1  ;;  %v968_v45 = vpop.f32.mrb[7].mxu0 }
 0x19f   : > { %v1234_v37 = vrot.slane %v1208_v28, %v5130_v4  ;;  %v1241_v61 = vrot.slane %v1209_v29, %v5130_v4  ;;  %3422 = vst.sshfl [vmem:[#allocation2 + $0x80] sm:$0xff pattern:$0x73625140] %v1207_v27  ;;  %3423 = vst.sshfl [vmem:[#allocation2 + $0x128] sm:$0xff pattern:$0x73625140] %v1208_v28  ;;  %v1294_v36 = vrot.slane %v1284_v30, %v5127_v1 }
 0x1a0   : > { %3424 = vst.sshfl [vmem:[#allocation2 + $0x140] sm:$0xff pattern:$0x73625140] %v1209_v29  ;;  %v1301_v39 = vrot.slane %v1285_v32, %v5127_v1  ;;  %v1308_v42 = vrot.slane %v1286_v33, %v5127_v1  ;;  %v1315_v26 = vrot.slane %v1287_v34, %v5127_v1  ;;  %v1247_v46 = vrot.slane %v1220_v60, 7  ;;  %v1039_v50 = vpop.f32.mrb[7].mxu1 }
 0x1a1   : > { %v1248_v47 = vrot.slane %v1227_v35, 7  ;;  %v1254_v48 = vrot.slane %v1220_v60, 1  ;;  %v1255_v49 = vrot.slane %v1227_v35, 1  ;;  %v1266_v51 = vrot.slane %v1234_v37, 7 }
 0x1a2   : > { %v1267_v52 = vrot.slane %v1241_v61, 7  ;;  %v1273_v53 = vrot.slane %v1234_v37, 1  ;;  %v1274_v54 = vrot.slane %v1241_v61, 1  ;;  %1252 = vst [vmem:[#allocation2 + $0x60] sm:$0xfe] %v1247_v46  ;;  %v1316_v57 = vcombine.low %v1294_v36, %v1308_v42 }
 0x1a3   : > { %v1249_v55 = vsel %vm1135_vm1, %v1247_v46, %v1248_v47  ;;  %v1256_v56 = vsel %vm1143_vm2, %v1254_v48, %v1255_v49  ;;  %1260 = vst [vmem:[#allocation2 + $0x88] sm:$0x7f] %v1255_v49  ;;  %v1317_v58 = vcombine.high %v1294_v36, %v1308_v42  ;;  %1271 = vst [vmem:[#allocation2 + $0x120] sm:$0xfe] %v1266_v51 }
 0x1a4   : > { %1253 = vst [vmem:[#allocation2 + $0x78] sm:$0xff] %v1249_v55  ;;  %1259 = vst [vmem:[#allocation2 + $0x70] sm:$0xff] %v1256_v56  ;;  %v1268_v59 = vsel %vm1135_vm1, %v1266_v51, %v1267_v52  ;;  %v1275_v62 = vsel %vm1143_vm2, %v1273_v53, %v1274_v54  ;;  %v1318_v63 = vcombine.low %v1301_v39, %v1315_v26 }
 0x1a5   : > { %1279 = vst [vmem:[#allocation2 + $0x148] sm:$0x7f] %v1274_v54  ;;  %v1319_v2 = vcombine.high %v1301_v39, %v1315_v26  ;;  %1272 = vst [vmem:[#allocation2 + $0x138] sm:$0xff] %v1268_v59  ;;  %v1330_v3 = vrot.slane %v1316_v57, %v5130_v4  ;;  %v1337_v5 = vrot.slane %v1317_v58, %v5130_v4 }
 0x1a6   : > { %1278 = vst [vmem:[#allocation2 + $0x130] sm:$0xff] %v1275_v62  ;;  %3425 = vst.sshfl [vmem:[#allocation2 + $0x98] sm:$0xff pattern:$0x73625140] %v1316_v57  ;;  %v967_v6 = vadd.f32 %v966_v8, %v5151_v31  ;;  %v1038_v7 = vadd.f32 %v1037_v44, %v5154_v43  ;;  %v1344_v9 = vrot.slane %v1318_v63, %v5130_v4  ;;  %v4744_v57 = vmov (!%p3433_p10), 0.0  }
 0x1a7   : > { %3426 = vst.sshfl [vmem:[#allocation2 + $0xb0] sm:$0xff pattern:$0x73625140] %v1317_v58  ;;  %v1351_v10 = vrot.slane %v1319_v2, %v5130_v4  ;;  %3427 = vst.sshfl [vmem:[#allocation2 + $0x158] sm:$0xff pattern:$0x73625140] %v1318_v63  ;;  %v969_v11 = vadd.f32 %v968_v45, %v5171_v21  ;;  %v1040_v12 = vadd.f32 %v1039_v50, %v5176_v22 }
 0x1a8   : > { %3428 = vst.sshfl [vmem:[#allocation2 + $0x170] sm:$0xff pattern:$0x73625140] %v1319_v2  ;;  %v1357_v13 = vrot.slane %v1330_v3, 7  ;;  %v1358_v14 = vrot.slane %v1337_v5, 7  ;;  %v1364_v15 = vrot.slane %v1330_v3, 1 }
 0x1a9   : > { %v1365_v16 = vrot.slane %v1337_v5, 1  ;;  %v1376_v17 = vrot.slane %v1344_v9, 7  ;;  %v1377_v20 = vrot.slane %v1351_v10, 7  ;;  %v1383_v23 = vrot.slane %v1344_v9, 1  ;;  %1504 = vst [vmem:[#allocation2] sm:$0xff] (!%p3433_p10), %v4744_v57  ;;  %1505 = vst [vmem:[#allocation2 + $0x8] sm:$0xff] (!%p3433_p10), %v4744_v57 }
 0x1aa   : > { %v1384_v31 = vrot.slane %v1351_v10, 1  ;;  %v1359_v43 = vsel %vm1135_vm1, %v1357_v13, %v1358_v14  ;;  %1362 = vst [vmem:[#allocation2 + $0x90] sm:$0xfe] %v1357_v13  ;;  %v1054_v18 = vmax.f32 %v967_v6, 0.0  ;;  %v1056_v19 = vmax.f32 %v1038_v7, 0.0  ;;  %1506 = vst [vmem:[#allocation2 + $0x10] sm:$0xff] (!%p3433_p10), %v4744_v57 }
 0x1ab   : > { %v1366_v24 = vsel %vm1143_vm2, %v1364_v15, %v1365_v16  ;;  %1370 = vst [vmem:[#allocation2 + $0xb8] sm:$0x7f] %v1365_v16  ;;  %1363 = vst [vmem:[#allocation2 + $0xa8] sm:$0xff] %v1359_v43  ;;  %v1378_v21 = vsel %vm1135_vm1, %v1376_v17, %v1377_v20  ;;  %v1055_v25 = vmax.f32 %v969_v11, 0.0  ;;  %v1057_v27 = vmax.f32 %v1040_v12, 0.0 }
 0x1ac   : > { %1369 = vst [vmem:[#allocation2 + $0xa0] sm:$0xff] %v1366_v24  ;;  %1381 = vst [vmem:[#allocation2 + $0x150] sm:$0xfe] %v1376_v17  ;;  %v1385_v22 = vsel %vm1143_vm2, %v1383_v23, %v1384_v31 }
 0x1ad   : > { %1389 = vst [vmem:[#allocation2 + $0x178] sm:$0x7f] %v1384_v31  ;;  %1382 = vst [vmem:[#allocation2 + $0x168] sm:$0xff] %v1378_v21  ;;  %v1394_v28 = vcombine.low %v1054_v18, %v1055_v25  ;;  %v1395_v29 = vcombine.high %v1054_v18, %v1055_v25  ;;  %v1396_v30 = vcombine.low %v1056_v19, %v1057_v27 }
 0x1ae   : > { %1388 = vst [vmem:[#allocation2 + $0x160] sm:$0xff] %v1385_v22  ;;  %v1397_v32 = vcombine.high %v1056_v19, %v1057_v27  ;;  %1507 = vst [vmem:[#allocation2 + $0x18] sm:$0xff] (!%p3433_p10), %v4744_v57 }
 0x1af   : > { %v1404_v33 = vrot.slane %v1394_v28, %v5127_v1  ;;  %v1411_v34 = vrot.slane %v1395_v29, %v5127_v1  ;;  %v1418_v60 = vrot.slane %v1396_v30, %v5127_v1  ;;  %1508 = vst [vmem:[#allocation2 + $0x20] sm:$0xff] (!%p3433_p10), %v4744_v57  ;;  %1509 = vst [vmem:[#allocation2 + $0x28] sm:$0xff] (!%p3433_p10), %v4744_v57 }
 0x1b0   : > { %v1425_v35 = vrot.slane %v1397_v32, %v5127_v1 }
 0x1b1   : > { %v1426_v37 = vcombine.low %v1404_v33, %v1418_v60  ;;  %v1427_v61 = vcombine.high %v1404_v33, %v1418_v60 }
 0x1b2   : > { %v1428_v8 = vcombine.low %v1411_v34, %v1425_v35  ;;  %v1429_v36 = vcombine.high %v1411_v34, %v1425_v35 }
 0x1b3   : > { %v1440_v39 = vrot.slane %v1426_v37, %v5130_v4  ;;  %v1447_v42 = vrot.slane %v1427_v61, %v5130_v4  ;;  %3429 = vst.sshfl [vmem:[#allocation2 + $0xc8] sm:$0xff pattern:$0x73625140] %v1426_v37  ;;  %3430 = vst.sshfl [vmem:[#allocation2 + $0xe0] sm:$0xff pattern:$0x73625140] %v1427_v61 }
 0x1b4   : > { %v1454_v26 = vrot.slane %v1428_v8, %v5130_v4  ;;  %v1461_v44 = vrot.slane %v1429_v36, %v5130_v4  ;;  %3431 = vst.sshfl [vmem:[#allocation2 + $0x188] sm:$0xff pattern:$0x73625140] %v1428_v8  ;;  %3432 = vst.sshfl [vmem:[#allocation2 + $0x1a0] sm:$0xff pattern:$0x73625140] %v1429_v36 }
 0x1b5   : > { %v1467_v45 = vrot.slane %v1440_v39, 7  ;;  %v1468_v46 = vrot.slane %v1447_v42, 7  ;;  %v1474_v47 = vrot.slane %v1440_v39, 1  ;;  %v1475_v48 = vrot.slane %v1447_v42, 1  ;;  %1503 = sbr.rel (%p3433_p10) target bundleno = 444 (0x1bc), region = 60 }
 0x1b6   : > { %v1486_v49 = vrot.slane %v1454_v26, 7  ;;  %v1487_v50 = vrot.slane %v1461_v44, 7  ;;  %v1493_v51 = vrot.slane %v1454_v26, 1  ;;  %v1494_v52 = vrot.slane %v1461_v44, 1 }
 0x1b7   : > { %v1469_v53 = vsel %vm1135_vm1, %v1467_v45, %v1468_v46  ;;  %1472 = vst [vmem:[#allocation2 + $0xc0] sm:$0xfe] %v1467_v45  ;;  %v1476_v54 = vsel %vm1143_vm2, %v1474_v47, %v1475_v48  ;;  %1480 = vst [vmem:[#allocation2 + $0xe8] sm:$0x7f] %v1475_v48 }
 0x1b8   : > { %1473 = vst [vmem:[#allocation2 + $0xd8] sm:$0xff] %v1469_v53  ;;  %1479 = vst [vmem:[#allocation2 + $0xd0] sm:$0xff] %v1476_v54  ;;  %v1488_v55 = vsel %vm1135_vm1, %v1486_v49, %v1487_v50  ;;  %v1495_v56 = vsel %vm1143_vm2, %v1493_v51, %v1494_v52 }
 0x1b9   : > { %1491 = vst [vmem:[#allocation2 + $0x180] sm:$0xfe] %v1486_v49  ;;  %1499 = vst [vmem:[#allocation2 + $0x1a8] sm:$0x7f] %v1494_v52 }
 0x1ba   : > { %1492 = vst [vmem:[#allocation2 + $0x198] sm:$0xff] %v1488_v55  ;;  %1498 = vst [vmem:[#allocation2 + $0x190] sm:$0xff] %v1495_v56 }
 0x1bc PF: > { %p3434_p2 = scmp.le.s32.totalorder %s4716_s24, 0 }
 0x1bd   : > { %v1520_v58 = vld [vmem:[#allocation6 + $0x68] sm:$0xff] (!%p3434_p2)  ;;  %v1522_v62 = vld [vmem:[#allocation6 + $0x78] sm:$0xff] (!%p3434_p2)  ;;  %s3435_s9 = sshll.u32 (!%p3434_p2), %s4716_s24, 1  ;;  %v1519_v3 = vld [vmem:[#allocation6 + $0x60] sm:$0xff] (!%p3434_p2)  ;;  %v4745_v6 = vmov (!%p3434_p2), 0.0  }
 0x1be   : > { %1513 = sbr.rel (%p3434_p2) target bundleno = 687 (0x2af), region = 64  ;;  %v1524_v59 = vld [vmem:[#allocation6 + $0xe8] sm:$0xff] (!%p3434_p2)  ;;  %v1526_v2 = vld [vmem:[#allocation6 + $0xf8] sm:$0xff] (!%p3434_p2)  ;;  %v1523_v5 = vld [vmem:[#allocation6 + $0xe0] sm:$0xff] (!%p3434_p2)  ;;  %1624 = vmatprep.mubr.f32.mxu0 (!%p3434_p2), %v4745_v6  ;;  %1695 = vmatprep.mubr.f32.mxu1 (!%p3434_p2), %v4745_v6  ;;  %s3436_s10 = sadd.s32 (!%p3434_p2), 4294967295, %s3435_s9 }
 0x1bf   : > { %v4025_v63 = vpack.c.bf16 (!%p3434_p2), %v1524_v59, %v1520_v58  ;;  %v4033_v7 = vpack.c.bf16 (!%p3434_p2), %v1526_v2, %v1522_v62  ;;  %v4027_v9 = vpack.c.bf16 (!%p3434_p2), %v1523_v5, %v1519_v3  ;;  %v1521_v10 = vld [vmem:[#allocation6 + $0x70] sm:$0xff] (!%p3434_p2)  ;;  %v1528_v12 = vld [vmem:[#allocation6 + $0x168] sm:$0xff] (!%p3434_p2)  ;;  %s3437_s21 = sshll.u32 (!%p3434_p2), %s3436_s10, 2  ;;  %v1530_v15 = vld [vmem:[#allocation6 + $0x178] sm:$0xff] (!%p3434_p2) }
 0x1c0   : > { %v1525_v11 = vld [vmem:[#allocation6 + $0xf0] sm:$0xff] (!%p3434_p2)  ;;  %v1532_v14 = vld [vmem:[#allocation6 + $0x1e8] sm:$0xff] (!%p3434_p2)  ;;  %v1534_v16 = vld [vmem:[#allocation6 + $0x1f8] sm:$0xff] (!%p3434_p2)  ;;  %s1517_s15 = scalar_lea.vmem (!%p3434_p2), %s260_s12, %s3437_s21 [#allocation3] }
 0x1c1   : > { %4026 = vmatprep.subr.bf16.mxu0 (!%p3434_p2), %v4025_v63  ;;  %v4035_v13 = vpack.c.bf16 (!%p3434_p2), %v1525_v11, %v1521_v10  ;;  %4034 = vmatprep.subr.bf16.mxu1 (!%p3434_p2), %v4033_v7  ;;  %v4029_v17 = vpack.c.bf16 (!%p3434_p2), %v1532_v14, %v1528_v12  ;;  %v4037_v20 = vpack.c.bf16 (!%p3434_p2), %v1534_v16, %v1530_v15  ;;  %v1527_v23 = vld [vmem:[#allocation6 + $0x160] sm:$0xff] (!%p3434_p2)  ;;  %v1529_v43 = vld [vmem:[#allocation6 + $0x170] sm:$0xff] (!%p3434_p2)  ;;  %v1535_v22 = vld [vmem:[#allocation8 + $0xc] sm:$0xf] (!%p3434_p2) }
 0x1c2   : > { %4028 = vmatpush1.bf16.msra.mxu0 (!%p3434_p2), %v4027_v9  ;;  %v1531_v31 = vld [vmem:[#allocation6 + $0x1e0] sm:$0xff] (!%p3434_p2)  ;;  %v1533_v18 = vld [vmem:[#allocation6 + $0x1f0] sm:$0xff] (!%p3434_p2)  ;;  %v1540_v25 = vrot.slane (!%p3434_p2), %v1535_v22, %v5107_v38  ;;  %v1548_v27 = vrot.slane (!%p3434_p2), %v1535_v22, %v5110_v40  ;;  %v1544_v28 = vrot.slane (!%p3434_p2), %v1535_v22, %v5113_v0  ;;  %v1552_v29 = vrot.slane (!%p3434_p2), %v1535_v22, %v5116_v41 }
 0x1c3   : > { %4036 = vmatpush1.bf16.msra.mxu1 (!%p3434_p2), %v4035_v13  ;;  %v4031_v24 = vpack.c.bf16 (!%p3434_p2), %v1531_v31, %v1527_v23  ;;  %4030 = vmatprep.subr.bf16.mxu0 (!%p3434_p2), %v4029_v17  ;;  %v4039_v19 = vpack.c.bf16 (!%p3434_p2), %v1533_v18, %v1529_v43  ;;  %v1518_v21 = vld [vmem:[%s1517_s15] sm:$0xf] (!%p3434_p2) }
 0x1c4   : > { %4038 = vmatprep.subr.bf16.mxu1 (!%p3434_p2), %v4037_v20 }
 0x1c6   : > { %4032 = vmatpush1.bf16.msra.mxu0 %v4031_v24 }
 0x1c7   : > { %4040 = vmatpush1.bf16.msra.mxu1 %v4039_v19 }
 0x1c9   : > { %3438 = vmatmul.mubr.msk.f32.vlgmr.msra.gmra.mrb[0].mxu0 %vm470_vm0, %v1518_v21 }
 0x1ca   : > { %3439 = vmatmul.mubr.msk.f32.vlgmr.msra.gmra.mrb[0].mxu1 %vm470_vm0, %v1518_v21 }
 0x29c   : > { %v1626_v30 = vpop.f32.mrb[0].mxu0 }
 0x29d   : > { %v1627_v32 = vadd.f32 %v1626_v30, %v1540_v25  ;;  %v1697_v33 = vpop.f32.mrb[0].mxu1  ;;  %v1628_v34 = vpop.f32.mrb[1].mxu0 }
 0x29e   : > { %v1698_v60 = vadd.f32 %v1697_v33, %v1548_v27  ;;  %v1629_v35 = vadd.f32 %v1628_v34, %v1544_v28  ;;  %v1699_v37 = vpop.f32.mrb[1].mxu1 }
 0x29f   : > { %v1702_v61 = vmax.f32 %v1627_v32, 0.0  ;;  %v1700_v8 = vadd.f32 %v1699_v37, %v1552_v29 }
 0x2a0   : > { %v1704_v36 = vmax.f32 %v1698_v60, 0.0  ;;  %v1703_v39 = vmax.f32 %v1629_v35, 0.0 }
 0x2a1   : > { %v1705_v42 = vmax.f32 %v1700_v8, 0.0 }
 0x2a2   : > { %v1710_v26 = vcombine.low %v1702_v61, %v1703_v39 }
 0x2a3   : > { %v1711_v44 = vcombine.low %v1704_v36, %v1705_v42 }
 0x2a4   : > { %v1718_v45 = vrot.slane %v1710_v26, %v5127_v1 }
 0x2a5   : > { %v1725_v46 = vrot.slane %v1711_v44, %v5127_v1 }
 0x2a7   : > { %v1726_v47 = vcombine.low %v1718_v45, %v1725_v46  ;;  %v1727_v48 = vcombine.high %v1718_v45, %v1725_v46 }
 0x2a9   : > { %v1736_v49 = vrot.slane %v1726_v47, %v5130_v4  ;;  %v1743_v50 = vrot.slane %v1727_v48, %v5130_v4  ;;  %3440 = vst.sshfl [vmem:[#allocation2 + $0x8] sm:$0xff pattern:$0x73625140] %v1726_v47  ;;  %3441 = vst.sshfl [vmem:[#allocation2 + $0x20] sm:$0xff pattern:$0x73625140] %v1727_v48 }
 0x2ab   : > { %v1748_v51 = vrot.slane %v1736_v49, 7  ;;  %v1749_v52 = vrot.slane %v1743_v50, 7  ;;  %v1755_v53 = vrot.slane %v1736_v49, 1  ;;  %v1756_v54 = vrot.slane %v1743_v50, 1 }
 0x2ad   : > { %v1750_v55 = vsel %vm1135_vm1, %v1748_v51, %v1749_v52  ;;  %1753 = vst [vmem:[#allocation2] sm:$0xfe] %v1748_v51  ;;  %v1757_v56 = vsel %vm1143_vm2, %v1755_v53, %v1756_v54  ;;  %1761 = vst [vmem:[#allocation2 + $0x28] sm:$0x7f] %v1756_v54 }
 0x2ae   : > { %1754 = vst [vmem:[#allocation2 + $0x18] sm:$0xff] %v1750_v55  ;;  %1760 = vst [vmem:[#allocation2 + $0x10] sm:$0xff] %v1757_v56 }
 0x2af PF: > { %p3442_p9 = scmp.ne.s32.totalorder %s4716_s24, 1 }
 0x2b0   : > { %v4746_v57 = vmov (!%p3442_p9), 0.0  }
 0x2b1   : > { %1765 = sbr.rel (%p3442_p9) target bundleno = 696 (0x2b8), region = 68  ;;  %1767 = vst [vmem:[#allocation2 + $0x1b0] sm:$0xff] (!%p3442_p9), %v4746_v57  ;;  %1768 = vst [vmem:[#allocation2 + $0x1b8] sm:$0xff] (!%p3442_p9), %v4746_v57 }
 0x2b2   : > { %1769 = vst [vmem:[#allocation2 + $0x1c0] sm:$0xff] (!%p3442_p9), %v4746_v57  ;;  %1770 = vst [vmem:[#allocation2 + $0x1c8] sm:$0xff] (!%p3442_p9), %v4746_v57 }
 0x2b3   : > { %1771 = vst [vmem:[#allocation2 + $0x1d0] sm:$0xff] (!%p3442_p9), %v4746_v57  ;;  %1772 = vst [vmem:[#allocation2 + $0x1d8] sm:$0xff] (!%p3442_p9), %v4746_v57 }
 0x2b8 PF: > { %p3443_p13 = scmp.ge.s32.totalorder %s4716_s24, 1 }
 0x2b9   : > { %v1782_v58 = vld [vmem:[#allocation6 + $0x8] sm:$0xff] (!%p3443_p13)  ;;  %v1784_v62 = vld [vmem:[#allocation6 + $0x18] sm:$0xff] (!%p3443_p13)  ;;  %v1781_v3 = vld [vmem:[#allocation6] sm:$0xff] (!%p3443_p13)  ;;  %v4747_v6 = vmov (!%p3443_p13), 0.0  }
 0x2ba   : > { %1776 = sbr.rel (%p3443_p13) target bundleno = 939 (0x3ab), region = 72  ;;  %v1786_v59 = vld [vmem:[#allocation6 + $0x88] sm:$0xff] (!%p3443_p13)  ;;  %v1788_v2 = vld [vmem:[#allocation6 + $0x98] sm:$0xff] (!%p3443_p13)  ;;  %v1785_v5 = vld [vmem:[#allocation6 + $0x80] sm:$0xff] (!%p3443_p13)  ;;  %1886 = vmatprep.mubr.f32.mxu0 (!%p3443_p13), %v4747_v6  ;;  %1957 = vmatprep.mubr.f32.mxu1 (!%p3443_p13), %v4747_v6 }
 0x2bb   : > { %v4041_v63 = vpack.c.bf16 (!%p3443_p13), %v1786_v59, %v1782_v58  ;;  %v4049_v7 = vpack.c.bf16 (!%p3443_p13), %v1788_v2, %v1784_v62  ;;  %v4043_v9 = vpack.c.bf16 (!%p3443_p13), %v1785_v5, %v1781_v3  ;;  %v1783_v10 = vld [vmem:[#allocation6 + $0x10] sm:$0xff] (!%p3443_p13)  ;;  %v1790_v12 = vld [vmem:[#allocation6 + $0x108] sm:$0xff] (!%p3443_p13)  ;;  %v1792_v15 = vld [vmem:[#allocation6 + $0x118] sm:$0xff] (!%p3443_p13) }
 0x2bc   : > { %v1787_v11 = vld [vmem:[#allocation6 + $0x90] sm:$0xff] (!%p3443_p13)  ;;  %v1794_v14 = vld [vmem:[#allocation6 + $0x188] sm:$0xff] (!%p3443_p13)  ;;  %v1796_v16 = vld [vmem:[#allocation6 + $0x198] sm:$0xff] (!%p3443_p13) }
 0x2bd   : > { %4042 = vmatprep.subr.bf16.mxu0 (!%p3443_p13), %v4041_v63  ;;  %v4051_v13 = vpack.c.bf16 (!%p3443_p13), %v1787_v11, %v1783_v10  ;;  %4050 = vmatprep.subr.bf16.mxu1 (!%p3443_p13), %v4049_v7  ;;  %v4045_v17 = vpack.c.bf16 (!%p3443_p13), %v1794_v14, %v1790_v12  ;;  %v4053_v20 = vpack.c.bf16 (!%p3443_p13), %v1796_v16, %v1792_v15  ;;  %v1789_v23 = vld [vmem:[#allocation6 + $0x100] sm:$0xff] (!%p3443_p13)  ;;  %v1791_v43 = vld [vmem:[#allocation6 + $0x110] sm:$0xff] (!%p3443_p13)  ;;  %v3445_v21 = vld [vmem:[%s5077_s8 + $0x8] sm:$0xf] (!%p3443_p13) }
 0x2be   : > { %4044 = vmatpush1.bf16.msra.mxu0 (!%p3443_p13), %v4043_v9  ;;  %v1793_v31 = vld [vmem:[#allocation6 + $0x180] sm:$0xff] (!%p3443_p13)  ;;  %v1795_v18 = vld [vmem:[#allocation6 + $0x190] sm:$0xff] (!%p3443_p13) }
 0x2bf   : > { %4052 = vmatpush1.bf16.msra.mxu1 (!%p3443_p13), %v4051_v13  ;;  %v4047_v24 = vpack.c.bf16 (!%p3443_p13), %v1793_v31, %v1789_v23  ;;  %4046 = vmatprep.subr.bf16.mxu0 (!%p3443_p13), %v4045_v17  ;;  %v4055_v19 = vpack.c.bf16 (!%p3443_p13), %v1795_v18, %v1791_v43  ;;  %v1797_v22 = vld [vmem:[#allocation8] sm:$0xf] (!%p3443_p13) }
 0x2c0   : > { %4054 = vmatprep.subr.bf16.mxu1 (!%p3443_p13), %v4053_v20  ;;  %v1802_v25 = vrot.slane (!%p3443_p13), %v1797_v22, %v5107_v38  ;;  %v1810_v27 = vrot.slane (!%p3443_p13), %v1797_v22, %v5110_v40  ;;  %v1806_v28 = vrot.slane (!%p3443_p13), %v1797_v22, %v5113_v0  ;;  %v1814_v29 = vrot.slane (!%p3443_p13), %v1797_v22, %v5116_v41 }
 0x2c2   : > { %4048 = vmatpush1.bf16.msra.mxu0 %v4047_v24 }
 0x2c3   : > { %4056 = vmatpush1.bf16.msra.mxu1 %v4055_v19 }
 0x2c5   : > { %3446 = vmatmul.mubr.msk.f32.vlgmr.msra.gmra.mrb[0].mxu0 %vm470_vm0, %v3445_v21 }
 0x2c6   : > { %3447 = vmatmul.mubr.msk.f32.vlgmr.msra.gmra.mrb[0].mxu1 %vm470_vm0, %v3445_v21 }
 0x398   : > { %v1888_v30 = vpop.f32.mrb[0].mxu0 }
 0x399   : > { %v1889_v32 = vadd.f32 %v1888_v30, %v1802_v25  ;;  %v1959_v33 = vpop.f32.mrb[0].mxu1  ;;  %v1890_v34 = vpop.f32.mrb[1].mxu0 }
 0x39a   : > { %v1960_v60 = vadd.f32 %v1959_v33, %v1810_v27  ;;  %v1891_v35 = vadd.f32 %v1890_v34, %v1806_v28  ;;  %v1961_v37 = vpop.f32.mrb[1].mxu1 }
 0x39b   : > { %v1964_v61 = vmax.f32 %v1889_v32, 0.0  ;;  %v1962_v8 = vadd.f32 %v1961_v37, %v1814_v29 }
 0x39c   : > { %v1966_v36 = vmax.f32 %v1960_v60, 0.0  ;;  %v1965_v39 = vmax.f32 %v1891_v35, 0.0 }
 0x39d   : > { %v1967_v42 = vmax.f32 %v1962_v8, 0.0 }
 0x39e   : > { %v1972_v26 = vcombine.low %v1964_v61, %v1965_v39 }
 0x39f   : > { %v1973_v38 = vcombine.low %v1966_v36, %v1967_v42 }
 0x3a0   : > { %v1980_v40 = vrot.slane %v1972_v26, %v5127_v1 }
 0x3a1   : > { %v1987_v0 = vrot.slane %v1973_v38, %v5127_v1 }
 0x3a3   : > { %v1988_v44 = vcombine.low %v1980_v40, %v1987_v0  ;;  %v1989_v41 = vcombine.high %v1980_v40, %v1987_v0 }
 0x3a5   : > { %v1998_v45 = vrot.slane %v1988_v44, %v5130_v4  ;;  %v2005_v46 = vrot.slane %v1989_v41, %v5130_v4  ;;  %3448 = vst.sshfl [vmem:[#allocation2 + $0x1b8] sm:$0xff pattern:$0x73625140] %v1988_v44  ;;  %3449 = vst.sshfl [vmem:[#allocation2 + $0x1d0] sm:$0xff pattern:$0x73625140] %v1989_v41 }
 0x3a7   : > { %v2011_v47 = vrot.slane %v1998_v45, 7  ;;  %v2012_v48 = vrot.slane %v2005_v46, 7  ;;  %v2018_v49 = vrot.slane %v1998_v45, 1  ;;  %v2019_v50 = vrot.slane %v2005_v46, 1 }
 0x3a9   : > { %v2013_v51 = vsel %vm1135_vm1, %v2011_v47, %v2012_v48  ;;  %2016 = vst [vmem:[#allocation2 + $0x1b0] sm:$0xfe] %v2011_v47  ;;  %v2020_v52 = vsel %vm1143_vm2, %v2018_v49, %v2019_v50  ;;  %2024 = vst [vmem:[#allocation2 + $0x1d8] sm:$0x7f] %v2019_v50 }
 0x3aa   : > { %2017 = vst [vmem:[#allocation2 + $0x1c8] sm:$0xff] %v2013_v51  ;;  %2023 = vst [vmem:[#allocation2 + $0x1c0] sm:$0xff] %v2020_v52 }
 0x3ab PF: > { %v2089_v1 = vld [vmem:[#allocation9 + $0x80] sm:$0xff]  ;;  %v2090_v53 = vld [vmem:[#allocation9 + $0x88] sm:$0xff]  ;;  %v2091_v62 = vld [vmem:[#allocation9 + $0x90] sm:$0xff]  ;;  %s5711_s5 = sld [smem:[#allocation22_spill]]  ;;  %s5712_s1 = sld [smem:[#allocation17_spill]] }
 0x3ac   : > { %v2105_v54 = vld [vmem:[#allocation9 + $0x100] sm:$0xff]  ;;  %v4057_v55 = vpack.c.bf16 %v2090_v53, %v2089_v1  ;;  %v2106_v4 = vld [vmem:[#allocation9 + $0x108] sm:$0xff]  ;;  %v2092_v63 = vld [vmem:[#allocation9 + $0x98] sm:$0xff]  ;;  %s5713_s29 = sld [smem:[#allocation18_spill]]  ;;  %s3273_s6 = sshll.u32 %s298_s13, 4  ;;  %s5604_s6 = int_to_ptr.vmem [resolvable:$true] %s3273_s6 }
 0x3ad   : > { %v2073_v56 = vld [vmem:[#allocation9] sm:$0xff]  ;;  %v2074_v57 = vld [vmem:[#allocation9 + $0x8] sm:$0xff]  ;;  %v4089_v58 = vpack.c.bf16 %v2106_v4, %v2105_v54  ;;  %v2107_v2 = vld [vmem:[#allocation9 + $0x110] sm:$0xff]  ;;  %v4061_v3 = vpack.c.bf16 %v2092_v63, %v2091_v62  ;;  %s5714_s10 = sld [smem:[#allocation23_spill]]  ;;  %s3258_s15 = scalar_lea.sflag [#allocation5], %s296_s2 }
 0x3ae   : > { %v4059_v59 = vpack.c.bf16 %v2074_v57, %v2073_v56  ;;  %4058 = vmatprep.subr.bf16.mxu0 %v4057_v55  ;;  %v2108_v5 = vld [vmem:[#allocation9 + $0x118] sm:$0xff]  ;;  %v2075_v6 = vld [vmem:[#allocation9 + $0x10] sm:$0xff]  ;;  %v2093_v11 = vld [vmem:[#allocation9 + $0xa0] sm:$0xff]  ;;  %s4602_s17 = scalar_lea.vmem %s5604_s6, 128 }
 0x3af   : > { %v2076_v7 = vld [vmem:[#allocation9 + $0x18] sm:$0xff]  ;;  %4090 = vmatprep.subr.bf16.mxu1 %v4089_v58  ;;  %v4093_v9 = vpack.c.bf16 %v2108_v5, %v2107_v2  ;;  %v2094_v12 = vld [vmem:[#allocation9 + $0xa8] sm:$0xff]  ;;  %v2109_v13 = vld [vmem:[#allocation9 + $0x120] sm:$0xff]  ;;  %p4603_p5 = scmp.ne.s32.totalorder %s5604_s6, %s4602_s17 }
 0x3b0   : > { %4060 = vmatpush3.bf16.msra.mxu0 %v4059_v59  ;;  %v4063_v10 = vpack.c.bf16 %v2076_v7, %v2075_v6  ;;  %4092 = vmatpush3.bf16.msra.mxu1 %v4089_v58  ;;  %v4065_v14 = vpack.c.bf16 %v2094_v12, %v2093_v11  ;;  %v2110_v15 = vld [vmem:[#allocation9 + $0x128] sm:$0xff]  ;;  %v2077_v16 = vld [vmem:[#allocation9 + $0x20] sm:$0xff]  ;;  %v2095_v23 = vld [vmem:[#allocation9 + $0xb0] sm:$0xff] }
 0x3b1   : > { %4062 = vmatprep.subr.bf16.mxu0 %v4061_v3  ;;  %v2078_v17 = vld [vmem:[#allocation9 + $0x28] sm:$0xff]  ;;  %4094 = vmatprep.subr.bf16.mxu1 %v4093_v9  ;;  %v4097_v20 = vpack.c.bf16 %v2110_v15, %v2109_v13  ;;  %v2096_v31 = vld [vmem:[#allocation9 + $0xb8] sm:$0xff]  ;;  %v2111_v43 = vld [vmem:[#allocation9 + $0x130] sm:$0xff]  ;;  %s3452_s25 = sshll.u32 %s5712_s1, 1 }
 0x3b2   : > { %v2112_v24 = vld [vmem:[#allocation9 + $0x138] sm:$0xff]  ;;  %v4067_v18 = vpack.c.bf16 %v2078_v17, %v2077_v16  ;;  %v4069_v19 = vpack.c.bf16 %v2096_v31, %v2095_v23  ;;  %v2079_v21 = vld [vmem:[#allocation9 + $0x30] sm:$0xff]  ;;  %v2097_v27 = vld [vmem:[#allocation9 + $0xc0] sm:$0xff]  ;;  %s3269_s30 = sadd.s32 %s4716_s24, %s3452_s25  ;;  %p5715_p6 = scmp.ne.s32.totalorder %s5713_s29, 0 }
 0x3b3   : > { %v2080_v22 = vld [vmem:[#allocation9 + $0x38] sm:$0xff]  ;;  %v4101_v25 = vpack.c.bf16 %v2112_v24, %v2111_v43  ;;  %v2098_v28 = vld [vmem:[#allocation9 + $0xc8] sm:$0xff]  ;;  %v2113_v29 = vld [vmem:[#allocation9 + $0x140] sm:$0xff]  ;;  %s3453_s12 = sshll.u32 %s3269_s30, 7  ;;  %s4748_s24 = smov [#allocation11]  }
 0x3b4   : > { %4064 = vmatpush3.bf16.msra.mxu0 %v4063_v10  ;;  %4096 = vmatpush3.bf16.msra.mxu1 %v4093_v9  ;;  %v2114_v30 = vld [vmem:[#allocation9 + $0x148] sm:$0xff]  ;;  %v4071_v32 = vpack.c.bf16 %v2080_v22, %v2079_v21  ;;  %v4073_v33 = vpack.c.bf16 %v2098_v28, %v2097_v27  ;;  %v2081_v34 = vld [vmem:[#allocation9 + $0x40] sm:$0xff]  ;;  %v2099_v37 = vld [vmem:[#allocation9 + $0xd0] sm:$0xff]  ;;  %s5602_s21 = scalar_lea.hbm %s5714_s10, %s3453_s12  ;;  %p4604_p8 = pnand %p4603_p5, %p5715_p6 }
 0x3b5   : > { %4066 = vmatprep.subr.bf16.mxu0 %v4065_v14  ;;  %4098 = vmatprep.subr.bf16.mxu1 %v4097_v20  ;;  %v2082_v60 = vld [vmem:[#allocation9 + $0x48] sm:$0xff]  ;;  %v4105_v35 = vpack.c.bf16 %v2114_v30, %v2113_v29  ;;  %v2100_v61 = vld [vmem:[#allocation9 + $0xd8] sm:$0xff]  ;;  %v2115_v8 = vld [vmem:[#allocation9 + $0x150] sm:$0xff]  ;;  %s4606_s7 = sshll.u32 %s4748_s24, 4  ;;  %s4607_s7 = int_to_ptr.vmem [resolvable:$false] %s4606_s7 }
 0x3b6   : > { %v2116_v36 = vld [vmem:[#allocation9 + $0x158] sm:$0xff]  ;;  %v4075_v39 = vpack.c.bf16 %v2082_v60, %v2081_v34  ;;  %v2027_v26 = vld [vmem:[#allocation2 + $0x10] sm:$0xff]  ;;  %v4077_v38 = vpack.c.bf16 %v2100_v61, %v2099_v37  ;;  %v2083_v40 = vld [vmem:[#allocation9 + $0x50] sm:$0xff]  ;;  %p4605_p12 = pneg %p4604_p8  ;;  %p4609_p4 = scmp.lt.s32.totalorder %s5604_s6, %s4607_s7 }
 0x3b7   : > { %v2026_v42 = vld [vmem:[#allocation2 + $0x8] sm:$0xff]  ;;  %v4109_v44 = vpack.c.bf16 %v2116_v36, %v2115_v8  ;;  %v2101_v41 = vld [vmem:[#allocation9 + $0xe0] sm:$0xff]  ;;  %v2102_v45 = vld [vmem:[#allocation9 + $0xe8] sm:$0xff]  ;;  %3825 = vmatprep.mubr.f32.mxu1 %v2027_v26 }
 0x3b8   : > { %4068 = vmatpush3.bf16.msra.mxu0 %v4067_v18  ;;  %4100 = vmatpush3.bf16.msra.mxu1 %v4097_v20  ;;  %v2084_v0 = vld [vmem:[#allocation9 + $0x58] sm:$0xff]  ;;  %v2117_v46 = vld [vmem:[#allocation9 + $0x160] sm:$0xff]  ;;  %v2118_v47 = vld [vmem:[#allocation9 + $0x168] sm:$0xff]  ;;  %v4081_v49 = vpack.c.bf16 %v2102_v45, %v2101_v41 }
 0x3b9   : > { %4070 = vmatprep.subr.bf16.mxu0 %v4069_v19  ;;  %4102 = vmatprep.subr.bf16.mxu1 %v4101_v25  ;;  %v4079_v48 = vpack.c.bf16 %v2084_v0, %v2083_v40  ;;  %v2085_v50 = vld [vmem:[#allocation9 + $0x60] sm:$0xff]  ;;  %v2086_v51 = vld [vmem:[#allocation9 + $0x68] sm:$0xff]  ;;  %v4113_v52 = vpack.c.bf16 %v2118_v47, %v2117_v46  ;;  %v2103_v1 = vld [vmem:[#allocation9 + $0xf0] sm:$0xff] }
 0x3ba   : > { %2192 = vmatprep.mubr.f32.mxu0 %v2026_v42  ;;  %v2104_v53 = vld [vmem:[#allocation9 + $0xf8] sm:$0xff]  ;;  %v2119_v54 = vld [vmem:[#allocation9 + $0x170] sm:$0xff]  ;;  %v4083_v4 = vpack.c.bf16 %v2086_v51, %v2085_v50  ;;  %v2886_v62 = vld [vmem:[#allocation9 + $0x380] sm:$0xff] }
 0x3bb   : > { %v2120_v55 = vld [vmem:[#allocation9 + $0x178] sm:$0xff]  ;;  %v4085_v56 = vpack.c.bf16 %v2104_v53, %v2103_v1  ;;  %v2087_v57 = vld [vmem:[#allocation9 + $0x70] sm:$0xff]  ;;  %v2887_v63 = vld [vmem:[#allocation9 + $0x388] sm:$0xff] }
 0x3bc   : > { %4072 = vmatpush3.bf16.msra.mxu0 %v4071_v32  ;;  %4104 = vmatpush3.bf16.msra.mxu1 %v4101_v25  ;;  %v2088_v58 = vld [vmem:[#allocation9 + $0x78] sm:$0xff]  ;;  %v4117_v59 = vpack.c.bf16 %v2120_v55, %v2119_v54  ;;  %v2483_v2 = vld [vmem:[#allocation9 + $0x200] sm:$0xff]  ;;  %v2484_v3 = vld [vmem:[#allocation9 + $0x208] sm:$0xff]  ;;  %v4185_v6 = vpack.c.bf16 %v2887_v63, %v2886_v62 }
 0x3bd   : > { %4074 = vmatprep.subr.bf16.mxu0 %v4073_v33  ;;  %4106 = vmatprep.subr.bf16.mxu1 %v4105_v35  ;;  %v4087_v5 = vpack.c.bf16 %v2088_v58, %v2087_v57  ;;  %v2870_v7 = vld [vmem:[#allocation9 + $0x300] sm:$0xff]  ;;  %v2871_v9 = vld [vmem:[#allocation9 + $0x308] sm:$0xff]  ;;  %v4121_v10 = vpack.c.bf16 %v2484_v3, %v2483_v2  ;;  %v2485_v13 = vld [vmem:[#allocation9 + $0x210] sm:$0xff] }
 0x3be   : > { %v2467_v11 = vld [vmem:[#allocation9 + $0x180] sm:$0xff]  ;;  %v2468_v12 = vld [vmem:[#allocation9 + $0x188] sm:$0xff]  ;;  %v2486_v14 = vld [vmem:[#allocation9 + $0x218] sm:$0xff]  ;;  %v4187_v16 = vpack.c.bf16 %v2871_v9, %v2870_v7 }
 0x3bf   : > { %v2025_v15 = vld [vmem:[#allocation2] sm:$0xff]  ;;  %v2889_v20 = vld [vmem:[#allocation9 + $0x398] sm:$0xff]  ;;  %v4123_v31 = vpack.c.bf16 %v2468_v12, %v2467_v11  ;;  %v4125_v18 = vpack.c.bf16 %v2486_v14, %v2485_v13  ;;  %v2487_v22 = vld [vmem:[#allocation9 + $0x220] sm:$0xff] }
 0x3c0   : > { %4076 = vmatpush3.bf16.msra.mxu0 %v4075_v39  ;;  %4108 = vmatpush3.bf16.msra.mxu1 %v4105_v35  ;;  %v2888_v17 = vld [vmem:[#allocation9 + $0x390] sm:$0xff]  ;;  %v2030_v23 = vld [vmem:[#allocation2 + $0x28] sm:$0xff]  ;;  %v2488_v25 = vld [vmem:[#allocation9 + $0x228] sm:$0xff] }
 0x3c1   : > { %4078 = vmatprep.subr.bf16.mxu0 %v4077_v38  ;;  %4110 = vmatprep.subr.bf16.mxu1 %v4109_v44  ;;  %v2029_v43 = vld [vmem:[#allocation2 + $0x20] sm:$0xff]  ;;  %v2470_v21 = vld [vmem:[#allocation9 + $0x198] sm:$0xff]  ;;  %v4189_v27 = vpack.c.bf16 %v2889_v20, %v2888_v17  ;;  %v2028_v30 = vld [vmem:[#allocation2 + $0x18] sm:$0xff]  ;;  %v4129_v61 = vpack.c.bf16 %v2488_v25, %v2487_v22 }
 0x3c2   : > { %v5247_v24 = vld [vmem:[#allocation2 + $0x40] sm:$0xff]  ;;  %v2873_v29 = vld [vmem:[#allocation9 + $0x318] sm:$0xff]  ;;  %v2890_v32 = vld [vmem:[#allocation9 + $0x3a0] sm:$0xff] }
 0x3c3   : > { %v2469_v19 = vld [vmem:[#allocation9 + $0x190] sm:$0xff]  ;;  %v2891_v33 = vld [vmem:[#allocation9 + $0x3a8] sm:$0xff]  ;;  %v5253_v37 = vld [vmem:[#allocation2 + $0x70] sm:$0xff] }
 0x3c4   : > { %4080 = vmatpush3.bf16.msra.mxu0 %v4079_v48  ;;  %4112 = vmatpush3.bf16.msra.mxu1 %v4109_v44  ;;  %v2872_v28 = vld [vmem:[#allocation9 + $0x310] sm:$0xff]  ;;  %v5249_v34 = vld [vmem:[#allocation2 + $0x58] sm:$0xff]  ;;  %v4127_v60 = vpack.c.bf16 %v2470_v21, %v2469_v19  ;;  %v2471_v8 = vld [vmem:[#allocation9 + $0x1a0] sm:$0xff]  ;;  %v4193_v38 = vpack.c.bf16 %v2891_v33, %v2890_v32 }
 0x3c5   : > { %4082 = vmatprep.subr.bf16.mxu0 %v4081_v49  ;;  %4114 = vmatprep.subr.bf16.mxu1 %v4113_v52  ;;  %v5251_v35 = vld [vmem:[#allocation2 + $0x38] sm:$0xff]  ;;  %v4191_v39 = vpack.c.bf16 %v2873_v29, %v2872_v28  ;;  %v2489_v42 = vld [vmem:[#allocation9 + $0x230] sm:$0xff]  ;;  %v2490_v26 = vld [vmem:[#allocation9 + $0x238] sm:$0xff] }
 0x3c6   : > { %v2472_v36 = vld [vmem:[#allocation9 + $0x1a8] sm:$0xff]  ;;  %v2874_v40 = vld [vmem:[#allocation9 + $0x320] sm:$0xff]  ;;  %v2892_v41 = vld [vmem:[#allocation9 + $0x3b0] sm:$0xff]  ;;  %v4133_v50 = vpack.c.bf16 %v2490_v26, %v2489_v42 }
 0x3c7   : > { %v2875_v0 = vld [vmem:[#allocation9 + $0x328] sm:$0xff]  ;;  %v5258_v44 = vld [vmem:[#allocation2 + $0x30] sm:$0xff]  ;;  %v2893_v45 = vld [vmem:[#allocation9 + $0x3b8] sm:$0xff]  ;;  %v4131_v47 = vpack.c.bf16 %v2472_v36, %v2471_v8 }
 0x3c8   : > { %4084 = vmatpush3.bf16.msra.mxu0 %v4083_v4  ;;  %4116 = vmatpush3.bf16.msra.mxu1 %v4113_v52  ;;  %v5261_v46 = vld [vmem:[#allocation2 + $0x88] sm:$0xff]  ;;  %v5263_v48 = vld [vmem:[#allocation2 + $0x50] sm:$0xff]  ;;  %v5265_v49 = vld [vmem:[#allocation2 + $0xa0] sm:$0xff]  ;;  %v4195_v53 = vpack.c.bf16 %v2875_v0, %v2874_v40  ;;  %v4197_v55 = vpack.c.bf16 %v2893_v45, %v2892_v41 }
 0x3c9   : > { %4086 = vmatprep.subr.bf16.mxu0 %v4085_v56  ;;  %4118 = vmatprep.subr.bf16.mxu1 %v4117_v59  ;;  %v2473_v51 = vld [vmem:[#allocation9 + $0x1b0] sm:$0xff]  ;;  %v2474_v52 = vld [vmem:[#allocation9 + $0x1b8] sm:$0xff]  ;;  %v2491_v1 = vld [vmem:[#allocation9 + $0x240] sm:$0xff] }
 0x3ca   : > { %v2492_v54 = vld [vmem:[#allocation9 + $0x248] sm:$0xff]  ;;  %v2876_v4 = vld [vmem:[#allocation9 + $0x330] sm:$0xff]  ;;  %v2877_v56 = vld [vmem:[#allocation9 + $0x338] sm:$0xff]  ;;  %v4135_v63 = vpack.c.bf16 %v2474_v52, %v2473_v51 }
 0x3cb   : > { %v5270_v57 = vld [vmem:[#allocation2 + $0x48] sm:$0xff]  ;;  %v2894_v58 = vld [vmem:[#allocation9 + $0x3c0] sm:$0xff]  ;;  %v5273_v62 = vld [vmem:[#allocation2 + $0xb8] sm:$0xff] }
 0x3cc   : > { %4088 = vmatpush3.bf16.msra.mxu0 %v4087_v5  ;;  %4120 = vmatpush3.bf16.msra.mxu1 %v4117_v59  ;;  %v2895_v59 = vld [vmem:[#allocation9 + $0x3c8] sm:$0xff]  ;;  %v5275_v2 = vld [vmem:[#allocation2 + $0x68] sm:$0xff]  ;;  %v5277_v3 = vld [vmem:[#allocation2 + $0xd0] sm:$0xff]  ;;  %v4137_v5 = vpack.c.bf16 %v2492_v54, %v2491_v1 }
 0x3cd   : > { %4186 = vmatprep.subr.bf16.mxu0 %v4185_v6  ;;  %4122 = vmatprep.subr.bf16.mxu1 %v4121_v10  ;;  %v2475_v6 = vld [vmem:[#allocation9 + $0x1c0] sm:$0xff]  ;;  %v2476_v7 = vld [vmem:[#allocation9 + $0x1c8] sm:$0xff]  ;;  %v2493_v9 = vld [vmem:[#allocation9 + $0x250] sm:$0xff]  ;;  %v4199_v10 = vpack.c.bf16 %v2877_v56, %v2876_v4  ;;  %v4201_v12 = vpack.c.bf16 %v2895_v59, %v2894_v58 }
 0x3ce   : > { %v2494_v11 = vld [vmem:[#allocation9 + $0x258] sm:$0xff]  ;;  %v2878_v13 = vld [vmem:[#allocation9 + $0x340] sm:$0xff]  ;;  %v2879_v14 = vld [vmem:[#allocation9 + $0x348] sm:$0xff] }
 0x3cf   : > { %2193 = vmatmul.mubr.f32.vlgmr.msra.gmra.mrb[0].mxu0 %v2025_v15  ;;  %3826 = vmatmul.mubr.f32.vlgmr.msra.gmra.mrb[0].mxu1 %v2030_v23  ;;  %v5282_v15 = vld [vmem:[#allocation2 + $0x60] sm:$0xff]  ;;  %v2897_v17 = vld [vmem:[#allocation9 + $0x3d8] sm:$0xff]  ;;  %v4139_v23 = vpack.c.bf16 %v2476_v7, %v2475_v6  ;;  %v2495_v22 = vld [vmem:[#allocation9 + $0x260] sm:$0xff]  ;;  %v4203_v25 = vpack.c.bf16 %v2879_v14, %v2878_v13 }
 0x3d0   : > { %4188 = vmatpush3.bf16.msra.mxu0 %v4187_v16  ;;  %4124 = vmatpush3.bf16.msra.mxu1 %v4123_v31  ;;  %v2896_v16 = vld [vmem:[#allocation9 + $0x3d0] sm:$0xff]  ;;  %v5285_v20 = vld [vmem:[#allocation2 + $0xe8] sm:$0xff]  ;;  %v5294_v32 = vld [vmem:[#allocation2 + $0x78] sm:$0xff] }
 0x3d1   : > { %2197 = vmatprep.mubr.f32.mxu0 %v2029_v43  ;;  %3828 = vmatprep.mubr.f32.mxu1 %v5247_v24  ;;  %v5287_v31 = vld [vmem:[#allocation2 + $0x80] sm:$0xff]  ;;  %v2478_v21 = vld [vmem:[#allocation9 + $0x1d8] sm:$0xff]  ;;  %v4205_v28 = vpack.c.bf16 %v2897_v17, %v2896_v16  ;;  %v2898_v33 = vld [vmem:[#allocation9 + $0x3e0] sm:$0xff] }
 0x3d2   : > { %4126 = vmatprep.subr.bf16.mxu1 %v4125_v18  ;;  %4190 = vmatprep.subr.bf16.mxu0 %v4189_v27  ;;  %v5289_v43 = vld [vmem:[#allocation2 + $0x100] sm:$0xff]  ;;  %v4141_v18 = vpack.c.bf16 %v2494_v11, %v2493_v9  ;;  %v2496_v27 = vld [vmem:[#allocation9 + $0x268] sm:$0xff]  ;;  %v2479_v26 = vld [vmem:[#allocation9 + $0x1e0] sm:$0xff] }
 0x3d3   : > { %2198 = vmatmul.mubr.f32.gmra.mrb[2].mxu0 %v2028_v30  ;;  %3829 = vmatmul.mubr.f32.gmra.mrb[2].mxu1 %v5249_v34  ;;  %v2477_v19 = vld [vmem:[#allocation9 + $0x1d0] sm:$0xff]  ;;  %v2881_v30 = vld [vmem:[#allocation9 + $0x358] sm:$0xff]  ;;  %v5299_v36 = vld [vmem:[#allocation2 + $0x98] sm:$0xff]  ;;  %v4145_v42 = vpack.c.bf16 %v2496_v27, %v2495_v22 }
 0x3d4   : > { %2202 = vmatprep.mubr.f32.mxu0 %v5251_v35  ;;  %4128 = vmatpush3.bf16.msra.mxu1 %v4127_v60  ;;  %v2880_v29 = vld [vmem:[#allocation9 + $0x350] sm:$0xff]  ;;  %v2899_v60 = vld [vmem:[#allocation9 + $0x3e8] sm:$0xff]  ;;  %v4143_v8 = vpack.c.bf16 %v2478_v21, %v2477_v19  ;;  %v2498_v41 = vld [vmem:[#allocation9 + $0x278] sm:$0xff] }
 0x3d5   : > { %3831 = vmatprep.mubr.f32.mxu1 %v5253_v37  ;;  %4130 = vmatprep.subr.bf16.mxu1 %v4129_v61  ;;  %v5297_v61 = vld [vmem:[#allocation2 + $0x118] sm:$0xff]  ;;  %v2497_v40 = vld [vmem:[#allocation9 + $0x270] sm:$0xff]  ;;  %v4207_v0 = vpack.c.bf16 %v2881_v30, %v2880_v29  ;;  %v4209_v45 = vpack.c.bf16 %v2899_v60, %v2898_v33  ;;  %v5306_v51 = vld [vmem:[#allocation2 + $0x90] sm:$0xff] }
 0x3d6   : > { %4192 = vmatpush3.bf16.msra.mxu0 %v4191_v39  ;;  %v5301_v39 = vld [vmem:[#allocation2 + $0x130] sm:$0xff]  ;;  %v2900_v52 = vld [vmem:[#allocation9 + $0x3f0] sm:$0xff]  ;;  %v2901_v1 = vld [vmem:[#allocation9 + $0x3f8] sm:$0xff]  ;;  %v4149_v56 = vpack.c.bf16 %v2498_v41, %v2497_v40 }
 0x3d7   : > { %2203 = vmatmul.mubr.f32.gmra.mrb[4].mxu0 %v5258_v44  ;;  %4194 = vmatprep.subr.bf16.mxu0 %v4193_v38  ;;  %v2480_v38 = vld [vmem:[#allocation9 + $0x1e8] sm:$0xff]  ;;  %v5313_v4 = vld [vmem:[#allocation2 + $0x160] sm:$0xff]  ;;  %v2482_v59 = vld [vmem:[#allocation9 + $0x1f8] sm:$0xff]  ;;  %v4213_v6 = vpack.c.bf16 %v2901_v1, %v2900_v52 }
 0x3d8   : > { %3832 = vmatmul.mubr.f32.gmra.mrb[4].mxu1 %v5261_v46  ;;  %2207 = vmatprep.mubr.f32.mxu0 %v5263_v48  ;;  %v4147_v54 = vpack.c.bf16 %v2480_v38, %v2479_v26  ;;  %v2481_v58 = vld [vmem:[#allocation9 + $0x1f0] sm:$0xff]  ;;  %v2885_v7 = vld [vmem:[#allocation9 + $0x378] sm:$0xff]  ;;  %v2499_v9 = vld [vmem:[#allocation9 + $0x280] sm:$0xff] }
 0x3d9   : > { %4132 = vmatpush3.bf16.msra.mxu1 %v4131_v47  ;;  %3834 = vmatprep.mubr.f32.mxu1 %v5265_v49  ;;  %v2882_v47 = vld [vmem:[#allocation9 + $0x360] sm:$0xff]  ;;  %v5318_v11 = vld [vmem:[#allocation2 + $0xa8] sm:$0xff]  ;;  %v2903_v13 = vld [vmem:[#allocation9 + $0x408] sm:$0xff]  ;;  %v4151_v16 = vpack.c.bf16 %v2482_v59, %v2481_v58 }
 0x3da   : > { %4134 = vmatprep.subr.bf16.mxu1 %v4133_v50  ;;  %4196 = vmatpush3.bf16.msra.mxu0 %v4195_v53  ;;  %v2883_v50 = vld [vmem:[#allocation9 + $0x368] sm:$0xff]  ;;  %v5309_v53 = vld [vmem:[#allocation2 + $0x148] sm:$0xff]  ;;  %v2501_v21 = vld [vmem:[#allocation9 + $0x290] sm:$0xff] }
 0x3db   : > { %2208 = vmatmul.mubr.f32.gmra.mrb[6].mxu0 %v5270_v57  ;;  %4198 = vmatprep.subr.bf16.mxu0 %v4197_v55  ;;  %v5311_v55 = vld [vmem:[#allocation2 + $0xb0] sm:$0xff]  ;;  %v5321_v14 = vld [vmem:[#allocation2 + $0x178] sm:$0xff]  ;;  %v5323_v17 = vld [vmem:[#allocation2 + $0xc8] sm:$0xff] }
 0x3dc   : > { %3835 = vmatmul.mubr.f32.gmra.mrb[6].mxu1 %v5273_v62  ;;  %2212 = vmatprep.mubr.f32.mxu0 %v5275_v2  ;;  %v2502_v22 = vld [vmem:[#allocation9 + $0x298] sm:$0xff]  ;;  %v5333_v27 = vld [vmem:[#allocation2 + $0xe0] sm:$0xff]  ;;  %v2503_v29 = vld [vmem:[#allocation9 + $0x2a0] sm:$0xff] }
 0x3dd   : > { %4136 = vmatpush3.bf16.msra.mxu1 %v4135_v63  ;;  %3837 = vmatprep.mubr.f32.mxu1 %v5277_v3  ;;  %v4211_v63 = vpack.c.bf16 %v2883_v50, %v2882_v47  ;;  %v2504_v30 = vld [vmem:[#allocation9 + $0x2a8] sm:$0xff]  ;;  %v5350_v26 = vld [vmem:[#allocation2 + $0x110] sm:$0xff]  ;;  %v2510_v47 = vld [vmem:[#allocation9 + $0x2d8] sm:$0xff] }
 0x3de   : > { %4138 = vmatprep.subr.bf16.mxu1 %v4137_v5  ;;  %4200 = vmatpush3.bf16.msra.mxu0 %v4199_v10  ;;  %v2884_v5 = vld [vmem:[#allocation9 + $0x370] sm:$0xff]  ;;  %v2500_v10 = vld [vmem:[#allocation9 + $0x288] sm:$0xff]  ;;  %v4161_v60 = vpack.c.bf16 %v2504_v30, %v2503_v29  ;;  %v2507_v38 = vld [vmem:[#allocation9 + $0x2c0] sm:$0xff] }
 0x3df   : > { %2213 = vmatmul.mubr.f32.gmra.mrb[8].mxu0 %v5282_v15  ;;  %4202 = vmatprep.subr.bf16.mxu0 %v4201_v12  ;;  %v2902_v12 = vld [vmem:[#allocation9 + $0x400] sm:$0xff]  ;;  %v5339_v33 = vld [vmem:[#allocation2 + $0xd8] sm:$0xff]  ;;  %v5363_v50 = vld [vmem:[#allocation2 + $0x120] sm:$0xff] }
 0x3e0   : > { %3838 = vmatmul.mubr.f32.gmra.mrb[8].mxu1 %v5285_v20  ;;  %2217 = vmatprep.mubr.f32.mxu0 %v5287_v31  ;;  %v5326_v19 = vpack.c.bf16 %v2903_v13, %v2902_v12  ;;  %v2508_v40 = vld [vmem:[#allocation9 + $0x2c8] sm:$0xff]  ;;  %v5366_v52 = vld [vmem:[#allocation2 + $0x140] sm:$0xff]  ;;  %v5387_v12 = vld [vmem:[#allocation2 + $0x168] sm:$0xff] }
 0x3e1   : > { %4140 = vmatpush3.bf16.msra.mxu1 %v4139_v23  ;;  %3840 = vmatprep.mubr.f32.mxu1 %v5289_v43  ;;  %v4215_v23 = vpack.c.bf16 %v2885_v7, %v2884_v5  ;;  %v4169_v41 = vpack.c.bf16 %v2508_v40, %v2507_v38  ;;  %v5371_v58 = vld [vmem:[#allocation2 + $0x138] sm:$0xff]  ;;  %v2513_v5 = vld [vmem:[#allocation9 + $0x2f0] sm:$0xff]  ;;  %v5379_v7 = vld [vmem:[#allocation2 + $0x150] sm:$0xff] }
 0x3e2   : > { %4142 = vmatprep.subr.bf16.mxu1 %v4141_v18  ;;  %4204 = vmatpush3.bf16.msra.mxu0 %v4203_v25  ;;  %v4153_v18 = vpack.c.bf16 %v2500_v10, %v2499_v9  ;;  %v5330_v25 = vld [vmem:[#allocation2 + $0xc0] sm:$0xff]  ;;  %v5374_v59 = vld [vmem:[#allocation2 + $0x158] sm:$0xff]  ;;  %v5382_v9 = vld [vmem:[#allocation2 + $0x170] sm:$0xff] }
 0x3e3   : > { %2218 = vmatmul.mubr.f32.gmra.mrb[10].mxu0 %v5294_v32  ;;  %4206 = vmatprep.subr.bf16.mxu0 %v4205_v28  ;;  %v4157_v28 = vpack.c.bf16 %v2502_v22, %v2501_v21  ;;  %v2904_v13 = vld [vmem:[#allocation9 + $0x410] sm:$0xff]  ;;  %v2907_v21 = vld [vmem:[#allocation9 + $0x428] sm:$0xff]  ;;  %v2913_v30 = vld [vmem:[#allocation9 + $0x458] sm:$0xff] }
 0x3e4   : > { %3841 = vmatmul.mubr.f32.gmra.mrb[10].mxu1 %v5297_v61  ;;  %2222 = vmatprep.mubr.f32.mxu0 %v5299_v36  ;;  %v2908_v22 = vld [vmem:[#allocation9 + $0x430] sm:$0xff]  ;;  %v2911_v29 = vld [vmem:[#allocation9 + $0x448] sm:$0xff] }
 0x3e5   : > { %4144 = vmatpush3.bf16.msra.mxu1 %v4143_v8  ;;  %3843 = vmatprep.mubr.f32.mxu1 %v5301_v39  ;;  %v2505_v8 = vld [vmem:[#allocation9 + $0x2b0] sm:$0xff] }
 0x3e6   : > { %4146 = vmatprep.subr.bf16.mxu1 %v4145_v42  ;;  %4208 = vmatpush3.bf16.msra.mxu0 %v4207_v0  ;;  %v2506_v42 = vld [vmem:[#allocation9 + $0x2b8] sm:$0xff] }
 0x3e7   : > { %2223 = vmatmul.mubr.f32.gmra.mrb[12].mxu0 %v5306_v51  ;;  %4210 = vmatprep.subr.bf16.mxu0 %v4209_v45  ;;  %v5358_v0 = vld [vmem:[#allocation2 + $0x128] sm:$0xff]  ;;  %v2509_v45 = vld [vmem:[#allocation9 + $0x2d0] sm:$0xff] }
 0x3e8   : > { %3844 = vmatmul.mubr.f32.gmra.mrb[12].mxu1 %v5309_v53  ;;  %2227 = vmatprep.mubr.f32.mxu0 %v5311_v55  ;;  %v4173_v1 = vpack.c.bf16 %v2510_v47, %v2509_v45 }
 0x3e9   : > { %4148 = vmatpush3.bf16.msra.mxu1 %v4147_v54  ;;  %3846 = vmatprep.mubr.f32.mxu1 %v5313_v4  ;;  %v2511_v54 = vld [vmem:[#allocation9 + $0x2e0] sm:$0xff] }
 0x3ea   : > { %4150 = vmatprep.subr.bf16.mxu1 %v4149_v56  ;;  %4212 = vmatpush3.bf16.msra.mxu0 %v4211_v63  ;;  %v2512_v56 = vld [vmem:[#allocation9 + $0x2e8] sm:$0xff] }
 0x3eb   : > { %2228 = vmatmul.mubr.f32.gmra.mrb[14].mxu0 %v5318_v11  ;;  %4214 = vmatprep.subr.bf16.mxu0 %v4213_v6  ;;  %v4177_v63 = vpack.c.bf16 %v2512_v56, %v2511_v54  ;;  %v2514_v6 = vld [vmem:[#allocation9 + $0x2f8] sm:$0xff] }
 0x3ec   : > { %3847 = vmatmul.mubr.f32.gmra.mrb[14].mxu1 %v5321_v14  ;;  %2232 = vmatprep.mubr.f32.mxu0 %v5323_v17  ;;  %v4181_v10 = vpack.c.bf16 %v2514_v6, %v2513_v5 }
 0x3ed   : > { %4152 = vmatpush3.bf16.msra.mxu1 %v4151_v16  ;;  %2579 = vmatprep.mubr.f32.mxu1 %v5251_v35  ;;  %v5342_v35 = vld [vmem:[#allocation2 + $0xf8] sm:$0xff]  ;;  %v2905_v16 = vld [vmem:[#allocation9 + $0x418] sm:$0xff] }
 0x3ee   : > { %4216 = vmatpush3.bf16.msra.mxu0 %v4215_v23  ;;  %4154 = vmatprep.subr.bf16.mxu1 %v4153_v18  ;;  %v5394_v23 = vpack.c.bf16 %v2905_v16, %v2904_v13 }
 0x3ef   : > { %2233 = vmatmul.mubr.f32.gmra.mrb[16].mxu0 %v5330_v25  ;;  %4218 = vmatprep.subr.bf16.mxu0 %v5326_v19 }
 0x3f0   : > { %2580 = vmatmul.mubr.f32.vlgmr.msra.gmra.mrb[16].mxu1 %v5258_v44  ;;  %2237 = vmatprep.mubr.f32.mxu0 %v5333_v27  ;;  %v5347_v44 = vld [vmem:[#allocation2 + $0xf0] sm:$0xff] }
 0x3f1   : > { %2584 = vmatprep.mubr.f32.mxu1 %v5263_v48  ;;  %4156 = vmatpush3.bf16.msra.mxu1 %v4153_v18  ;;  %v4165_v48 = vpack.c.bf16 %v2506_v42, %v2505_v8  ;;  %v2906_v18 = vld [vmem:[#allocation9 + $0x420] sm:$0xff]  ;;  %v2916_v8 = vld [vmem:[#allocation9 + $0x470] sm:$0xff]  ;;  %v2917_v42 = vld [vmem:[#allocation9 + $0x478] sm:$0xff] }
 0x3f2   : > { %4158 = vmatprep.subr.bf16.mxu1 %v4157_v28 }
 0x3f3   : > { %2238 = vmatmul.mubr.f32.gmra.mrb[18].mxu0 %v5339_v33 }
 0x3f4   : > { %2585 = vmatmul.mubr.f32.gmra.mrb[18].mxu1 %v5270_v57  ;;  %2242 = vmatprep.mubr.f32.mxu0 %v5342_v35  ;;  %v5355_v57 = vld [vmem:[#allocation2 + $0x108] sm:$0xff] }
 0x3f5   : > { %2589 = vmatprep.mubr.f32.mxu1 %v5275_v2  ;;  %4160 = vmatpush3.bf16.msra.mxu1 %v4157_v28  ;;  %v2909_v28 = vld [vmem:[#allocation9 + $0x438] sm:$0xff] }
 0x3f6   : > { %4162 = vmatprep.subr.bf16.mxu1 %v4161_v60 }
 0x3f7   : > { %2243 = vmatmul.mubr.f32.gmra.mrb[20].mxu0 %v5347_v44 }
 0x3f8   : > { %2590 = vmatmul.mubr.f32.gmra.mrb[20].mxu1 %v5282_v15  ;;  %2247 = vmatprep.mubr.f32.mxu0 %v5350_v26 }
 0x3f9   : > { %2594 = vmatprep.mubr.f32.mxu1 %v5287_v31  ;;  %4164 = vmatpush3.bf16.msra.mxu1 %v4161_v60  ;;  %v2915_v60 = vld [vmem:[#allocation9 + $0x468] sm:$0xff] }
 0x3fa   : > { %4166 = vmatprep.subr.bf16.mxu1 %v4165_v48 }
 0x3fb   : > { %2248 = vmatmul.mubr.f32.gmra.mrb[22].mxu0 %v5355_v57 }
 0x3fc   : > { %2595 = vmatmul.mubr.f32.gmra.mrb[22].mxu1 %v5294_v32  ;;  %2252 = vmatprep.mubr.f32.mxu0 %v5358_v0 }
 0x3fd   : > { %2599 = vmatprep.mubr.f32.mxu1 %v5299_v36  ;;  %4168 = vmatpush3.bf16.msra.mxu1 %v4165_v48  ;;  %v5442_v48 = vpack.c.bf16 %v2917_v42, %v2916_v8 }
 0x3fe   : > { %4170 = vmatprep.subr.bf16.mxu1 %v4169_v41 }
 0x3ff   : > { %2253 = vmatmul.mubr.f32.gmra.mrb[24].mxu0 %v5363_v50 }
 0x400   : > { %2600 = vmatmul.mubr.f32.gmra.mrb[24].mxu1 %v5306_v51  ;;  %2257 = vmatprep.mubr.f32.mxu0 %v5366_v52 }
 0x401   : > { %2604 = vmatprep.mubr.f32.mxu1 %v5311_v55  ;;  %4172 = vmatpush3.bf16.msra.mxu1 %v4169_v41 }
 0x402   : > { %4174 = vmatprep.subr.bf16.mxu1 %v4173_v1 }
 0x403   : > { %2258 = vmatmul.mubr.f32.gmra.mrb[26].mxu0 %v5371_v58 }
 0x404   : > { %2605 = vmatmul.mubr.f32.gmra.mrb[26].mxu1 %v5318_v11  ;;  %2262 = vmatprep.mubr.f32.mxu0 %v5374_v59 }
 0x405   : > { %2609 = vmatprep.mubr.f32.mxu1 %v5323_v17  ;;  %4176 = vmatpush3.bf16.msra.mxu1 %v4173_v1 }
 0x406   : > { %4178 = vmatprep.subr.bf16.mxu1 %v4177_v63 }
 0x407   : > { %2263 = vmatmul.mubr.f32.gmra.mrb[28].mxu0 %v5379_v7 }
 0x408   : > { %2610 = vmatmul.mubr.f32.gmra.mrb[28].mxu1 %v5330_v25  ;;  %2267 = vmatprep.mubr.f32.mxu0 %v5382_v9 }
 0x409   : > { %2614 = vmatprep.mubr.f32.mxu1 %v5333_v27  ;;  %4180 = vmatpush3.bf16.msra.mxu1 %v4177_v63  ;;  %v5504_v63 = vld [vmem:[%s5711_s5] ss:$0 sm:$0xff]  ;;  %s4608_s5 = scalar_lea.vmem %s4607_s7, 256 }
 0x40a   : > { %4182 = vmatprep.subr.bf16.mxu1 %v4181_v10  ;;  %p4610_p7 = scmp.lt.s32.totalorder %s4608_s5, %s4602_s17 }
 0x40b   : > { %2268 = vmatmul.mubr.f32.gmra.mrb[30].mxu0 %v5387_v12 }
 0x40c   : > { %2615 = vmatmul.mubr.f32.gmra.mrb[30].mxu1 %v5339_v33  ;;  %2982 = vmatprep.mubr.f32.mxu0 %v5275_v2  ;;  %v5403_v2 = vpack.c.bf16 %v2907_v21, %v2906_v18  ;;  %p4611_p3 = por %p4610_p7, %p4609_p4 }
 0x40d   : > { %2619 = vmatprep.mubr.f32.mxu1 %v5342_v35  ;;  %4184 = vmatpush3.bf16.msra.mxu1 %v4181_v10 }
 0x40e   : > { %4249 = vmatprep.subr.bf16.mxu1 %v5326_v19  ;;  %p4612_p0 = pnand %p4611_p3, %p4605_p12 }
 0x40f   : > { %2983 = vmatmul.mubr.f32.vlgmr.msra.gmra.mrb[32].mxu0 %v5282_v15  ;;  %v5411_v15 = vpack.c.bf16 %v2909_v28, %v2908_v22 }
 0x410   : > { %2620 = vmatmul.mubr.f32.gmra.mrb[32].mxu1 %v5347_v44  ;;  %4220 = vmatpush3.bf16.msra.mxu0 %v5326_v19 }
 0x411   : > { %2624 = vmatprep.mubr.f32.mxu1 %v5350_v26  ;;  %2987 = vmatprep.mubr.f32.mxu0 %v5287_v31  ;;  %v2910_v31 = vld [vmem:[#allocation9 + $0x440] sm:$0xff] }
 0x412   : > { %4222 = vmatprep.subr.bf16.mxu0 %v5394_v23 }
 0x413   : > { %2988 = vmatmul.mubr.f32.gmra.mrb[34].mxu0 %v5294_v32  ;;  %v5419_v32 = vpack.c.bf16 %v2911_v29, %v2910_v31 }
 0x414   : > { %2625 = vmatmul.mubr.f32.gmra.mrb[34].mxu1 %v5355_v57  ;;  %2992 = vmatprep.mubr.f32.mxu0 %v5299_v36  ;;  %v2912_v36 = vld [vmem:[#allocation9 + $0x450] sm:$0xff] }
 0x415   : > { %2629 = vmatprep.mubr.f32.mxu1 %v5358_v0  ;;  %4224 = vmatpush3.bf16.msra.mxu0 %v5394_v23 }
 0x416   : > { %4226 = vmatprep.subr.bf16.mxu0 %v5403_v2 }
 0x417   : > { %2993 = vmatmul.mubr.f32.gmra.mrb[36].mxu0 %v5306_v51  ;;  %v5427_v51 = vpack.c.bf16 %v2913_v30, %v2912_v36 }
 0x418   : > { %2630 = vmatmul.mubr.f32.gmra.mrb[36].mxu1 %v5363_v50  ;;  %2997 = vmatprep.mubr.f32.mxu0 %v5311_v55  ;;  %v2914_v55 = vld [vmem:[#allocation9 + $0x460] sm:$0xff] }
 0x419   : > { %2634 = vmatprep.mubr.f32.mxu1 %v5366_v52  ;;  %4228 = vmatpush3.bf16.msra.mxu0 %v5403_v2 }
 0x41a   : > { %4230 = vmatprep.subr.bf16.mxu0 %v5411_v15 }
 0x41b   : > { %2998 = vmatmul.mubr.f32.gmra.mrb[38].mxu0 %v5318_v11  ;;  %v2461_v11 = vld [vmem:[#allocation2 + $0x188] sm:$0xff] }
 0x41c   : > { %2635 = vmatmul.mubr.f32.gmra.mrb[38].mxu1 %v5371_v58  ;;  %3002 = vmatprep.mubr.f32.mxu0 %v5323_v17  ;;  %v5435_v17 = vpack.c.bf16 %v2915_v60, %v2914_v55 }
 0x41d   : > { %2639 = vmatprep.mubr.f32.mxu1 %v5374_v59  ;;  %4232 = vmatpush3.bf16.msra.mxu0 %v5411_v15 }
 0x41e   : > { %4234 = vmatprep.subr.bf16.mxu0 %v5419_v32 }
 0x41f   : > { %3003 = vmatmul.mubr.f32.gmra.mrb[40].mxu0 %v5330_v25  ;;  %v2460_v25 = vld [vmem:[#allocation2 + $0x180] sm:$0xff] }
 0x420   : > { %2640 = vmatmul.mubr.f32.gmra.mrb[40].mxu1 %v5379_v7  ;;  %3007 = vmatprep.mubr.f32.mxu0 %v5333_v27  ;;  %v2464_v27 = vld [vmem:[#allocation2 + $0x1a0] sm:$0xff] }
 0x421   : > { %2644 = vmatprep.mubr.f32.mxu1 %v5382_v9  ;;  %4236 = vmatpush3.bf16.msra.mxu0 %v5419_v32 }
 0x422   : > { %4238 = vmatprep.subr.bf16.mxu0 %v5427_v51 }
 0x423   : > { %3008 = vmatmul.mubr.f32.gmra.mrb[42].mxu0 %v5339_v33  ;;  %v2463_v33 = vld [vmem:[#allocation2 + $0x198] sm:$0xff] }
 0x424   : > { %2645 = vmatmul.mubr.f32.gmra.mrb[42].mxu1 %v5387_v12  ;;  %3012 = vmatprep.mubr.f32.mxu0 %v5342_v35  ;;  %v2462_v35 = vld [vmem:[#allocation2 + $0x190] sm:$0xff] }
 0x425   : > { %2649 = vmatprep.mubr.f32.mxu1 %v2461_v11  ;;  %4240 = vmatpush3.bf16.msra.mxu0 %v5427_v51 }
 0x426   : > { %4242 = vmatprep.subr.bf16.mxu0 %v5435_v17 }
 0x427   : > { %3013 = vmatmul.mubr.f32.gmra.mrb[44].mxu0 %v5347_v44  ;;  %v2866_v44 = vld [vmem:[#allocation2 + $0x1c8] sm:$0xff] }
 0x428   : > { %2650 = vmatmul.mubr.f32.gmra.mrb[44].mxu1 %v2460_v25  ;;  %3017 = vmatprep.mubr.f32.mxu0 %v5350_v26  ;;  %v2465_v26 = vld [vmem:[#allocation2 + $0x1a8] sm:$0xff] }
 0x429   : > { %2654 = vmatprep.mubr.f32.mxu1 %v2464_v27  ;;  %4244 = vmatpush3.bf16.msra.mxu0 %v5435_v17 }
 0x42a   : > { %4246 = vmatprep.subr.bf16.mxu0 %v5442_v48 }
 0x42b   : > { %3018 = vmatmul.mubr.f32.gmra.mrb[46].mxu0 %v5355_v57 }
 0x42c   : > { %2655 = vmatmul.mubr.f32.gmra.mrb[46].mxu1 %v2463_v33  ;;  %3022 = vmatprep.mubr.f32.mxu0 %v5358_v0 }
 0x42d   : > { %3881 = vmatprep.mubr.f32.mxu1 %v5247_v24  ;;  %4248 = vmatpush3.bf16.msra.mxu0 %v5442_v48  ;;  %v2864_v24 = vld [vmem:[#allocation2 + $0x1b8] sm:$0xff] }
 0x42f   : > { %3023 = vmatmul.mubr.f32.gmra.mrb[48].mxu0 %v5363_v50 }
 0x430   : > { %3882 = vmatmul.mubr.f32.vlgmr.msra.gmra.mrb[0].mxu1 %v5249_v34  ;;  %3027 = vmatprep.mubr.f32.mxu0 %v5366_v52  ;;  %v2863_v34 = vld [vmem:[#allocation2 + $0x1b0] sm:$0xff] }
 0x431   : > { %4257 = vmatpush3.bf16.msra.mxu1 %v5326_v19  ;;  %3884 = vmatprep.mubr.f32.mxu1 %v5253_v37  ;;  %v2867_v19 = vld [vmem:[#allocation2 + $0x1d0] sm:$0xff] }
 0x432   : > { %4250 = vmatprep.subr.bf16.mxu1 %v5394_v23 }
 0x433   : > { %3028 = vmatmul.mubr.f32.gmra.mrb[50].mxu0 %v5371_v58 }
 0x434   : > { %3885 = vmatmul.mubr.f32.gmra.mrb[2].mxu1 %v5261_v46  ;;  %3032 = vmatprep.mubr.f32.mxu0 %v5374_v59 }
 0x435   : > { %4258 = vmatpush3.bf16.msra.mxu1 %v5394_v23  ;;  %3887 = vmatprep.mubr.f32.mxu1 %v5265_v49 }
 0x436   : > { %4251 = vmatprep.subr.bf16.mxu1 %v5403_v2 }
 0x437   : > { %3033 = vmatmul.mubr.f32.gmra.mrb[52].mxu0 %v5379_v7 }
 0x438   : > { %3888 = vmatmul.mubr.f32.gmra.mrb[4].mxu1 %v5273_v62  ;;  %3037 = vmatprep.mubr.f32.mxu0 %v5382_v9 }
 0x439   : > { %4259 = vmatpush3.bf16.msra.mxu1 %v5403_v2  ;;  %3890 = vmatprep.mubr.f32.mxu1 %v5277_v3 }
 0x43a   : > { %4252 = vmatprep.subr.bf16.mxu1 %v5411_v15 }
 0x43b   : > { %3038 = vmatmul.mubr.f32.gmra.mrb[54].mxu0 %v5387_v12 }
 0x43c   : > { %3891 = vmatmul.mubr.f32.gmra.mrb[6].mxu1 %v5285_v20  ;;  %3042 = vmatprep.mubr.f32.mxu0 %v2461_v11 }
 0x43d   : > { %4260 = vmatpush3.bf16.msra.mxu1 %v5411_v15  ;;  %3893 = vmatprep.mubr.f32.mxu1 %v5289_v43 }
 0x43e   : > { %4253 = vmatprep.subr.bf16.mxu1 %v5419_v32 }
 0x43f   : > { %3043 = vmatmul.mubr.f32.gmra.mrb[56].mxu0 %v2460_v25 }
 0x440   : > { %3894 = vmatmul.mubr.f32.gmra.mrb[8].mxu1 %v5297_v61  ;;  %3047 = vmatprep.mubr.f32.mxu0 %v2464_v27 }
 0x441   : > { %4261 = vmatpush3.bf16.msra.mxu1 %v5419_v32  ;;  %3896 = vmatprep.mubr.f32.mxu1 %v5301_v39 }
 0x442   : > { %4254 = vmatprep.subr.bf16.mxu1 %v5427_v51 }
 0x443   : > { %3048 = vmatmul.mubr.f32.gmra.mrb[58].mxu0 %v2463_v33 }
 0x444   : > { %3897 = vmatmul.mubr.f32.gmra.mrb[10].mxu1 %v5309_v53  ;;  %3052 = vmatprep.mubr.f32.mxu0 %v2864_v24 }
 0x445   : > { %4262 = vmatpush3.bf16.msra.mxu1 %v5427_v51  ;;  %3899 = vmatprep.mubr.f32.mxu1 %v5313_v4 }
 0x446   : > { %4255 = vmatprep.subr.bf16.mxu1 %v5435_v17 }
 0x447   : > { %3053 = vmatmul.mubr.f32.gmra.mrb[60].mxu0 %v2863_v34 }
 0x448   : > { %3900 = vmatmul.mubr.f32.gmra.mrb[12].mxu1 %v5321_v14  ;;  %3057 = vmatprep.mubr.f32.mxu0 %v2867_v19 }
 0x449   : > { %4263 = vmatpush3.bf16.msra.mxu1 %v5435_v17  ;;  %3902 = vmatprep.mubr.f32.mxu1 %v2462_v35 }
 0x44a   : > { %4256 = vmatprep.subr.bf16.mxu1 %v5442_v48 }
 0x44b   : > { %3058 = vmatmul.mubr.f32.gmra.mrb[62].mxu0 %v2866_v44 }
 0x44c   : > { %3903 = vmatmul.mubr.f32.gmra.mrb[14].mxu1 %v2465_v26  ;;  %3937 = vmatprep.mubr.f32.mxu0 %v5253_v37  ;;  %v2865_v37 = vld [vmem:[#allocation2 + $0x1c0] sm:$0xff] }
 0x44d   : > { %4264 = vmatpush3.bf16.msra.mxu1 %v5442_v48  ;;  %3949 = vmatprep.mubr.f32.mxu1 %v5301_v39 }
 0x44f   : > { %3938 = vmatmul.mubr.f32.vlgmr.msra.gmra.mrb[64].mxu0 %v5261_v46  ;;  %v2868_v46 = vld [vmem:[#allocation2 + $0x1d8] sm:$0xff] }
 0x450   : > { %3950 = vmatmul.mubr.f32.vlgmr.msra.gmra.mrb[8].mxu1 %v5309_v53  ;;  %3940 = vmatprep.mubr.f32.mxu0 %v5265_v49 }
 0x451   : > { %3952 = vmatprep.mubr.f32.mxu1 %v5313_v4 }
 0x453   : > { %3941 = vmatmul.mubr.f32.gmra.mrb[66].mxu0 %v5273_v62 }
 0x454   : > { %3953 = vmatmul.mubr.f32.gmra.mrb[10].mxu1 %v5321_v14  ;;  %3943 = vmatprep.mubr.f32.mxu0 %v5277_v3 }
 0x455   : > { %3955 = vmatprep.mubr.f32.mxu1 %v2462_v35 }
 0x457   : > { %3944 = vmatmul.mubr.f32.gmra.mrb[68].mxu0 %v5285_v20 }
 0x458   : > { %3956 = vmatmul.mubr.f32.gmra.mrb[12].mxu1 %v2465_v26  ;;  %3946 = vmatprep.mubr.f32.mxu0 %v5289_v43 }
 0x459   : > { %3958 = vmatprep.mubr.f32.mxu1 %v2865_v37 }
 0x45b   : > { %3947 = vmatmul.mubr.f32.gmra.mrb[70].mxu0 %v5297_v61 }
 0x45c   : > { %3959 = vmatmul.mubr.f32.gmra.mrb[14].mxu1 %v2868_v46 }
 0x4a2   : > { %v3489_v49 = vpop.f32.mrb[0].mxu0 }
 0x4a3   : > { %v3490_v39 = vpop.f32.mrb[1].mxu0 }
 0x4a4   : > { %v3491_v53 = vadd.f32 %v3490_v39, %v3489_v49 }
 0x4a6   : > { %v3492_v62 = vpop.f32.mrb[2].mxu0  ;;  %v2195_v12 = vadd.f32 %v3491_v53, %v5504_v63 }
 0x4a7   : > { %v3493_v4 = vpop.f32.mrb[3].mxu0 }
 0x4a8   : > { %v3494_v14 = vadd.f32 %v3493_v4, %v3492_v62 }
 0x4aa   : > { %v3495_v38 = vpop.f32.mrb[4].mxu0  ;;  %v2200_v28 = vadd.f32 %v3494_v14, %v5504_v63 }
 0x4ab   : > { %v3496_v3 = vpop.f32.mrb[5].mxu0 }
 0x4ac   : > { %v3497_v40 = vadd.f32 %v3496_v3, %v3495_v38 }
 0x4ae   : > { %v3498_v57 = vpop.f32.mrb[6].mxu0  ;;  %v2205_v55 = vadd.f32 %v3497_v40, %v5504_v63 }
 0x4af   : > { %v3499_v0 = vpop.f32.mrb[7].mxu0 }
 0x4b0   : > { %v3500_v20 = vadd.f32 %v3499_v0, %v3498_v57 }
 0x4b2   : > { %v3501_v41 = vpop.f32.mrb[8].mxu0  ;;  %v2210_v48 = vadd.f32 %v3500_v20, %v5504_v63 }
 0x4b3   : > { %v3502_v45 = vpop.f32.mrb[9].mxu0 }
 0x4b4   : > { %v3503_v43 = vadd.f32 %v3502_v45, %v3501_v41 }
 0x4b6   : > { %v3504_v47 = vpop.f32.mrb[10].mxu0  ;;  %v2215_v37 = vadd.f32 %v3503_v43, %v5504_v63 }
 0x4b7   : > { %v3505_v50 = vpop.f32.mrb[11].mxu0 }
 0x4b8   : > { %v3506_v52 = vadd.f32 %v3505_v50, %v3504_v47 }
 0x4ba   : > { %v3507_v61 = vpop.f32.mrb[12].mxu0  ;;  %v2220_v38 = vadd.f32 %v3506_v52, %v5504_v63 }
 0x4bb   : > { %v3508_v1 = vpop.f32.mrb[13].mxu0 }
 0x4bc   : > { %v3509_v54 = vadd.f32 %v3508_v1, %v3507_v61 }
 0x4be   : > { %v3510_v56 = vpop.f32.mrb[14].mxu0  ;;  %v2225_v43 = vadd.f32 %v3509_v54, %v5504_v63 }
 0x4bf   : > { %v3511_v58 = vpop.f32.mrb[15].mxu0 }
 0x4c0   : > { %v5499_v59 = vadd.f32 %v3511_v58, %v3510_v56 }
 0x4c2   : > { %v3513_v5 = vpop.f32.mrb[16].mxu0 }
 0x4c3   : > { %v3601_v6 = vpop.f32.mrb[16].mxu1  ;;  %v3514_v7 = vpop.f32.mrb[17].mxu0 }
 0x4c4   : > { %v5506_v9 = vadd.f32 %v3514_v7, %v3513_v5  ;;  %v3602_v10 = vpop.f32.mrb[17].mxu1  ;;  %v2230_v5 = vadd.f32 %v5499_v59, %v5504_v63 }
 0x4c5   : > { %v3603_v13 = vadd.f32 %v3602_v10, %v3601_v6 }
 0x4c6   : > { %v3516_v16 = vpop.f32.mrb[18].mxu0 }
 0x4c7   : > { %v3604_v23 = vpop.f32.mrb[18].mxu1  ;;  %v3517_v18 = vpop.f32.mrb[19].mxu0  ;;  %v5509_v21 = vadd.f32 %v3603_v13, %v2195_v12 }
 0x4c8   : > { %v5511_v2 = vadd.f32 %v3517_v18, %v3516_v16  ;;  %v3605_v22 = vpop.f32.mrb[19].mxu1 }
 0x4c9   : > { %v3606_v15 = vadd.f32 %v3605_v22, %v3604_v23  ;;  %v2235_v23 = vadd.f32 %v5506_v9, %v5504_v63 }
 0x4ca   : > { %v3519_v31 = vpop.f32.mrb[20].mxu0 }
 0x4cb   : > { %v3607_v29 = vpop.f32.mrb[20].mxu1  ;;  %v3520_v32 = vpop.f32.mrb[21].mxu0  ;;  %v5514_v36 = vadd.f32 %v3606_v15, %v2200_v28 }
 0x4cc   : > { %v5516_v30 = vadd.f32 %v3520_v32, %v3519_v31  ;;  %v3608_v51 = vpop.f32.mrb[21].mxu1  ;;  %v2240_v32 = vadd.f32 %v5511_v2, %v5504_v63 }
 0x4cd   : > { %v3609_v60 = vadd.f32 %v3608_v51, %v3607_v29 }
 0x4ce   : > { %v3522_v11 = vpop.f32.mrb[22].mxu0  ;;  %v2245_v9 = vadd.f32 %v5516_v30, %v5504_v63 }
 0x4cf   : > { %v3610_v17 = vpop.f32.mrb[22].mxu1  ;;  %v3523_v8 = vpop.f32.mrb[23].mxu0  ;;  %v5519_v42 = vadd.f32 %v3609_v60, %v2205_v55 }
 0x4d0   : > { %v5521_v25 = vadd.f32 %v3523_v8, %v3522_v11  ;;  %v3611_v27 = vpop.f32.mrb[23].mxu1 }
 0x4d1   : > { %v3612_v33 = vadd.f32 %v3611_v27, %v3610_v17 }
 0x4d2   : > { %v3525_v24 = vpop.f32.mrb[24].mxu0 }
 0x4d3   : > { %v3613_v34 = vpop.f32.mrb[24].mxu1  ;;  %v3526_v19 = vpop.f32.mrb[25].mxu0  ;;  %v5524_v35 = vadd.f32 %v3612_v33, %v2210_v48 }
 0x4d4   : > { %v5526_v44 = vadd.f32 %v3526_v19, %v3525_v24  ;;  %v3614_v26 = vpop.f32.mrb[25].mxu1 }
 0x4d5   : > { %v3615_v46 = vadd.f32 %v3614_v26, %v3613_v34 }
 0x4d6   : > { %v3528_v49 = vpop.f32.mrb[26].mxu0  ;;  %v2255_v30 = vadd.f32 %v5526_v44, %v5504_v63 }
 0x4d7   : > { %v3616_v39 = vpop.f32.mrb[26].mxu1  ;;  %v3529_v53 = vpop.f32.mrb[27].mxu0  ;;  %v5529_v62 = vadd.f32 %v3615_v46, %v2215_v37  ;;  %v2250_v37 = vadd.f32 %v5521_v25, %v5504_v63 }
 0x4d8   : > { %v5531_v4 = vadd.f32 %v3529_v53, %v3528_v49  ;;  %v3617_v14 = vpop.f32.mrb[27].mxu1 }
 0x4d9   : > { %v3618_v3 = vadd.f32 %v3617_v14, %v3616_v39 }
 0x4da   : > { %v3531_v40 = vpop.f32.mrb[28].mxu0  ;;  %v2260_v25 = vadd.f32 %v5531_v4, %v5504_v63 }
 0x4db   : > { %v3619_v57 = vpop.f32.mrb[28].mxu1  ;;  %v3532_v0 = vpop.f32.mrb[29].mxu0  ;;  %v5534_v20 = vadd.f32 %v3618_v3, %v2220_v38 }
 0x4dc   : > { %v5536_v41 = vadd.f32 %v3532_v0, %v3531_v40  ;;  %v3620_v45 = vpop.f32.mrb[29].mxu1 }
 0x4dd   : > { %v3621_v47 = vadd.f32 %v3620_v45, %v3619_v57 }
 0x4de   : > { %v3534_v50 = vpop.f32.mrb[30].mxu0  ;;  %v2265_v44 = vadd.f32 %v5536_v41, %v5504_v63 }
 0x4df   : > { %v3622_v61 = vpop.f32.mrb[30].mxu1  ;;  %v3535_v1 = vpop.f32.mrb[31].mxu0  ;;  %v5539_v56 = vadd.f32 %v3621_v47, %v2225_v43 }
 0x4e0   : > { %v5541_v58 = vadd.f32 %v3535_v1, %v3534_v50  ;;  %v3623_v52 = vpop.f32.mrb[31].mxu1 }
 0x4e1   : > { %v3624_v6 = vadd.f32 %v3623_v52, %v3622_v61 }
 0x4e2   : > { %v3713_v7 = vpop.f32.mrb[32].mxu0  ;;  %v2270_v4 = vadd.f32 %v5541_v58, %v5504_v63 }
 0x4e3   : > { %v3625_v10 = vpop.f32.mrb[32].mxu1  ;;  %v3714_v12 = vpop.f32.mrb[33].mxu0  ;;  %v5545_v13 = vadd.f32 %v3624_v6, %v2230_v5 }
 0x4e4   : > { %v3626_v16 = vpop.f32.mrb[33].mxu1  ;;  %v5547_v54 = vadd.f32 %v3714_v12, %v3713_v7 }
 0x4e5   : > { %v3627_v18 = vadd.f32 %v3626_v16, %v3625_v10 }
 0x4e6   : > { %v3716_v22 = vpop.f32.mrb[34].mxu0 }
 0x4e7   : > { %v5551_v28 = vadd.f32 %v3627_v18, %v2235_v23  ;;  %v3628_v15 = vpop.f32.mrb[34].mxu1  ;;  %v3717_v31 = vpop.f32.mrb[35].mxu0 }
 0x4e8   : > { %v3629_v29 = vpop.f32.mrb[35].mxu1  ;;  %v3718_v59 = vadd.f32 %v3717_v31, %v3716_v22 }
 0x4e9   : > { %v3630_v51 = vadd.f32 %v3629_v29, %v3628_v15 }
 0x4ea   : > { %v3719_v55 = vpop.f32.mrb[36].mxu0 }
 0x4eb   : > { %v5555_v60 = vadd.f32 %v3630_v51, %v2240_v32  ;;  %v3631_v11 = vpop.f32.mrb[36].mxu1  ;;  %v3720_v17 = vpop.f32.mrb[37].mxu0 }
 0x4ec   : > { %v3632_v8 = vpop.f32.mrb[37].mxu1  ;;  %v5557_v27 = vadd.f32 %v3720_v17, %v3719_v55 }
 0x4ed   : > { %v3633_v48 = vadd.f32 %v3632_v8, %v3631_v11 }
 0x4ee   : > { %v3722_v33 = vpop.f32.mrb[38].mxu0 }
 0x4ef   : > { %v5561_v24 = vadd.f32 %v3633_v48, %v2245_v9  ;;  %v3634_v34 = vpop.f32.mrb[38].mxu1  ;;  %v3723_v19 = vpop.f32.mrb[39].mxu0 }
 0x4f0   : > { %v3635_v26 = vpop.f32.mrb[39].mxu1  ;;  %v3724_v2 = vadd.f32 %v3723_v19, %v3722_v33 }
 0x4f1   : > { %v3636_v46 = vadd.f32 %v3635_v26, %v3634_v34 }
 0x4f2   : > { %v3725_v49 = vpop.f32.mrb[40].mxu0 }
 0x4f3   : > { %v5565_v39 = vadd.f32 %v3636_v46, %v2250_v37  ;;  %v3637_v53 = vpop.f32.mrb[40].mxu1  ;;  %v3726_v14 = vpop.f32.mrb[41].mxu0 }
 0x4f4   : > { %v3638_v38 = vpop.f32.mrb[41].mxu1  ;;  %v3727_v3 = vadd.f32 %v3726_v14, %v3725_v49 }
 0x4f5   : > { %v3639_v40 = vadd.f32 %v3638_v38, %v3637_v53 }
 0x4f6   : > { %v3728_v57 = vpop.f32.mrb[42].mxu0 }
 0x4f7   : > { %v5569_v0 = vadd.f32 %v3639_v40, %v2255_v30  ;;  %v3640_v45 = vpop.f32.mrb[42].mxu1  ;;  %v3729_v43 = vpop.f32.mrb[43].mxu0 }
 0x4f8   : > { %v3641_v47 = vpop.f32.mrb[43].mxu1  ;;  %v3730_v50 = vadd.f32 %v3729_v43, %v3728_v57 }
 0x4f9   : > { %v3642_v61 = vadd.f32 %v3641_v47, %v3640_v45 }
 0x4fa   : > { %v3731_v1 = vpop.f32.mrb[44].mxu0 }
 0x4fb   : > { %v5573_v52 = vadd.f32 %v3642_v61, %v2260_v25  ;;  %v3643_v5 = vpop.f32.mrb[44].mxu1  ;;  %v3732_v6 = vpop.f32.mrb[45].mxu0 }
 0x4fc   : > { %v3644_v7 = vpop.f32.mrb[45].mxu1  ;;  %v3733_v10 = vadd.f32 %v3732_v6, %v3731_v1 }
 0x4fd   : > { %v3645_v12 = vadd.f32 %v3644_v7, %v3643_v5 }
 0x4fe   : > { %v3734_v16 = vpop.f32.mrb[46].mxu0 }
 0x4ff   : > { %v4318_v23 = vadd.f32 %v3645_v12, %v2265_v44  ;;  %v3646_v18 = vpop.f32.mrb[46].mxu1  ;;  %v3735_v22 = vpop.f32.mrb[47].mxu0 }
 0x500   : > { %v3647_v15 = vpop.f32.mrb[47].mxu1  ;;  %v3736_v31 = vadd.f32 %v3735_v22, %v3734_v16 }
 0x501   : > { %v3648_v29 = vadd.f32 %v3647_v15, %v3646_v18 }
 0x502   : > { %v3737_v32 = vpop.f32.mrb[48].mxu0 }
 0x503   : > { %v4315_v51 = vadd.f32 %v3648_v29, %v2270_v4  ;;  %v3883_v55 = vpop.f32.mrb[0].mxu1  ;;  %v3738_v11 = vpop.f32.mrb[49].mxu0 }
 0x504   : > { %v4266_v17 = vadd.f32 %v5514_v36, %v3883_v55  ;;  %v2726_v8 = vpop.f32.mrb[1].mxu1  ;;  %v3739_v9 = vadd.f32 %v3738_v11, %v3737_v32 }
 0x505   : > { %v4270_v41 = vadd.f32 %v5509_v21, %v2726_v8 }
 0x506   : > { %v3740_v48 = vpop.f32.mrb[50].mxu0  ;;  %v4267_v33 = vadd.f32 %v4266_v17, %v3718_v59  ;;  %v4301_v34 = vadd.f32 %v5551_v28, %v3739_v9 }
 0x507   : > { %v3886_v19 = vpop.f32.mrb[2].mxu1  ;;  %v3741_v26 = vpop.f32.mrb[51].mxu0  ;;  %v4271_v37 = vadd.f32 %v4270_v41, %v5547_v54 }
 0x508   : > { %v4274_v63 = vadd.f32 %v5524_v35, %v3886_v19  ;;  %v2736_v58 = vpop.f32.mrb[3].mxu1  ;;  %v3742_v46 = vadd.f32 %v3741_v26, %v3740_v48 }
 0x509   : > { %v4278_v49 = vadd.f32 %v5519_v42, %v2736_v58 }
 0x50a   : > { %v3743_v53 = vpop.f32.mrb[52].mxu0  ;;  %v4298_v36 = vadd.f32 %v5555_v60, %v3742_v46  ;;  %v4275_v14 = vadd.f32 %v4274_v63, %v3724_v2 }
 0x50b   : > { %v3889_v38 = vpop.f32.mrb[4].mxu1  ;;  %v3744_v21 = vpop.f32.mrb[53].mxu0  ;;  %v4279_v59 = vadd.f32 %v4278_v49, %v5557_v27 }
 0x50c   : > { %v4282_v28 = vadd.f32 %v5534_v20, %v3889_v38  ;;  %v2746_v30 = vpop.f32.mrb[5].mxu1  ;;  %v3745_v40 = vadd.f32 %v3744_v21, %v3743_v53 }
 0x50d   : > { %v4286_v54 = vadd.f32 %v5529_v62, %v2746_v30 }
 0x50e   : > { %v3746_v57 = vpop.f32.mrb[54].mxu0  ;;  %v4307_v35 = vadd.f32 %v5561_v24, %v3745_v40  ;;  %v4283_v45 = vadd.f32 %v4282_v28, %v3730_v50 }
 0x50f   : > { %v3892_v43 = vpop.f32.mrb[6].mxu1  ;;  %v3747_v42 = vpop.f32.mrb[55].mxu0  ;;  %v4287_v47 = vadd.f32 %v4286_v54, %v3727_v3 }
 0x510   : > { %v4290_v60 = vadd.f32 %v5545_v13, %v3892_v43  ;;  %v2756_v2 = vpop.f32.mrb[7].mxu1  ;;  %v3748_v25 = vadd.f32 %v3747_v42, %v3746_v57 }
 0x511   : > { %v4294_v61 = vadd.f32 %v5539_v56, %v2756_v2 }
 0x512   : > { %v3749_v27 = vpop.f32.mrb[56].mxu0  ;;  %v4304_v20 = vadd.f32 %v5565_v39, %v3748_v25  ;;  %v4291_v1 = vadd.f32 %v4290_v60, %v3736_v31 }
 0x513   : > { %v3750_v5 = vpop.f32.mrb[57].mxu0  ;;  %v4295_v6 = vadd.f32 %v4294_v61, %v3733_v10 }
 0x514   : > { %v3751_v62 = vadd.f32 %v3750_v5, %v3749_v27 }
 0x516   : > { %v3752_v7 = vpop.f32.mrb[58].mxu0  ;;  %v4313_v24 = vadd.f32 %v5569_v0, %v3751_v62 }
 0x517   : > { %v3753_v50 = vpop.f32.mrb[59].mxu0 }
 0x518   : > { %v3754_v44 = vadd.f32 %v3753_v50, %v3752_v7 }
 0x51a   : > { %v3755_v12 = vpop.f32.mrb[60].mxu0  ;;  %v4310_v3 = vadd.f32 %v5573_v52, %v3754_v44 }
 0x51b   : > { %v3756_v13 = vpop.f32.mrb[61].mxu0 }
 0x51c   : > { %v3757_v16 = vadd.f32 %v3756_v13, %v3755_v12 }
 0x51e   : > { %v3758_v18 = vpop.f32.mrb[62].mxu0  ;;  %v4319_v22 = vadd.f32 %v4318_v23, %v3757_v16 }
 0x51f   : > { %v3759_v56 = vpop.f32.mrb[63].mxu0 }
 0x520   : > { %v3760_v15 = vadd.f32 %v3759_v56, %v3758_v18 }
 0x522   : > { %v3939_v4 = vpop.f32.mrb[64].mxu0  ;;  %v4316_v39 = vadd.f32 %v4315_v51, %v3760_v15 }
 0x523   : > { %v4268_v31 = vadd.f32 %v4267_v33, %v3939_v4  ;;  %v3951_v29 = vpop.f32.mrb[8].mxu1  ;;  %v3129_v10 = vpop.f32.mrb[65].mxu0 }
 0x524   : > { %v4299_v32 = vadd.f32 %v4298_v36, %v3951_v29  ;;  %v3169_v55 = vpop.f32.mrb[9].mxu1  ;;  %v4272_v11 = vadd.f32 %v4271_v37, %v3129_v10 }
 0x525   : > { %v4302_v0 = vadd.f32 %v4301_v34, %v3169_v55 }
 0x526   : > { %v3942_v17 = vpop.f32.mrb[66].mxu0  ;;  %3224 = vxpose.xlu0.b32.start [1/16] (narrow) %v4272_v11, 8 }
 0x527   : > { %v4276_v8 = vadd.f32 %v4275_v14, %v3942_v17  ;;  %v3954_v9 = vpop.f32.mrb[10].mxu1  ;;  %v3139_v52 = vpop.f32.mrb[67].mxu0 }
 0x528   : > { %v4305_v41 = vadd.f32 %v4304_v20, %v3954_v9  ;;  %v4280_v48 = vadd.f32 %v4279_v59, %v3139_v52  ;;  %v3179_v19 = vpop.f32.mrb[11].mxu1 }
 0x529   : > { %v4308_v23 = vadd.f32 %v4307_v35, %v3179_v19 }
 0x52a   : > { %v3945_v26 = vpop.f32.mrb[68].mxu0  ;;  %3225 = vxpose.xlu0.b32.cont [2/16] (narrow) %v4268_v31, 8 }
 0x52b   : > { %v4284_v63 = vadd.f32 %v4283_v45, %v3945_v26  ;;  %v3957_v51 = vpop.f32.mrb[12].mxu1  ;;  %v3149_v33 = vpop.f32.mrb[69].mxu0 }
 0x52c   : > { %v4311_v58 = vadd.f32 %v4310_v3, %v3957_v51  ;;  %v4288_v46 = vadd.f32 %v4287_v47, %v3149_v33  ;;  %v3189_v49 = vpop.f32.mrb[13].mxu1 }
 0x52d   : > { %v4314_v53 = vadd.f32 %v4313_v24, %v3189_v49 }
 0x52e   : > { %v3948_v37 = vpop.f32.mrb[70].mxu0  ;;  %3226 = vxpose.xlu0.b32.cont [3/16] (narrow) %v4280_v48, 8 }
 0x52f   : > { %v4292_v34 = vadd.f32 %v4291_v1, %v3948_v37  ;;  %v3960_v36 = vpop.f32.mrb[14].mxu1  ;;  %v3159_v14 = vpop.f32.mrb[71].mxu0 }
 0x530   : > { %v4317_v38 = vadd.f32 %v4316_v39, %v3960_v36  ;;  %v4296_v21 = vadd.f32 %v4295_v6, %v3159_v14  ;;  %v3199_v59 = vpop.f32.mrb[15].mxu1 }
 0x531   : > { %v4320_v28 = vadd.f32 %v4319_v22, %v3199_v59 }
 0x532   : > { %3227 = vxpose.xlu0.b32.cont [4/16] (narrow) %v4276_v8, 8 }
 0x536   : > { %3228 = vxpose.xlu0.b32.cont [5/16] (narrow) %v4288_v46, 8 }
 0x53a   : > { %3229 = vxpose.xlu0.b32.cont [6/16] (narrow) %v4284_v63, 8 }
 0x53e   : > { %3230 = vxpose.xlu0.b32.cont [7/16] (narrow) %v4296_v21, 8 }
 0x542   : > { %3231 = vxpose.xlu0.b32.cont [8/16] (narrow) %v4292_v34, 8 }
 0x546   : > { %3232 = vxpose.xlu0.b32.cont [9/16] (narrow) %v4302_v0, 8 }
 0x54a   : > { %3233 = vxpose.xlu0.b32.cont [10/16] (narrow) %v4299_v32, 8 }
 0x54e   : > { %3234 = vxpose.xlu0.b32.cont [11/16] (narrow) %v4308_v23, 8 }
 0x552   : > { %3235 = vxpose.xlu0.b32.cont [12/16] (narrow) %v4305_v41, 8 }
 0x556   : > { %3236 = vxpose.xlu0.b32.cont [13/16] (narrow) %v4314_v53, 8 }
 0x55a   : > { %3237 = vxpose.xlu0.b32.cont [14/16] (narrow) %v4311_v58, 8 }
 0x55e   : > { %3238 = vxpose.xlu0.b32.cont [15/16] (narrow) %v4320_v28, 8 }
 0x562   : > { %3239 = vxpose.xlu0.b32.end [16/16] (narrow) %v4317_v38, 8 }
 0x5a6   : > { %v3240_v30 = vpop.trf.xlu0 }
 0x5a7   : > { %3256 = vst [vmem:[%s298_s13] sm:$0xff] %v3240_v30 }
 0x5a8   : > { %4615 = shalt.err (!%p4612_p0)
}
 0x5a9   : > { %s4616_s2 = scalar_lea.hbm %s5602_s21, 128  ;;  %s4620_s1 = scalar_lea.hbm %s5714_s10, 512 }
 0x5aa   : > { %p4617_p1 = scmp.ne.s32.totalorder %s5602_s21, %s4616_s2  ;;  %p4621_p2 = scmp.lt.u32.totalorder %s5602_s21, %s5714_s10 }
 0x5ab   : > { %p4622_p9 = scmp.lt.u32.totalorder %s4620_s1, %s4616_s2  ;;  %p4624_p5 = scmp.lt.u32.totalorder %s4616_s2, %s5602_s21 }
 0x5ac   : > { %p4618_p11 = pnand %p4617_p1, %p5715_p6 }
 0x5ad   : > { %p4623_p13 = por %p4622_p9, %p4621_p2 }
 0x5ae   : > { %p4619_p10 = pneg %p4618_p11 }
 0x5af   : > { %p4625_p8 = por %p4624_p5, %p4623_p13 }
 0x5b1   : > { %p4626_p12 = pnand %p4625_p8, %p4619_p10 }
 0x5b3   : > { %4629 = shalt.err (!%p4626_p12)
}
 0x5b4   : > { %4359 = dma.vmem_to_hbm [thread:$0]  (%p5715_p6), %s5604_s6, 128, %s5602_s21, %s3258_s15  }
 0x5b5 PF: > { %s5716_s12 = sld [smem:[#allocation16_spill]]  ;;  %s5717_s8 = sld [smem:[#allocation19_spill]] }
 0x5b6   : > { %p4386_p4 = scmp.ge.s32.totalorder %s4732_s28, 2 }
 0x5bb   : > { %s3285_s9 = sand.u32 1, %s5716_s12   ;;  %p5718_p7 = scmp.ne.s32.totalorder %s5717_s8, 0 }
 0x5bc   : > { %s3286_s17 = scalar_lea.sflag [#allocation5], %s3285_s9 }
 0x5bd   : > { %p4376_p3 = pnand %p4386_p4, %p5718_p7 }
 0x5bf   : > { %4687 = dma.done.wait (!%p4376_p3), %s3286_s17, 128  }
 0x5c0   : > { %4689 = vsyncadd (!%p4376_p3), %s3286_s17, 4294967168  ;;  %s23_s28 = sadd.s32 1, %s4732_s28   ;;  %s5719_s29 = smov %s5731_s18 }
 0x5c1   : > { %p20_p0 = scmp.ge.s32.totalorder %s23_s28, 6   ;;  %s5720_s18 = smov %s4696_s19 }
 0x5c2   : > { %s5721_s19 = smov %s4700_s20  ;;  %s5722_s20 = smov %s4986_s16 }
 0x5c3   : > { %s5723_s21 = smov %s4708_s22  ;;  %s5724_s22 = smov %s4712_s23 }
 0x5c4   : > { %s5725_s23 = smov %s4981_s4  ;;  %s5726_s24 = smov %s4724_s26 }
 0x5c5   : > { %s5727_s25 = smov %s4728_s27  ;;  %s5728_s26 = smov %s5719_s29 }
 0x5c6   : > { %s5729_s27 = smov %s5735_s14  ;;  %22 = sbr.rel (!%p20_p0) target bundleno = 16 (0x10), region = 128 }
 0x5cd   :  { %3291 = vsyncpa [#allocation4], 1 }
 0x5ce   :  { %3293 = vsyncpa [#allocation4 + $0x1], 1 }
 0x5cf   :  { %3294 = vsyncpa [#allocation7], 1 }
 0x5d0   :  { %3295 = vsyncpa [#allocation10], 1 }
 0x5d1   :  { %3296 = vsyncpa [#allocation5], 1 }
 0x5d2   :  { %3298 = vsyncpa [#allocation5 + $0x1], 1 }

</bundles_post_ra>
